<compile_context>
chip_gen: v6e
topology: v6e:2x2x1
jax: 0.10.0
libtpu: 0.0.40
codegen_flags: <defaults>
</compile_context>

<pallas_src>
import math
import numpy as np

import jax
import jax.numpy as jnp
from jax.experimental import pallas as pl
from jax.experimental.pallas import tpu as pltpu

# ----------------------------- configuration --------------------------------
B, S = 2, 8                 # batch, sequence length
VOCAB = 100                 # toy sentence-encoder vocab
H = 32                      # hidden size (sentence_encoder.out_dim)
NH = 4                      # num_attention_heads
HD = H // NH                # head dim
FF = 64                     # dim_feedforward
NUM_LAYERS = 2              # num_layers
LABELS = ["O", "B-ARG0", "I-ARG0", "B-ARG1", "I-ARG1"]   # BIO labels
L = len(LABELS)
EPS = 1e-5                  # LayerNorm eps (PyTorch default)
NEG = -1.0e9                # -inf substitute for masked attention keys
OUT_W = 128                 # lane-dense output width (outputs padded to 128 lanes)


# ----------------------------- kernel helpers --------------------------------
def _layer_norm(x, gamma, beta):
    # E[x^2] - E[x]^2 form: the two lane reductions are independent (shorter
    # serial XLU chain than mean -> center -> square -> mean).
    mu = jnp.mean(x, axis=-1, keepdims=True)
    m2 = jnp.mean(x * x, axis=-1, keepdims=True)
    var = m2 - mu * mu
    return (x - mu) * jax.lax.rsqrt(var + EPS) * gamma + beta


# ----------------------------- fused kernel ----------------------------------
def make_kernel(bb):
    """Build the fused kernel for a batch block of `bb` sequences per grid step."""

    def kernel(len_sref,        # SMEM (B,) int32 sequence lengths (scalar prefetch)
               x_ref,           # (bb, S, H) embedded input
               maskf_ref,       # (bb, 1, S) float mask (1 = valid token)
               wqkv_ref,        # (NUM_LAYERS*3*NH, H, HD) head-major QKV (scale folded into Q)
               bqkv_ref,        # (NUM_LAYERS*3*NH, 1, HD)
               wo_ref,          # (NUM_LAYERS, H, H)   attention output projection
               wf1_ref,         # (NUM_LAYERS, H, FF)
               wf2_ref,         # (NUM_LAYERS, FF, H)
               vecs_ref,        # (NUM_LAYERS, 8, 128) packed per-layer vectors
               wfc_ref,         # (H, OUT_W) classifier weight, lane-padded
               misc_ref,        # (24, 128) packed CRF params + classifier bias
               logits_ref, pred_ref, score_ref):
        b0 = pl.program_id(0) * bb

        # Dense matmuls (projections / FFN / classifier) run on the whole
        # (bb*S, H) activation slab; only softmax + CRF are per sequence.
        xs = x_ref[...].reshape(bb * S, H)

        # vectorized key-padding bias: one select per batch element, hoisted
        key_bias = [jnp.where(maskf_ref[bi] > 0.0, 0.0, NEG) for bi in range(bb)]

        # ---- transformer encoder layers (post-norm), weights resident in VMEM ----
        # TODO(synk): for larger NUM_LAYERS / S switch these static unrolls to
        # lax.fori_loop + VMEM scratch to bound vreg live ranges.
        for l in range(NUM_LAYERS):
            attn = None
            for h in range(NH):
                # head-major weights: leading-dim indexing, no lane-offset slices
                wq = wqkv_ref[(l * 3 + 0) * NH + h]
                wk = wqkv_ref[(l * 3 + 1) * NH + h]
                wv = wqkv_ref[(l * 3 + 2) * NH + h]
                q = jnp.dot(xs, wq, preferred_element_type=jnp.float32) \
                    + bqkv_ref[(l * 3 + 0) * NH + h]        # scale already folded in
                k = jnp.dot(xs, wk, preferred_element_type=jnp.float32) \
                    + bqkv_ref[(l * 3 + 1) * NH + h]
                v = jnp.dot(xs, wv, preferred_element_type=jnp.float32) \
                    + bqkv_ref[(l * 3 + 2) * NH + h]

                ctx_parts = []
                for bi in range(bb):                        # attention is per sequence
                    qb = q[bi * S:(bi + 1) * S]             # sublane slices (multiples of 8)
                    kb = k[bi * S:(bi + 1) * S]
                    vb = v[bi * S:(bi + 1) * S]
                    s = jax.lax.dot_general(qb, kb, (((1,), (1,)), ((), ())),
                                            preferred_element_type=jnp.float32)
                    s = s + key_bias[bi]
                    s = s - jnp.max(s, axis=-1, keepdims=True)
                    e = jnp.exp(s)
                    p = e * pl.reciprocal(jnp.sum(e, axis=-1, keepdims=True),
                                          approx=True)      # EUP, off the VPU chain
                    ctx_parts.append(jnp.dot(p, vb, preferred_element_type=jnp.float32))
                ctx = ctx_parts[0] if bb == 1 else jnp.concatenate(ctx_parts, axis=0)

                # accumulate output projection per head (sublane slice of wo);
                # avoids lane-direction concat of 8-wide head fragments.
                part = jnp.dot(ctx, wo_ref[l, h * HD:(h + 1) * HD, :],
                               preferred_element_type=jnp.float32)
                attn = part if attn is None else attn + part

            bo = vecs_ref[l, 0:1, 0:H]
            g1 = vecs_ref[l, 1:2, 0:H]
            be1 = vecs_ref[l, 2:3, 0:H]
            bf1 = vecs_ref[l, 3:4, 0:FF]
            bf2 = vecs_ref[l, 4:5, 0:H]
            g2 = vecs_ref[l, 5:6, 0:H]
            be2 = vecs_ref[l, 6:7, 0:H]

            y = _layer_norm(xs + attn + bo, g1, be1)                             # norm1
            hdn = jnp.maximum(
                jnp.dot(y, wf1_ref[l], preferred_element_type=jnp.float32) + bf1, 0.0)
            ffo = jnp.dot(hdn, wf2_ref[l], preferred_element_type=jnp.float32) + bf2
            xs = _layer_norm(y + ffo, g2, be2)                                   # norm2

        # ---- final classifier: lane-dense (bb*S, 128) logits slab (cols >= L are 0) ----
        bfc = misc_ref[18:19, :]
        logits_pad = (jnp.dot(xs, wfc_ref[...], preferred_element_type=jnp.float32)
                      + bfc)
        logits_ref[...] = logits_pad.reshape(bb, S, OUT_W)       # unmasked full-lane store

        # ---- constrained-CRF Viterbi decode (per sequence) ----
        trans_ft = misc_ref[0:L, 0:L]          # trans[from, to]
        trans_tf = misc_ref[8:8 + L, 0:L]      # trans[to, from]
        start_row = misc_ref[16:17, 0:L]
        end_row = misc_ref[17:18, 0:L]

        iota_from_lane = jax.lax.broadcasted_iota(jnp.int32, (L, L), 1)
        iota_from_sub = jax.lax.broadcasted_iota(jnp.int32, (L, L), 0)
        iota_lane_row = jax.lax.broadcasted_iota(jnp.int32, (1, L), 1)
        iota_sub_col = jax.lax.broadcasted_iota(jnp.int32, (L, 1), 0)
        lane_pos = jax.lax.broadcasted_iota(jnp.int32, (1, OUT_W), 1)
        # masked (padded) steps use identity "transitions": the DP carries its
        # score and the backpointer is the identity -- no carry-select transpose.
        eye_bias = jnp.where(iota_from_sub == iota_from_lane, 0.0, NEG)
        final_is_col = ((S - 1) % 2) == 1
        end_col = jnp.transpose(end_row) if final_is_col else None

        for bi in range(bb):
            length = len_sref[b0 + bi]
            last_valid = length - 1
            # TODO(synk): zero-length sequences leave score = logits[0]+start+end
            # (same as the reference implementation on fully padded rows).
            lb = logits_pad[bi * S:(bi + 1) * S, 0:L]        # (S, L)
            lb_t = jnp.transpose(lb)                         # (L, S) emissions as columns

            vscore = lb[0:1, :] + start_row                  # t = 0, row orientation
            is_row = True
            bps = [None] * S
            # The DP alternates row/column orientation so the per-step transpose
            # of vscore disappears; row steps use lane reduces, column steps
            # sublane reduces.
            for t in range(1, S):
                valid_t = t < length
                if is_row:                                   # row (1,L) -> column (L,1)
                    cand = jnp.where(valid_t, trans_tf, eye_bias) + vscore     # [to, from]
                    best = jnp.max(cand, axis=1, keepdims=True)                # (L, 1)
                    bps[t] = (jnp.min(jnp.where(cand >= best, iota_from_lane, L),
                                      axis=1, keepdims=True), False)
                    vscore = best + jnp.where(valid_t, lb_t[:, t:t + 1], 0.0)
                    is_row = False
                else:                                        # column (L,1) -> row (1,L)
                    cand = jnp.where(valid_t, trans_ft, eye_bias) + vscore     # [from, to]
                    best = jnp.max(cand, axis=0, keepdims=True)                # (1, L)
                    bps[t] = (jnp.min(jnp.where(cand >= best, iota_from_sub, L),
                                      axis=0, keepdims=True), True)
                    vscore = best + jnp.where(valid_t, lb[t:t + 1, :], 0.0)
                    is_row = True

            if is_row:
                vfinal = vscore + end_row
                best_sc = jnp.max(vfinal, axis=1, keepdims=True)               # (1, 1)
                tag = jnp.min(jnp.where(vfinal >= best_sc, iota_lane_row, L),
                              axis=1, keepdims=True)
            else:
                vfinal = vscore + end_col
                best_sc = jnp.max(vfinal, axis=0, keepdims=True)               # (1, 1)
                tag = jnp.min(jnp.where(vfinal >= best_sc, iota_sub_col, L),
                              axis=0, keepdims=True)

            score_ref[bi] = jnp.broadcast_to(best_sc, (1, OUT_W))              # lane-dense

            # backtrack (one-hot gathers); padded steps are identity so `cur`
            # simply carries through them.
            cur = tag                                                           # (1, 1)
            pred_row = jnp.where(lane_pos == last_valid, cur,
                                 jnp.zeros((1, OUT_W), jnp.int32))
            for t in range(S - 1, 0, -1):
                bp_t, bp_is_row = bps[t]
                if bp_is_row:
                    prev = jnp.sum(jnp.where(iota_lane_row == cur, bp_t, 0),
                                   axis=1, keepdims=True)
                else:
                    prev = jnp.sum(jnp.where(iota_sub_col == cur, bp_t, 0),
                                   axis=0, keepdims=True)
                write_t = last_valid >= t
                pred_row = jnp.where((lane_pos == (t - 1)) & write_t, prev, pred_row)
                cur = prev
            pred_ref[bi] = pred_row                                             # lane-dense

    return kernel


# ----------------------------- wrapper helpers --------------------------------
def _resident_spec(a):
    """Full-array block, constant index map -> weight DMA'd once, resident in VMEM."""
    n = a.ndim

    def imap(g, lens):
        return (0,) * n

    return pl.BlockSpec(a.shape, imap)


def _cores_per_chip():
    """2 TensorCores/chip on v7x (and megacore v4/v5p), otherwise 1 (v5e/v6e)."""
    try:
        kind = jax.devices()[0].device_kind.lower()
    except Exception:
        return 1
    if "v7" in kind:
        return 2
    if "v4" in kind or "v5p" in kind:
        return 2
    return 1


# ----------------------------- CRF constraints --------------------------------
def bio_constraints(labels):
    """allowed_transitions(..., encoding_type='BIO', include_start_end=True)."""
    n = len(labels)

    def split(lab):
        if lab == "O":
            return "O", ""
        p, t = lab.split("-", 1)
        return p, t

    allowed = np.zeros((n, n), dtype=np.float32)
    for i, li in enumerate(labels):
        pi, ti = split(li)
        for j, lj in enumerate(labels):
            pj, tj = split(lj)
            if pj in ("O", "B"):
                ok = True
            else:  # I-tj only from B-tj / I-tj
                ok = (pi in ("B", "I")) and (ti == tj)
            allowed[i, j] = 1.0 if ok else 0.0
    start_ok = np.array([1.0 if split(l)[0] in ("O", "B") else 0.0 for l in labels],
                        dtype=np.float32)
    end_ok = np.ones((n,), dtype=np.float32)
    return allowed, start_ok, end_ok


# ----------------------------- weight packing ----------------------------------
def _prepare_weights(params):
    """Pack parameters into a few VMEM-resident arrays (fewer, larger DMAs)."""
    st = params["stacked"]
    scale = 1.0 / math.sqrt(HD)

    # head-major Q/K/V, attention scale folded into Q weights & bias (weight fold)
    wqkv = jnp.concatenate([st["wq"] * scale, st["wk"], st["wv"]], axis=1)
    wqkv = wqkv.reshape(NUM_LAYERS * 3 * NH, H, HD)
    bqkv = jnp.concatenate([st["bq"] * scale, st["bk"], st["bv"]], axis=1)
    bqkv = bqkv.reshape(NUM_LAYERS * 3 * NH, 1, HD)

    # all small per-layer vectors packed into one (NUM_LAYERS, 8, 128) array
    vecs = jnp.zeros((NUM_LAYERS, 8, 128), jnp.float32)
    vecs = vecs.at[:, 0, :H].set(st["bo"])
    vecs = vecs.at[:, 1, :H].set(st["g1"])
    vecs = vecs.at[:, 2, :H].set(st["be1"])
    vecs = vecs.at[:, 3, :FF].set(st["bf1"])
    vecs = vecs.at[:, 4, :H].set(st["bf2"])
    vecs = vecs.at[:, 5, :H].set(st["g2"])
    vecs = vecs.at[:, 6, :H].set(st["be2"])

    # constrained CRF params (+ classifier bias) packed into one (24, 128) tile
    allowed, start_ok, end_ok = bio_constraints(LABELS)
    trans_c = params["trans_m"] + (jnp.asarray(allowed) - 1.0) * 10000.0      # [from, to]
    start_c = params["start_scores"] + (jnp.asarray(start_ok) - 1.0) * 10000.0
    end_c = params["end_scores"] + (jnp.asarray(end_ok) - 1.0) * 10000.0
    misc = jnp.zeros((24, 128), jnp.float32)
    misc = misc.at[0:L, 0:L].set(trans_c)
    misc = misc.at[8:8 + L, 0:L].set(trans_c.T)
    misc = misc.at[16, 0:L].set(start_c)
    misc = misc.at[17, 0:L].set(end_c)
    misc = misc.at[18, 0:L].set(params["b_fc"])

    # classifier weight lane-padded to 128 so logits stores are unmasked vst
    wfc = jnp.zeros((H, OUT_W), jnp.float32).at[:, 0:L].set(params["w_fc"])

    return dict(wqkv=wqkv, bqkv=bqkv, wo=st["wo"], wf1=st["wf1"], wf2=st["wf2"],
                vecs=vecs, wfc=wfc, misc=misc)


# ----------------------------- forward pass -----------------------------------
def srl_forward(params, input_ids, features, attention_mask):
    # TODO(synk): bert_mask_wrapper strips special tokens in the original repo;
    # here mask == attention_mask (assumed to be a contiguous valid prefix).
    mask = attention_mask
    # Synthetic sentence encoder: word embedding + predicate-indicator embedding
    # (gather = glue, not the hot path).
    predicate_ids = features[0]
    x = params["word_emb"][input_ids] + params["pred_emb"][predicate_ids]     # (B, S, H)

    w = _prepare_weights(params)
    maskf = mask.astype(jnp.float32).reshape(B, 1, S)
    lengths = jnp.sum(mask, axis=1).astype(jnp.int32)                         # (B,)

    # Grid policy: single grid step over the whole batch on 1-TC chips
    # (v5e / v6e); one batch element per grid step on 2-TC chips (v7x).
    cores = _cores_per_chip()
    bb = B // cores if (cores > 1 and B % cores == 0) else B
    grid = (B // bb,)

    weights = [w["wqkv"], w["bqkv"], w["wo"], w["wf1"], w["wf2"],
               w["vecs"], w["wfc"], w["misc"]]

    # advisory cost estimate (this kernel is latency-bound at toy sizes)
    flops = B * (NUM_LAYERS * (8 * S * H * H + 4 * S * S * H + 4 * S * H * FF)
                 + 2 * S * H * OUT_W + 4 * (S - 1) * L * L)
    bytes_accessed = int(sum(int(np.prod(a.shape)) * 4 for a in [x, maskf] + weights)
                         + B * 4 + 2 * B * S * OUT_W * 4 + B * OUT_W * 4)
    cost = pl.CostEstimate(
        flops=flops,
        transcendentals=B * NUM_LAYERS * (NH * S * (S + 1) + 2 * S),
        bytes_accessed=bytes_accessed)

    logits_pad, pred_pad, score_pad = pl.pallas_call(
        make_kernel(bb),
        out_shape=(jax.ShapeDtypeStruct((B, S, OUT_W), jnp.float32),
                   jax.ShapeDtypeStruct((B, 1, OUT_W), jnp.int32),
                   jax.ShapeDtypeStruct((B, 1, OUT_W), jnp.float32)),
        grid_spec=pltpu.PrefetchScalarGridSpec(
            num_scalar_prefetch=1,                          # lengths -> SMEM
            grid=grid,
            in_specs=[pl.BlockSpec((bb, S, H), lambda g, lens: (g, 0, 0)),
                      pl.BlockSpec((bb, 1, S), lambda g, lens: (g, 0, 0))]
                     + [_resident_spec(a) for a in weights],
            out_specs=(pl.BlockSpec((bb, S, OUT_W), lambda g, lens: (g, 0, 0)),
                       pl.BlockSpec((bb, 1, OUT_W), lambda g, lens: (g, 0, 0)),
                       pl.BlockSpec((bb, 1, OUT_W), lambda g, lens: (g, 0, 0)))),
        compiler_params=pltpu.CompilerParams(dimension_semantics=("parallel",)),
        cost_estimate=cost,
    )(lengths, x, maskf, *weights)

    logits = logits_pad[:, :, :L]
    pred = pred_pad[:, 0, :S]
    scores = score_pad[:, 0, 0]
    return pred, logits, scores


# ----------------------------- parameter init ---------------------------------
def init_params(key):
    keys = jax.random.split(key, 40)
    it = iter(keys)

    def nrm(shape, scale=0.05):
        return jax.random.normal(next(it), shape, dtype=jnp.float32) * scale

    stacked = {
        "wq": nrm((NUM_LAYERS, NH, H, HD)),
        "wk": nrm((NUM_LAYERS, NH, H, HD)),
        "wv": nrm((NUM_LAYERS, NH, H, HD)),
        "bq": nrm((NUM_LAYERS, NH, 1, HD), 0.01),
        "bk": nrm((NUM_LAYERS, NH, 1, HD), 0.01),
        "bv": nrm((NUM_LAYERS, NH, 1, HD), 0.01),
        "wo": nrm((NUM_LAYERS, H, H)),
        "bo": nrm((NUM_LAYERS, H), 0.01),
        "g1": jnp.ones((NUM_LAYERS, H), jnp.float32),
        "be1": jnp.zeros((NUM_LAYERS, H), jnp.float32),
        "wf1": nrm((NUM_LAYERS, H, FF)),
        "bf1": nrm((NUM_LAYERS, FF), 0.01),
        "wf2": nrm((NUM_LAYERS, FF, H)),
        "bf2": nrm((NUM_LAYERS, H), 0.01),
        "g2": jnp.ones((NUM_LAYERS, H), jnp.float32),
        "be2": jnp.zeros((NUM_LAYERS, H), jnp.float32),
    }
    params = {
        "word_emb": nrm((VOCAB, H), 0.1),
        "pred_emb": nrm((2, H), 0.1),
        "stacked": stacked,
        "w_fc": nrm((H, L)),
        "b_fc": nrm((L,), 0.01),
        "trans_m": nrm((L, L), 0.1),
        "start_scores": nrm((L,), 0.1),
        "end_scores": nrm((L,), 0.1),
    }
    return params


# ----------------------------- main --------------------------------------------
if __name__ == "__main__":
    key = jax.random.PRNGKey(0)
    pkey, dkey = jax.random.split(key)
    params = init_params(pkey)

    input_ids = jax.random.randint(dkey, (B, S), 0, VOCAB, dtype=jnp.int32)
    # predicate-indicator feature (1 at the predicate position)
    predicate_ids = (jax.lax.broadcasted_iota(jnp.int32, (B, S), 1) == 2).astype(jnp.int32)
    # example lengths: batch 0 full, batch 1 has 5 valid tokens
    lengths = jnp.array([S, 5], dtype=jnp.int32)
    attention_mask = (jax.lax.broadcasted_iota(jnp.int32, (B, S), 1)
                      < lengths[:, None]).astype(jnp.int32)

    fwd = jax.jit(srl_forward)
    pred, logits, scores = fwd(params, input_ids, (predicate_ids,), attention_mask)
    jax.block_until_ready((pred, logits, scores))

    assert pred.shape == (B, S) and logits.shape == (B, S, L) and scores.shape == (B,)
    print("KERNEL_OK")
</pallas_src>

<mosaic_0001>
module attributes {stable_mosaic.version = 11 : i64} {
  func.func @kernel(%arg0: i32, %arg1: memref<2xi32, #tpu.memory_space<smem>>, %arg2: memref<2x8x32xf32, #tpu.memory_space<vmem>>, %arg3: memref<2x1x8xf32, #tpu.memory_space<vmem>>, %arg4: memref<24x32x8xf32, #tpu.memory_space<vmem>>, %arg5: memref<24x1x8xf32, #tpu.memory_space<vmem>>, %arg6: memref<2x32x32xf32, #tpu.memory_space<vmem>>, %arg7: memref<2x32x64xf32, #tpu.memory_space<vmem>>, %arg8: memref<2x64x32xf32, #tpu.memory_space<vmem>>, %arg9: memref<2x8x128xf32, #tpu.memory_space<vmem>>, %arg10: memref<32x128xf32, #tpu.memory_space<vmem>>, %arg11: memref<24x128xf32, #tpu.memory_space<vmem>>, %arg12: memref<2x8x128xf32, #tpu.memory_space<vmem>>, %arg13: memref<2x1x128xi32, #tpu.memory_space<vmem>>, %arg14: memref<2x1x128xf32, #tpu.memory_space<vmem>>) attributes {dimension_semantics = [#tpu.dimension_semantics<parallel>], iteration_bounds = array<i64: 1>, scalar_prefetch = 1 : i64, scratch_operands = 0 : i64, tpu.core_type = #tpu.core_type<tc>, window_params = [{transform_indices = @transform_0, window_bounds = array<i64: 2, 8, 32>}, {transform_indices = @transform_1, window_bounds = array<i64: 2, 1, 8>}, {pipeline_mode = #tpu.pipeline_mode<synchronous>, transform_indices = @transform_2, window_bounds = array<i64: 24, 32, 8>}, {pipeline_mode = #tpu.pipeline_mode<synchronous>, transform_indices = @transform_3, window_bounds = array<i64: 24, 1, 8>}, {pipeline_mode = #tpu.pipeline_mode<synchronous>, transform_indices = @transform_4, window_bounds = array<i64: 2, 32, 32>}, {pipeline_mode = #tpu.pipeline_mode<synchronous>, transform_indices = @transform_5, window_bounds = array<i64: 2, 32, 64>}, {pipeline_mode = #tpu.pipeline_mode<synchronous>, transform_indices = @transform_6, window_bounds = array<i64: 2, 64, 32>}, {pipeline_mode = #tpu.pipeline_mode<synchronous>, transform_indices = @transform_7, window_bounds = array<i64: 2, 8, 128>}, {pipeline_mode = #tpu.pipeline_mode<synchronous>, transform_indices = @transform_8, window_bounds = array<i64: 32, 128>}, {pipeline_mode = #tpu.pipeline_mode<synchronous>, transform_indices = @transform_9, window_bounds = array<i64: 24, 128>}, {transform_indices = @transform_10, window_bounds = array<i64: 2, 8, 128>}, {transform_indices = @transform_11, window_bounds = array<i64: 2, 1, 128>}, {transform_indices = @transform_12, window_bounds = array<i64: 2, 1, 128>}]} {
    %c2_i32 = arith.constant 2 : i32
    %0 = arith.muli %arg0, %c2_i32 : i32
    %c0 = arith.constant 0 : index
    %c0_0 = arith.constant 0 : index
    %c0_1 = arith.constant 0 : index
    %1 = vector.load %arg2[%c0, %c0_0, %c0_1] : memref<2x8x32xf32, #tpu.memory_space<vmem>>, vector<2x8x32xf32>
    %2 = vector.shape_cast %1 : vector<2x8x32xf32> to vector<16x32xf32>
    %c0_2 = arith.constant 0 : index
    %c0_3 = arith.constant 0 : index
    %c0_4 = arith.constant 0 : index
    %3 = vector.load %arg3[%c0_2, %c0_3, %c0_4] : memref<2x1x8xf32, #tpu.memory_space<vmem>>, vector<1x1x8xf32>
    %4 = vector.shape_cast %3 : vector<1x1x8xf32> to vector<1x8xf32>
    %cst = arith.constant 0.000000e+00 : f32
    %5 = vector.broadcast %cst : f32 to vector<1x8xf32>
    %6 = arith.cmpf ogt, %4, %5 : vector<1x8xf32>
    %cst_5 = arith.constant 0.000000e+00 : f32
    %cst_6 = arith.constant -1.000000e+09 : f32
    %7 = vector.broadcast %cst_5 : f32 to vector<1x8xf32>
    %8 = vector.broadcast %cst_6 : f32 to vector<1x8xf32>
    %9 = arith.select %6, %7, %8 : vector<1x8xi1>, vector<1x8xf32>
    %c1 = arith.constant 1 : index
    %c0_7 = arith.constant 0 : index
    %c0_8 = arith.constant 0 : index
    %10 = vector.load %arg3[%c1, %c0_7, %c0_8] : memref<2x1x8xf32, #tpu.memory_space<vmem>>, vector<1x1x8xf32>
    %11 = vector.shape_cast %10 : vector<1x1x8xf32> to vector<1x8xf32>
    %cst_9 = arith.constant 0.000000e+00 : f32
    %12 = vector.broadcast %cst_9 : f32 to vector<1x8xf32>
    %13 = arith.cmpf ogt, %11, %12 : vector<1x8xf32>
    %cst_10 = arith.constant 0.000000e+00 : f32
    %cst_11 = arith.constant -1.000000e+09 : f32
    %14 = vector.broadcast %cst_10 : f32 to vector<1x8xf32>
    %15 = vector.broadcast %cst_11 : f32 to vector<1x8xf32>
    %16 = arith.select %13, %14, %15 : vector<1x8xi1>, vector<1x8xf32>
    %c0_12 = arith.constant 0 : index
    %c0_13 = arith.constant 0 : index
    %c0_14 = arith.constant 0 : index
    %17 = vector.load %arg4[%c0_12, %c0_13, %c0_14] : memref<24x32x8xf32, #tpu.memory_space<vmem>>, vector<1x32x8xf32>
    %18 = vector.shape_cast %17 : vector<1x32x8xf32> to vector<32x8xf32>
    %c4 = arith.constant 4 : index
    %c0_15 = arith.constant 0 : index
    %c0_16 = arith.constant 0 : index
    %19 = vector.load %arg4[%c4, %c0_15, %c0_16] : memref<24x32x8xf32, #tpu.memory_space<vmem>>, vector<1x32x8xf32>
    %20 = vector.shape_cast %19 : vector<1x32x8xf32> to vector<32x8xf32>
    %c8 = arith.constant 8 : index
    %c0_17 = arith.constant 0 : index
    %c0_18 = arith.constant 0 : index
    %21 = vector.load %arg4[%c8, %c0_17, %c0_18] : memref<24x32x8xf32, #tpu.memory_space<vmem>>, vector<1x32x8xf32>
    %22 = vector.shape_cast %21 : vector<1x32x8xf32> to vector<32x8xf32>
    %cst_19 = arith.constant dense<0.000000e+00> : vector<16x8xf32>
    %23 = tpu.matmul %2, %18, %cst_19 {dimension_numbers = #tpu.dot_dimension_numbers<[1], [0], [0], [1], [0, 0, 1, 1], [], []>} : vector<16x32xf32>, vector<32x8xf32>, vector<16x8xf32> -> vector<16x8xf32>
    %c0_20 = arith.constant 0 : index
    %c0_21 = arith.constant 0 : index
    %c0_22 = arith.constant 0 : index
    %24 = vector.load %arg5[%c0_20, %c0_21, %c0_22] : memref<24x1x8xf32, #tpu.memory_space<vmem>>, vector<1x1x8xf32>
    %25 = vector.shape_cast %24 : vector<1x1x8xf32> to vector<1x8xf32>
    %26 = vector.broadcast %25 : vector<1x8xf32> to vector<16x8xf32>
    %27 = arith.addf %23, %26 : vector<16x8xf32>
    %cst_23 = arith.constant dense<0.000000e+00> : vector<16x8xf32>
    %28 = tpu.matmul %2, %20, %cst_23 {dimension_numbers = #tpu.dot_dimension_numbers<[1], [0], [0], [1], [0, 0, 1, 1], [], []>} : vector<16x32xf32>, vector<32x8xf32>, vector<16x8xf32> -> vector<16x8xf32>
    %c4_24 = arith.constant 4 : index
    %c0_25 = arith.constant 0 : index
    %c0_26 = arith.constant 0 : index
    %29 = vector.load %arg5[%c4_24, %c0_25, %c0_26] : memref<24x1x8xf32, #tpu.memory_space<vmem>>, vector<1x1x8xf32>
    %30 = vector.shape_cast %29 : vector<1x1x8xf32> to vector<1x8xf32>
    %31 = vector.broadcast %30 : vector<1x8xf32> to vector<16x8xf32>
    %32 = arith.addf %28, %31 : vector<16x8xf32>
    %cst_27 = arith.constant dense<0.000000e+00> : vector<16x8xf32>
    %33 = tpu.matmul %2, %22, %cst_27 {dimension_numbers = #tpu.dot_dimension_numbers<[1], [0], [0], [1], [0, 0, 1, 1], [], []>} : vector<16x32xf32>, vector<32x8xf32>, vector<16x8xf32> -> vector<16x8xf32>
    %c8_28 = arith.constant 8 : index
    %c0_29 = arith.constant 0 : index
    %c0_30 = arith.constant 0 : index
    %34 = vector.load %arg5[%c8_28, %c0_29, %c0_30] : memref<24x1x8xf32, #tpu.memory_space<vmem>>, vector<1x1x8xf32>
    %35 = vector.shape_cast %34 : vector<1x1x8xf32> to vector<1x8xf32>
    %36 = vector.broadcast %35 : vector<1x8xf32> to vector<16x8xf32>
    %37 = arith.addf %33, %36 : vector<16x8xf32>
    %38 = vector.extract_strided_slice %27 {offsets = [0, 0], sizes = [8, 8], strides = [1, 1]} : vector<16x8xf32> to vector<8x8xf32>
    %39 = vector.extract_strided_slice %32 {offsets = [0, 0], sizes = [8, 8], strides = [1, 1]} : vector<16x8xf32> to vector<8x8xf32>
    %40 = vector.extract_strided_slice %37 {offsets = [0, 0], sizes = [8, 8], strides = [1, 1]} : vector<16x8xf32> to vector<8x8xf32>
    %cst_31 = arith.constant dense<0.000000e+00> : vector<8x8xf32>
    %41 = tpu.matmul %38, %39, %cst_31 {dimension_numbers = #tpu.dot_dimension_numbers<[1], [1], [0], [0], [0, 0, 1, 0], [], []>} : vector<8x8xf32>, vector<8x8xf32>, vector<8x8xf32> -> vector<8x8xf32>
    %42 = vector.broadcast %9 : vector<1x8xf32> to vector<8x8xf32>
    %43 = arith.addf %41, %42 : vector<8x8xf32>
    %cst_32 = arith.constant dense<0xFF800000> : vector<8xf32>
    %44 = vector.multi_reduction <maximumf>, %43, %cst_32 [1] : vector<8x8xf32> to vector<8xf32>
    %45 = vector.shape_cast %44 : vector<8xf32> to vector<8x1xf32>
    %46 = vector.broadcast %45 : vector<8x1xf32> to vector<8x8xf32>
    %47 = arith.subf %43, %46 : vector<8x8xf32>
    %48 = math.exp %47 : vector<8x8xf32>
    %cst_33 = arith.constant dense<0.000000e+00> : vector<8xf32>
    %49 = vector.multi_reduction <add>, %48, %cst_33 [1] : vector<8x8xf32> to vector<8xf32>
    %50 = vector.shape_cast %49 : vector<8xf32> to vector<8x1xf32>
    %51 = tpu.reciprocal %50 {approx = true} : vector<8x1xf32> -> vector<8x1xf32>
    %52 = vector.broadcast %51 : vector<8x1xf32> to vector<8x8xf32>
    %53 = arith.mulf %48, %52 : vector<8x8xf32>
    %cst_34 = arith.constant dense<0.000000e+00> : vector<8x8xf32>
    %54 = tpu.matmul %53, %40, %cst_34 {dimension_numbers = #tpu.dot_dimension_numbers<[1], [0], [0], [1], [0, 0, 1, 1], [], []>} : vector<8x8xf32>, vector<8x8xf32>, vector<8x8xf32> -> vector<8x8xf32>
    %55 = vector.extract_strided_slice %27 {offsets = [8, 0], sizes = [8, 8], strides = [1, 1]} : vector<16x8xf32> to vector<8x8xf32>
    %56 = vector.extract_strided_slice %32 {offsets = [8, 0], sizes = [8, 8], strides = [1, 1]} : vector<16x8xf32> to vector<8x8xf32>
    %57 = vector.extract_strided_slice %37 {offsets = [8, 0], sizes = [8, 8], strides = [1, 1]} : vector<16x8xf32> to vector<8x8xf32>
    %cst_35 = arith.constant dense<0.000000e+00> : vector<8x8xf32>
    %58 = tpu.matmul %55, %56, %cst_35 {dimension_numbers = #tpu.dot_dimension_numbers<[1], [1], [0], [0], [0, 0, 1, 0], [], []>} : vector<8x8xf32>, vector<8x8xf32>, vector<8x8xf32> -> vector<8x8xf32>
    %59 = vector.broadcast %16 : vector<1x8xf32> to vector<8x8xf32>
    %60 = arith.addf %58, %59 : vector<8x8xf32>
    %cst_36 = arith.constant dense<0xFF800000> : vector<8xf32>
    %61 = vector.multi_reduction <maximumf>, %60, %cst_36 [1] : vector<8x8xf32> to vector<8xf32>
    %62 = vector.shape_cast %61 : vector<8xf32> to vector<8x1xf32>
    %63 = vector.broadcast %62 : vector<8x1xf32> to vector<8x8xf32>
    %64 = arith.subf %60, %63 : vector<8x8xf32>
    %65 = math.exp %64 : vector<8x8xf32>
    %cst_37 = arith.constant dense<0.000000e+00> : vector<8xf32>
    %66 = vector.multi_reduction <add>, %65, %cst_37 [1] : vector<8x8xf32> to vector<8xf32>
    %67 = vector.shape_cast %66 : vector<8xf32> to vector<8x1xf32>
    %68 = tpu.reciprocal %67 {approx = true} : vector<8x1xf32> -> vector<8x1xf32>
    %69 = vector.broadcast %68 : vector<8x1xf32> to vector<8x8xf32>
    %70 = arith.mulf %65, %69 : vector<8x8xf32>
    %cst_38 = arith.constant dense<0.000000e+00> : vector<8x8xf32>
    %71 = tpu.matmul %70, %57, %cst_38 {dimension_numbers = #tpu.dot_dimension_numbers<[1], [0], [0], [1], [0, 0, 1, 1], [], []>} : vector<8x8xf32>, vector<8x8xf32>, vector<8x8xf32> -> vector<8x8xf32>
    %72 = tpu.concatenate %54, %71 in 0 : vector<8x8xf32>, vector<8x8xf32> -> vector<16x8xf32>
    %c0_39 = arith.constant 0 : index
    %c0_40 = arith.constant 0 : index
    %c0_41 = arith.constant 0 : index
    %73 = vector.load %arg6[%c0_39, %c0_40, %c0_41] : memref<2x32x32xf32, #tpu.memory_space<vmem>>, vector<1x8x32xf32>
    %74 = vector.shape_cast %73 : vector<1x8x32xf32> to vector<8x32xf32>
    %cst_42 = arith.constant dense<0.000000e+00> : vector<16x32xf32>
    %75 = tpu.matmul %72, %74, %cst_42 {dimension_numbers = #tpu.dot_dimension_numbers<[1], [0], [0], [1], [0, 0, 1, 1], [], []>} : vector<16x8xf32>, vector<8x32xf32>, vector<16x32xf32> -> vector<16x32xf32>
    %c1_43 = arith.constant 1 : index
    %c0_44 = arith.constant 0 : index
    %c0_45 = arith.constant 0 : index
    %76 = vector.load %arg4[%c1_43, %c0_44, %c0_45] : memref<24x32x8xf32, #tpu.memory_space<vmem>>, vector<1x32x8xf32>
    %77 = vector.shape_cast %76 : vector<1x32x8xf32> to vector<32x8xf32>
    %c5 = arith.constant 5 : index
    %c0_46 = arith.constant 0 : index
    %c0_47 = arith.constant 0 : index
    %78 = vector.load %arg4[%c5, %c0_46, %c0_47] : memref<24x32x8xf32, #tpu.memory_space<vmem>>, vector<1x32x8xf32>
    %79 = vector.shape_cast %78 : vector<1x32x8xf32> to vector<32x8xf32>
    %c9 = arith.constant 9 : index
    %c0_48 = arith.constant 0 : index
    %c0_49 = arith.constant 0 : index
    %80 = vector.load %arg4[%c9, %c0_48, %c0_49] : memref<24x32x8xf32, #tpu.memory_space<vmem>>, vector<1x32x8xf32>
    %81 = vector.shape_cast %80 : vector<1x32x8xf32> to vector<32x8xf32>
    %cst_50 = arith.constant dense<0.000000e+00> : vector<16x8xf32>
    %82 = tpu.matmul %2, %77, %cst_50 {dimension_numbers = #tpu.dot_dimension_numbers<[1], [0], [0], [1], [0, 0, 1, 1], [], []>} : vector<16x32xf32>, vector<32x8xf32>, vector<16x8xf32> -> vector<16x8xf32>
    %c1_51 = arith.constant 1 : index
    %c0_52 = arith.constant 0 : index
    %c0_53 = arith.constant 0 : index
    %83 = vector.load %arg5[%c1_51, %c0_52, %c0_53] : memref<24x1x8xf32, #tpu.memory_space<vmem>>, vector<1x1x8xf32>
    %84 = vector.shape_cast %83 : vector<1x1x8xf32> to vector<1x8xf32>
    %85 = vector.broadcast %84 : vector<1x8xf32> to vector<16x8xf32>
    %86 = arith.addf %82, %85 : vector<16x8xf32>
    %cst_54 = arith.constant dense<0.000000e+00> : vector<16x8xf32>
    %87 = tpu.matmul %2, %79, %cst_54 {dimension_numbers = #tpu.dot_dimension_numbers<[1], [0], [0], [1], [0, 0, 1, 1], [], []>} : vector<16x32xf32>, vector<32x8xf32>, vector<16x8xf32> -> vector<16x8xf32>
    %c5_55 = arith.constant 5 : index
    %c0_56 = arith.constant 0 : index
    %c0_57 = arith.constant 0 : index
    %88 = vector.load %arg5[%c5_55, %c0_56, %c0_57] : memref<24x1x8xf32, #tpu.memory_space<vmem>>, vector<1x1x8xf32>
    %89 = vector.shape_cast %88 : vector<1x1x8xf32> to vector<1x8xf32>
    %90 = vector.broadcast %89 : vector<1x8xf32> to vector<16x8xf32>
    %91 = arith.addf %87, %90 : vector<16x8xf32>
    %cst_58 = arith.constant dense<0.000000e+00> : vector<16x8xf32>
    %92 = tpu.matmul %2, %81, %cst_58 {dimension_numbers = #tpu.dot_dimension_numbers<[1], [0], [0], [1], [0, 0, 1, 1], [], []>} : vector<16x32xf32>, vector<32x8xf32>, vector<16x8xf32> -> vector<16x8xf32>
    %c9_59 = arith.constant 9 : index
    %c0_60 = arith.constant 0 : index
    %c0_61 = arith.constant 0 : index
    %93 = vector.load %arg5[%c9_59, %c0_60, %c0_61] : memref<24x1x8xf32, #tpu.memory_space<vmem>>, vector<1x1x8xf32>
    %94 = vector.shape_cast %93 : vector<1x1x8xf32> to vector<1x8xf32>
    %95 = vector.broadcast %94 : vector<1x8xf32> to vector<16x8xf32>
    %96 = arith.addf %92, %95 : vector<16x8xf32>
    %97 = vector.extract_strided_slice %86 {offsets = [0, 0], sizes = [8, 8], strides = [1, 1]} : vector<16x8xf32> to vector<8x8xf32>
    %98 = vector.extract_strided_slice %91 {offsets = [0, 0], sizes = [8, 8], strides = [1, 1]} : vector<16x8xf32> to vector<8x8xf32>
    %99 = vector.extract_strided_slice %96 {offsets = [0, 0], sizes = [8, 8], strides = [1, 1]} : vector<16x8xf32> to vector<8x8xf32>
    %cst_62 = arith.constant dense<0.000000e+00> : vector<8x8xf32>
    %100 = tpu.matmul %97, %98, %cst_62 {dimension_numbers = #tpu.dot_dimension_numbers<[1], [1], [0], [0], [0, 0, 1, 0], [], []>} : vector<8x8xf32>, vector<8x8xf32>, vector<8x8xf32> -> vector<8x8xf32>
    %101 = vector.broadcast %9 : vector<1x8xf32> to vector<8x8xf32>
    %102 = arith.addf %100, %101 : vector<8x8xf32>
    %cst_63 = arith.constant dense<0xFF800000> : vector<8xf32>
    %103 = vector.multi_reduction <maximumf>, %102, %cst_63 [1] : vector<8x8xf32> to vector<8xf32>
    %104 = vector.shape_cast %103 : vector<8xf32> to vector<8x1xf32>
    %105 = vector.broadcast %104 : vector<8x1xf32> to vector<8x8xf32>
    %106 = arith.subf %102, %105 : vector<8x8xf32>
    %107 = math.exp %106 : vector<8x8xf32>
    %cst_64 = arith.constant dense<0.000000e+00> : vector<8xf32>
    %108 = vector.multi_reduction <add>, %107, %cst_64 [1] : vector<8x8xf32> to vector<8xf32>
    %109 = vector.shape_cast %108 : vector<8xf32> to vector<8x1xf32>
    %110 = tpu.reciprocal %109 {approx = true} : vector<8x1xf32> -> vector<8x1xf32>
    %111 = vector.broadcast %110 : vector<8x1xf32> to vector<8x8xf32>
    %112 = arith.mulf %107, %111 : vector<8x8xf32>
    %cst_65 = arith.constant dense<0.000000e+00> : vector<8x8xf32>
    %113 = tpu.matmul %112, %99, %cst_65 {dimension_numbers = #tpu.dot_dimension_numbers<[1], [0], [0], [1], [0, 0, 1, 1], [], []>} : vector<8x8xf32>, vector<8x8xf32>, vector<8x8xf32> -> vector<8x8xf32>
    %114 = vector.extract_strided_slice %86 {offsets = [8, 0], sizes = [8, 8], strides = [1, 1]} : vector<16x8xf32> to vector<8x8xf32>
    %115 = vector.extract_strided_slice %91 {offsets = [8, 0], sizes = [8, 8], strides = [1, 1]} : vector<16x8xf32> to vector<8x8xf32>
    %116 = vector.extract_strided_slice %96 {offsets = [8, 0], sizes = [8, 8], strides = [1, 1]} : vector<16x8xf32> to vector<8x8xf32>
    %cst_66 = arith.constant dense<0.000000e+00> : vector<8x8xf32>
    %117 = tpu.matmul %114, %115, %cst_66 {dimension_numbers = #tpu.dot_dimension_numbers<[1], [1], [0], [0], [0, 0, 1, 0], [], []>} : vector<8x8xf32>, vector<8x8xf32>, vector<8x8xf32> -> vector<8x8xf32>
    %118 = vector.broadcast %16 : vector<1x8xf32> to vector<8x8xf32>
    %119 = arith.addf %117, %118 : vector<8x8xf32>
    %cst_67 = arith.constant dense<0xFF800000> : vector<8xf32>
    %120 = vector.multi_reduction <maximumf>, %119, %cst_67 [1] : vector<8x8xf32> to vector<8xf32>
    %121 = vector.shape_cast %120 : vector<8xf32> to vector<8x1xf32>
    %122 = vector.broadcast %121 : vector<8x1xf32> to vector<8x8xf32>
    %123 = arith.subf %119, %122 : vector<8x8xf32>
    %124 = math.exp %123 : vector<8x8xf32>
    %cst_68 = arith.constant dense<0.000000e+00> : vector<8xf32>
    %125 = vector.multi_reduction <add>, %124, %cst_68 [1] : vector<8x8xf32> to vector<8xf32>
    %126 = vector.shape_cast %125 : vector<8xf32> to vector<8x1xf32>
    %127 = tpu.reciprocal %126 {approx = true} : vector<8x1xf32> -> vector<8x1xf32>
    %128 = vector.broadcast %127 : vector<8x1xf32> to vector<8x8xf32>
    %129 = arith.mulf %124, %128 : vector<8x8xf32>
    %cst_69 = arith.constant dense<0.000000e+00> : vector<8x8xf32>
    %130 = tpu.matmul %129, %116, %cst_69 {dimension_numbers = #tpu.dot_dimension_numbers<[1], [0], [0], [1], [0, 0, 1, 1], [], []>} : vector<8x8xf32>, vector<8x8xf32>, vector<8x8xf32> -> vector<8x8xf32>
    %131 = tpu.concatenate %113, %130 in 0 : vector<8x8xf32>, vector<8x8xf32> -> vector<16x8xf32>
    %c0_70 = arith.constant 0 : index
    %c8_71 = arith.constant 8 : index
    %c0_72 = arith.constant 0 : index
    %132 = vector.load %arg6[%c0_70, %c8_71, %c0_72] : memref<2x32x32xf32, #tpu.memory_space<vmem>>, vector<1x8x32xf32>
    %133 = vector.shape_cast %132 : vector<1x8x32xf32> to vector<8x32xf32>
    %cst_73 = arith.constant dense<0.000000e+00> : vector<16x32xf32>
    %134 = tpu.matmul %131, %133, %cst_73 {dimension_numbers = #tpu.dot_dimension_numbers<[1], [0], [0], [1], [0, 0, 1, 1], [], []>} : vector<16x8xf32>, vector<8x32xf32>, vector<16x32xf32> -> vector<16x32xf32>
    %135 = arith.addf %75, %134 : vector<16x32xf32>
    %c2 = arith.constant 2 : index
    %c0_74 = arith.constant 0 : index
    %c0_75 = arith.constant 0 : index
    %136 = vector.load %arg4[%c2, %c0_74, %c0_75] : memref<24x32x8xf32, #tpu.memory_space<vmem>>, vector<1x32x8xf32>
    %137 = vector.shape_cast %136 : vector<1x32x8xf32> to vector<32x8xf32>
    %c6 = arith.constant 6 : index
    %c0_76 = arith.constant 0 : index
    %c0_77 = arith.constant 0 : index
    %138 = vector.load %arg4[%c6, %c0_76, %c0_77] : memref<24x32x8xf32, #tpu.memory_space<vmem>>, vector<1x32x8xf32>
    %139 = vector.shape_cast %138 : vector<1x32x8xf32> to vector<32x8xf32>
    %c10 = arith.constant 10 : index
    %c0_78 = arith.constant 0 : index
    %c0_79 = arith.constant 0 : index
    %140 = vector.load %arg4[%c10, %c0_78, %c0_79] : memref<24x32x8xf32, #tpu.memory_space<vmem>>, vector<1x32x8xf32>
    %141 = vector.shape_cast %140 : vector<1x32x8xf32> to vector<32x8xf32>
    %cst_80 = arith.constant dense<0.000000e+00> : vector<16x8xf32>
    %142 = tpu.matmul %2, %137, %cst_80 {dimension_numbers = #tpu.dot_dimension_numbers<[1], [0], [0], [1], [0, 0, 1, 1], [], []>} : vector<16x32xf32>, vector<32x8xf32>, vector<16x8xf32> -> vector<16x8xf32>
    %c2_81 = arith.constant 2 : index
    %c0_82 = arith.constant 0 : index
    %c0_83 = arith.constant 0 : index
    %143 = vector.load %arg5[%c2_81, %c0_82, %c0_83] : memref<24x1x8xf32, #tpu.memory_space<vmem>>, vector<1x1x8xf32>
    %144 = vector.shape_cast %143 : vector<1x1x8xf32> to vector<1x8xf32>
    %145 = vector.broadcast %144 : vector<1x8xf32> to vector<16x8xf32>
    %146 = arith.addf %142, %145 : vector<16x8xf32>
    %cst_84 = arith.constant dense<0.000000e+00> : vector<16x8xf32>
    %147 = tpu.matmul %2, %139, %cst_84 {dimension_numbers = #tpu.dot_dimension_numbers<[1], [0], [0], [1], [0, 0, 1, 1], [], []>} : vector<16x32xf32>, vector<32x8xf32>, vector<16x8xf32> -> vector<16x8xf32>
    %c6_85 = arith.constant 6 : index
    %c0_86 = arith.constant 0 : index
    %c0_87 = arith.constant 0 : index
    %148 = vector.load %arg5[%c6_85, %c0_86, %c0_87] : memref<24x1x8xf32, #tpu.memory_space<vmem>>, vector<1x1x8xf32>
    %149 = vector.shape_cast %148 : vector<1x1x8xf32> to vector<1x8xf32>
    %150 = vector.broadcast %149 : vector<1x8xf32> to vector<16x8xf32>
    %151 = arith.addf %147, %150 : vector<16x8xf32>
    %cst_88 = arith.constant dense<0.000000e+00> : vector<16x8xf32>
    %152 = tpu.matmul %2, %141, %cst_88 {dimension_numbers = #tpu.dot_dimension_numbers<[1], [0], [0], [1], [0, 0, 1, 1], [], []>} : vector<16x32xf32>, vector<32x8xf32>, vector<16x8xf32> -> vector<16x8xf32>
    %c10_89 = arith.constant 10 : index
    %c0_90 = arith.constant 0 : index
    %c0_91 = arith.constant 0 : index
    %153 = vector.load %arg5[%c10_89, %c0_90, %c0_91] : memref<24x1x8xf32, #tpu.memory_space<vmem>>, vector<1x1x8xf32>
    %154 = vector.shape_cast %153 : vector<1x1x8xf32> to vector<1x8xf32>
    %155 = vector.broadcast %154 : vector<1x8xf32> to vector<16x8xf32>
    %156 = arith.addf %152, %155 : vector<16x8xf32>
    %157 = vector.extract_strided_slice %146 {offsets = [0, 0], sizes = [8, 8], strides = [1, 1]} : vector<16x8xf32> to vector<8x8xf32>
    %158 = vector.extract_strided_slice %151 {offsets = [0, 0], sizes = [8, 8], strides = [1, 1]} : vector<16x8xf32> to vector<8x8xf32>
    %159 = vector.extract_strided_slice %156 {offsets = [0, 0], sizes = [8, 8], strides = [1, 1]} : vector<16x8xf32> to vector<8x8xf32>
    %cst_92 = arith.constant dense<0.000000e+00> : vector<8x8xf32>
    %160 = tpu.matmul %157, %158, %cst_92 {dimension_numbers = #tpu.dot_dimension_numbers<[1], [1], [0], [0], [0, 0, 1, 0], [], []>} : vector<8x8xf32>, vector<8x8xf32>, vector<8x8xf32> -> vector<8x8xf32>
    %161 = vector.broadcast %9 : vector<1x8xf32> to vector<8x8xf32>
    %162 = arith.addf %160, %161 : vector<8x8xf32>
    %cst_93 = arith.constant dense<0xFF800000> : vector<8xf32>
    %163 = vector.multi_reduction <maximumf>, %162, %cst_93 [1] : vector<8x8xf32> to vector<8xf32>
    %164 = vector.shape_cast %163 : vector<8xf32> to vector<8x1xf32>
    %165 = vector.broadcast %164 : vector<8x1xf32> to vector<8x8xf32>
    %166 = arith.subf %162, %165 : vector<8x8xf32>
    %167 = math.exp %166 : vector<8x8xf32>
    %cst_94 = arith.constant dense<0.000000e+00> : vector<8xf32>
    %168 = vector.multi_reduction <add>, %167, %cst_94 [1] : vector<8x8xf32> to vector<8xf32>
    %169 = vector.shape_cast %168 : vector<8xf32> to vector<8x1xf32>
    %170 = tpu.reciprocal %169 {approx = true} : vector<8x1xf32> -> vector<8x1xf32>
    %171 = vector.broadcast %170 : vector<8x1xf32> to vector<8x8xf32>
    %172 = arith.mulf %167, %171 : vector<8x8xf32>
    %cst_95 = arith.constant dense<0.000000e+00> : vector<8x8xf32>
    %173 = tpu.matmul %172, %159, %cst_95 {dimension_numbers = #tpu.dot_dimension_numbers<[1], [0], [0], [1], [0, 0, 1, 1], [], []>} : vector<8x8xf32>, vector<8x8xf32>, vector<8x8xf32> -> vector<8x8xf32>
    %174 = vector.extract_strided_slice %146 {offsets = [8, 0], sizes = [8, 8], strides = [1, 1]} : vector<16x8xf32> to vector<8x8xf32>
    %175 = vector.extract_strided_slice %151 {offsets = [8, 0], sizes = [8, 8], strides = [1, 1]} : vector<16x8xf32> to vector<8x8xf32>
    %176 = vector.extract_strided_slice %156 {offsets = [8, 0], sizes = [8, 8], strides = [1, 1]} : vector<16x8xf32> to vector<8x8xf32>
    %cst_96 = arith.constant dense<0.000000e+00> : vector<8x8xf32>
    %177 = tpu.matmul %174, %175, %cst_96 {dimension_numbers = #tpu.dot_dimension_numbers<[1], [1], [0], [0], [0, 0, 1, 0], [], []>} : vector<8x8xf32>, vector<8x8xf32>, vector<8x8xf32> -> vector<8x8xf32>
    %178 = vector.broadcast %16 : vector<1x8xf32> to vector<8x8xf32>
    %179 = arith.addf %177, %178 : vector<8x8xf32>
    %cst_97 = arith.constant dense<0xFF800000> : vector<8xf32>
    %180 = vector.multi_reduction <maximumf>, %179, %cst_97 [1] : vector<8x8xf32> to vector<8xf32>
    %181 = vector.shape_cast %180 : vector<8xf32> to vector<8x1xf32>
    %182 = vector.broadcast %181 : vector<8x1xf32> to vector<8x8xf32>
    %183 = arith.subf %179, %182 : vector<8x8xf32>
    %184 = math.exp %183 : vector<8x8xf32>
    %cst_98 = arith.constant dense<0.000000e+00> : vector<8xf32>
    %185 = vector.multi_reduction <add>, %184, %cst_98 [1] : vector<8x8xf32> to vector<8xf32>
    %186 = vector.shape_cast %185 : vector<8xf32> to vector<8x1xf32>
    %187 = tpu.reciprocal %186 {approx = true} : vector<8x1xf32> -> vector<8x1xf32>
    %188 = vector.broadcast %187 : vector<8x1xf32> to vector<8x8xf32>
    %189 = arith.mulf %184, %188 : vector<8x8xf32>
    %cst_99 = arith.constant dense<0.000000e+00> : vector<8x8xf32>
    %190 = tpu.matmul %189, %176, %cst_99 {dimension_numbers = #tpu.dot_dimension_numbers<[1], [0], [0], [1], [0, 0, 1, 1], [], []>} : vector<8x8xf32>, vector<8x8xf32>, vector<8x8xf32> -> vector<8x8xf32>
    %191 = tpu.concatenate %173, %190 in 0 : vector<8x8xf32>, vector<8x8xf32> -> vector<16x8xf32>
    %c0_100 = arith.constant 0 : index
    %c16 = arith.constant 16 : index
    %c0_101 = arith.constant 0 : index
    %192 = vector.load %arg6[%c0_100, %c16, %c0_101] : memref<2x32x32xf32, #tpu.memory_space<vmem>>, vector<1x8x32xf32>
    %193 = vector.shape_cast %192 : vector<1x8x32xf32> to vector<8x32xf32>
    %cst_102 = arith.constant dense<0.000000e+00> : vector<16x32xf32>
    %194 = tpu.matmul %191, %193, %cst_102 {dimension_numbers = #tpu.dot_dimension_numbers<[1], [0], [0], [1], [0, 0, 1, 1], [], []>} : vector<16x8xf32>, vector<8x32xf32>, vector<16x32xf32> -> vector<16x32xf32>
    %195 = arith.addf %135, %194 : vector<16x32xf32>
    %c3 = arith.constant 3 : index
    %c0_103 = arith.constant 0 : index
    %c0_104 = arith.constant 0 : index
    %196 = vector.load %arg4[%c3, %c0_103, %c0_104] : memref<24x32x8xf32, #tpu.memory_space<vmem>>, vector<1x32x8xf32>
    %197 = vector.shape_cast %196 : vector<1x32x8xf32> to vector<32x8xf32>
    %c7 = arith.constant 7 : index
    %c0_105 = arith.constant 0 : index
    %c0_106 = arith.constant 0 : index
    %198 = vector.load %arg4[%c7, %c0_105, %c0_106] : memref<24x32x8xf32, #tpu.memory_space<vmem>>, vector<1x32x8xf32>
    %199 = vector.shape_cast %198 : vector<1x32x8xf32> to vector<32x8xf32>
    %c11 = arith.constant 11 : index
    %c0_107 = arith.constant 0 : index
    %c0_108 = arith.constant 0 : index
    %200 = vector.load %arg4[%c11, %c0_107, %c0_108] : memref<24x32x8xf32, #tpu.memory_space<vmem>>, vector<1x32x8xf32>
    %201 = vector.shape_cast %200 : vector<1x32x8xf32> to vector<32x8xf32>
    %cst_109 = arith.constant dense<0.000000e+00> : vector<16x8xf32>
    %202 = tpu.matmul %2, %197, %cst_109 {dimension_numbers = #tpu.dot_dimension_numbers<[1], [0], [0], [1], [0, 0, 1, 1], [], []>} : vector<16x32xf32>, vector<32x8xf32>, vector<16x8xf32> -> vector<16x8xf32>
    %c3_110 = arith.constant 3 : index
    %c0_111 = arith.constant 0 : index
    %c0_112 = arith.constant 0 : index
    %203 = vector.load %arg5[%c3_110, %c0_111, %c0_112] : memref<24x1x8xf32, #tpu.memory_space<vmem>>, vector<1x1x8xf32>
    %204 = vector.shape_cast %203 : vector<1x1x8xf32> to vector<1x8xf32>
    %205 = vector.broadcast %204 : vector<1x8xf32> to vector<16x8xf32>
    %206 = arith.addf %202, %205 : vector<16x8xf32>
    %cst_113 = arith.constant dense<0.000000e+00> : vector<16x8xf32>
    %207 = tpu.matmul %2, %199, %cst_113 {dimension_numbers = #tpu.dot_dimension_numbers<[1], [0], [0], [1], [0, 0, 1, 1], [], []>} : vector<16x32xf32>, vector<32x8xf32>, vector<16x8xf32> -> vector<16x8xf32>
    %c7_114 = arith.constant 7 : index
    %c0_115 = arith.constant 0 : index
    %c0_116 = arith.constant 0 : index
    %208 = vector.load %arg5[%c7_114, %c0_115, %c0_116] : memref<24x1x8xf32, #tpu.memory_space<vmem>>, vector<1x1x8xf32>
    %209 = vector.shape_cast %208 : vector<1x1x8xf32> to vector<1x8xf32>
    %210 = vector.broadcast %209 : vector<1x8xf32> to vector<16x8xf32>
    %211 = arith.addf %207, %210 : vector<16x8xf32>
    %cst_117 = arith.constant dense<0.000000e+00> : vector<16x8xf32>
    %212 = tpu.matmul %2, %201, %cst_117 {dimension_numbers = #tpu.dot_dimension_numbers<[1], [0], [0], [1], [0, 0, 1, 1], [], []>} : vector<16x32xf32>, vector<32x8xf32>, vector<16x8xf32> -> vector<16x8xf32>
    %c11_118 = arith.constant 11 : index
    %c0_119 = arith.constant 0 : index
    %c0_120 = arith.constant 0 : index
    %213 = vector.load %arg5[%c11_118, %c0_119, %c0_120] : memref<24x1x8xf32, #tpu.memory_space<vmem>>, vector<1x1x8xf32>
    %214 = vector.shape_cast %213 : vector<1x1x8xf32> to vector<1x8xf32>
    %215 = vector.broadcast %214 : vector<1x8xf32> to vector<16x8xf32>
    %216 = arith.addf %212, %215 : vector<16x8xf32>
    %217 = vector.extract_strided_slice %206 {offsets = [0, 0], sizes = [8, 8], strides = [1, 1]} : vector<16x8xf32> to vector<8x8xf32>
    %218 = vector.extract_strided_slice %211 {offsets = [0, 0], sizes = [8, 8], strides = [1, 1]} : vector<16x8xf32> to vector<8x8xf32>
    %219 = vector.extract_strided_slice %216 {offsets = [0, 0], sizes = [8, 8], strides = [1, 1]} : vector<16x8xf32> to vector<8x8xf32>
    %cst_121 = arith.constant dense<0.000000e+00> : vector<8x8xf32>
    %220 = tpu.matmul %217, %218, %cst_121 {dimension_numbers = #tpu.dot_dimension_numbers<[1], [1], [0], [0], [0, 0, 1, 0], [], []>} : vector<8x8xf32>, vector<8x8xf32>, vector<8x8xf32> -> vector<8x8xf32>
    %221 = vector.broadcast %9 : vector<1x8xf32> to vector<8x8xf32>
    %222 = arith.addf %220, %221 : vector<8x8xf32>
    %cst_122 = arith.constant dense<0xFF800000> : vector<8xf32>
    %223 = vector.multi_reduction <maximumf>, %222, %cst_122 [1] : vector<8x8xf32> to vector<8xf32>
    %224 = vector.shape_cast %223 : vector<8xf32> to vector<8x1xf32>
    %225 = vector.broadcast %224 : vector<8x1xf32> to vector<8x8xf32>
    %226 = arith.subf %222, %225 : vector<8x8xf32>
    %227 = math.exp %226 : vector<8x8xf32>
    %cst_123 = arith.constant dense<0.000000e+00> : vector<8xf32>
    %228 = vector.multi_reduction <add>, %227, %cst_123 [1] : vector<8x8xf32> to vector<8xf32>
    %229 = vector.shape_cast %228 : vector<8xf32> to vector<8x1xf32>
    %230 = tpu.reciprocal %229 {approx = true} : vector<8x1xf32> -> vector<8x1xf32>
    %231 = vector.broadcast %230 : vector<8x1xf32> to vector<8x8xf32>
    %232 = arith.mulf %227, %231 : vector<8x8xf32>
    %cst_124 = arith.constant dense<0.000000e+00> : vector<8x8xf32>
    %233 = tpu.matmul %232, %219, %cst_124 {dimension_numbers = #tpu.dot_dimension_numbers<[1], [0], [0], [1], [0, 0, 1, 1], [], []>} : vector<8x8xf32>, vector<8x8xf32>, vector<8x8xf32> -> vector<8x8xf32>
    %234 = vector.extract_strided_slice %206 {offsets = [8, 0], sizes = [8, 8], strides = [1, 1]} : vector<16x8xf32> to vector<8x8xf32>
    %235 = vector.extract_strided_slice %211 {offsets = [8, 0], sizes = [8, 8], strides = [1, 1]} : vector<16x8xf32> to vector<8x8xf32>
    %236 = vector.extract_strided_slice %216 {offsets = [8, 0], sizes = [8, 8], strides = [1, 1]} : vector<16x8xf32> to vector<8x8xf32>
    %cst_125 = arith.constant dense<0.000000e+00> : vector<8x8xf32>
    %237 = tpu.matmul %234, %235, %cst_125 {dimension_numbers = #tpu.dot_dimension_numbers<[1], [1], [0], [0], [0, 0, 1, 0], [], []>} : vector<8x8xf32>, vector<8x8xf32>, vector<8x8xf32> -> vector<8x8xf32>
    %238 = vector.broadcast %16 : vector<1x8xf32> to vector<8x8xf32>
    %239 = arith.addf %237, %238 : vector<8x8xf32>
    %cst_126 = arith.constant dense<0xFF800000> : vector<8xf32>
    %240 = vector.multi_reduction <maximumf>, %239, %cst_126 [1] : vector<8x8xf32> to vector<8xf32>
    %241 = vector.shape_cast %240 : vector<8xf32> to vector<8x1xf32>
    %242 = vector.broadcast %241 : vector<8x1xf32> to vector<8x8xf32>
    %243 = arith.subf %239, %242 : vector<8x8xf32>
    %244 = math.exp %243 : vector<8x8xf32>
    %cst_127 = arith.constant dense<0.000000e+00> : vector<8xf32>
    %245 = vector.multi_reduction <add>, %244, %cst_127 [1] : vector<8x8xf32> to vector<8xf32>
    %246 = vector.shape_cast %245 : vector<8xf32> to vector<8x1xf32>
    %247 = tpu.reciprocal %246 {approx = true} : vector<8x1xf32> -> vector<8x1xf32>
    %248 = vector.broadcast %247 : vector<8x1xf32> to vector<8x8xf32>
    %249 = arith.mulf %244, %248 : vector<8x8xf32>
    %cst_128 = arith.constant dense<0.000000e+00> : vector<8x8xf32>
    %250 = tpu.matmul %249, %236, %cst_128 {dimension_numbers = #tpu.dot_dimension_numbers<[1], [0], [0], [1], [0, 0, 1, 1], [], []>} : vector<8x8xf32>, vector<8x8xf32>, vector<8x8xf32> -> vector<8x8xf32>
    %251 = tpu.concatenate %233, %250 in 0 : vector<8x8xf32>, vector<8x8xf32> -> vector<16x8xf32>
    %c0_129 = arith.constant 0 : index
    %c24 = arith.constant 24 : index
    %c0_130 = arith.constant 0 : index
    %252 = vector.load %arg6[%c0_129, %c24, %c0_130] : memref<2x32x32xf32, #tpu.memory_space<vmem>>, vector<1x8x32xf32>
    %253 = vector.shape_cast %252 : vector<1x8x32xf32> to vector<8x32xf32>
    %cst_131 = arith.constant dense<0.000000e+00> : vector<16x32xf32>
    %254 = tpu.matmul %251, %253, %cst_131 {dimension_numbers = #tpu.dot_dimension_numbers<[1], [0], [0], [1], [0, 0, 1, 1], [], []>} : vector<16x8xf32>, vector<8x32xf32>, vector<16x32xf32> -> vector<16x32xf32>
    %255 = arith.addf %195, %254 : vector<16x32xf32>
    %c0_132 = arith.constant 0 : index
    %c0_133 = arith.constant 0 : index
    %c0_134 = arith.constant 0 : index
    %256 = vector.load %arg9[%c0_132, %c0_133, %c0_134] : memref<2x8x128xf32, #tpu.memory_space<vmem>>, vector<1x1x32xf32>
    %257 = vector.shape_cast %256 : vector<1x1x32xf32> to vector<1x32xf32>
    %c0_135 = arith.constant 0 : index
    %c1_136 = arith.constant 1 : index
    %c0_137 = arith.constant 0 : index
    %258 = vector.load %arg9[%c0_135, %c1_136, %c0_137] : memref<2x8x128xf32, #tpu.memory_space<vmem>>, vector<1x1x32xf32>
    %259 = vector.shape_cast %258 : vector<1x1x32xf32> to vector<1x32xf32>
    %c0_138 = arith.constant 0 : index
    %c2_139 = arith.constant 2 : index
    %c0_140 = arith.constant 0 : index
    %260 = vector.load %arg9[%c0_138, %c2_139, %c0_140] : memref<2x8x128xf32, #tpu.memory_space<vmem>>, vector<1x1x32xf32>
    %261 = vector.shape_cast %260 : vector<1x1x32xf32> to vector<1x32xf32>
    %c0_141 = arith.constant 0 : index
    %c3_142 = arith.constant 3 : index
    %c0_143 = arith.constant 0 : index
    %262 = vector.load %arg9[%c0_141, %c3_142, %c0_143] : memref<2x8x128xf32, #tpu.memory_space<vmem>>, vector<1x1x64xf32>
    %263 = vector.shape_cast %262 : vector<1x1x64xf32> to vector<1x64xf32>
    %c0_144 = arith.constant 0 : index
    %c4_145 = arith.constant 4 : index
    %c0_146 = arith.constant 0 : index
    %264 = vector.load %arg9[%c0_144, %c4_145, %c0_146] : memref<2x8x128xf32, #tpu.memory_space<vmem>>, vector<1x1x32xf32>
    %265 = vector.shape_cast %264 : vector<1x1x32xf32> to vector<1x32xf32>
    %c0_147 = arith.constant 0 : index
    %c5_148 = arith.constant 5 : index
    %c0_149 = arith.constant 0 : index
    %266 = vector.load %arg9[%c0_147, %c5_148, %c0_149] : memref<2x8x128xf32, #tpu.memory_space<vmem>>, vector<1x1x32xf32>
    %267 = vector.shape_cast %266 : vector<1x1x32xf32> to vector<1x32xf32>
    %c0_150 = arith.constant 0 : index
    %c6_151 = arith.constant 6 : index
    %c0_152 = arith.constant 0 : index
    %268 = vector.load %arg9[%c0_150, %c6_151, %c0_152] : memref<2x8x128xf32, #tpu.memory_space<vmem>>, vector<1x1x32xf32>
    %269 = vector.shape_cast %268 : vector<1x1x32xf32> to vector<1x32xf32>
    %270 = arith.addf %2, %255 : vector<16x32xf32>
    %271 = vector.broadcast %257 : vector<1x32xf32> to vector<16x32xf32>
    %272 = arith.addf %270, %271 : vector<16x32xf32>
    %cst_153 = arith.constant dense<0.000000e+00> : vector<16xf32>
    %273 = vector.multi_reduction <add>, %272, %cst_153 [1] : vector<16x32xf32> to vector<16xf32>
    %274 = vector.shape_cast %273 : vector<16xf32> to vector<16x1xf32>
    %cst_154 = arith.constant 3.200000e+01 : f32
    %275 = vector.broadcast %cst_154 : f32 to vector<16x1xf32>
    %276 = arith.divf %274, %275 : vector<16x1xf32>
    %277 = arith.mulf %272, %272 : vector<16x32xf32>
    %cst_155 = arith.constant dense<0.000000e+00> : vector<16xf32>
    %278 = vector.multi_reduction <add>, %277, %cst_155 [1] : vector<16x32xf32> to vector<16xf32>
    %279 = vector.shape_cast %278 : vector<16xf32> to vector<16x1xf32>
    %cst_156 = arith.constant 3.200000e+01 : f32
    %280 = vector.broadcast %cst_156 : f32 to vector<16x1xf32>
    %281 = arith.divf %279, %280 : vector<16x1xf32>
    %282 = arith.mulf %276, %276 : vector<16x1xf32>
    %283 = arith.subf %281, %282 : vector<16x1xf32>
    %284 = vector.broadcast %276 : vector<16x1xf32> to vector<16x32xf32>
    %285 = arith.subf %272, %284 : vector<16x32xf32>
    %cst_157 = arith.constant 9.99999974E-6 : f32
    %286 = vector.broadcast %cst_157 : f32 to vector<16x1xf32>
    %287 = arith.addf %283, %286 : vector<16x1xf32>
    %288 = math.rsqrt %287 : vector<16x1xf32>
    %289 = vector.broadcast %288 : vector<16x1xf32> to vector<16x32xf32>
    %290 = arith.mulf %285, %289 : vector<16x32xf32>
    %291 = vector.broadcast %259 : vector<1x32xf32> to vector<16x32xf32>
    %292 = arith.mulf %290, %291 : vector<16x32xf32>
    %293 = vector.broadcast %261 : vector<1x32xf32> to vector<16x32xf32>
    %294 = arith.addf %292, %293 : vector<16x32xf32>
    %c0_158 = arith.constant 0 : index
    %c0_159 = arith.constant 0 : index
    %c0_160 = arith.constant 0 : index
    %295 = vector.load %arg7[%c0_158, %c0_159, %c0_160] : memref<2x32x64xf32, #tpu.memory_space<vmem>>, vector<1x32x64xf32>
    %296 = vector.shape_cast %295 : vector<1x32x64xf32> to vector<32x64xf32>
    %cst_161 = arith.constant dense<0.000000e+00> : vector<16x64xf32>
    %297 = tpu.matmul %294, %296, %cst_161 {dimension_numbers = #tpu.dot_dimension_numbers<[1], [0], [0], [1], [0, 0, 1, 1], [], []>} : vector<16x32xf32>, vector<32x64xf32>, vector<16x64xf32> -> vector<16x64xf32>
    %298 = vector.broadcast %263 : vector<1x64xf32> to vector<16x64xf32>
    %299 = arith.addf %297, %298 : vector<16x64xf32>
    %cst_162 = arith.constant 0.000000e+00 : f32
    %300 = vector.broadcast %cst_162 : f32 to vector<16x64xf32>
    %301 = arith.maximumf %299, %300 : vector<16x64xf32>
    %c0_163 = arith.constant 0 : index
    %c0_164 = arith.constant 0 : index
    %c0_165 = arith.constant 0 : index
    %302 = vector.load %arg8[%c0_163, %c0_164, %c0_165] : memref<2x64x32xf32, #tpu.memory_space<vmem>>, vector<1x64x32xf32>
    %303 = vector.shape_cast %302 : vector<1x64x32xf32> to vector<64x32xf32>
    %cst_166 = arith.constant dense<0.000000e+00> : vector<16x32xf32>
    %304 = tpu.matmul %301, %303, %cst_166 {dimension_numbers = #tpu.dot_dimension_numbers<[1], [0], [0], [1], [0, 0, 1, 1], [], []>} : vector<16x64xf32>, vector<64x32xf32>, vector<16x32xf32> -> vector<16x32xf32>
    %305 = vector.broadcast %265 : vector<1x32xf32> to vector<16x32xf32>
    %306 = arith.addf %304, %305 : vector<16x32xf32>
    %307 = arith.addf %294, %306 : vector<16x32xf32>
    %cst_167 = arith.constant dense<0.000000e+00> : vector<16xf32>
    %308 = vector.multi_reduction <add>, %307, %cst_167 [1] : vector<16x32xf32> to vector<16xf32>
    %309 = vector.shape_cast %308 : vector<16xf32> to vector<16x1xf32>
    %cst_168 = arith.constant 3.200000e+01 : f32
    %310 = vector.broadcast %cst_168 : f32 to vector<16x1xf32>
    %311 = arith.divf %309, %310 : vector<16x1xf32>
    %312 = arith.mulf %307, %307 : vector<16x32xf32>
    %cst_169 = arith.constant dense<0.000000e+00> : vector<16xf32>
    %313 = vector.multi_reduction <add>, %312, %cst_169 [1] : vector<16x32xf32> to vector<16xf32>
    %314 = vector.shape_cast %313 : vector<16xf32> to vector<16x1xf32>
    %cst_170 = arith.constant 3.200000e+01 : f32
    %315 = vector.broadcast %cst_170 : f32 to vector<16x1xf32>
    %316 = arith.divf %314, %315 : vector<16x1xf32>
    %317 = arith.mulf %311, %311 : vector<16x1xf32>
    %318 = arith.subf %316, %317 : vector<16x1xf32>
    %319 = vector.broadcast %311 : vector<16x1xf32> to vector<16x32xf32>
    %320 = arith.subf %307, %319 : vector<16x32xf32>
    %cst_171 = arith.constant 9.99999974E-6 : f32
    %321 = vector.broadcast %cst_171 : f32 to vector<16x1xf32>
    %322 = arith.addf %318, %321 : vector<16x1xf32>
    %323 = math.rsqrt %322 : vector<16x1xf32>
    %324 = vector.broadcast %323 : vector<16x1xf32> to vector<16x32xf32>
    %325 = arith.mulf %320, %324 : vector<16x32xf32>
    %326 = vector.broadcast %267 : vector<1x32xf32> to vector<16x32xf32>
    %327 = arith.mulf %325, %326 : vector<16x32xf32>
    %328 = vector.broadcast %269 : vector<1x32xf32> to vector<16x32xf32>
    %329 = arith.addf %327, %328 : vector<16x32xf32>
    %c12 = arith.constant 12 : index
    %c0_172 = arith.constant 0 : index
    %c0_173 = arith.constant 0 : index
    %330 = vector.load %arg4[%c12, %c0_172, %c0_173] : memref<24x32x8xf32, #tpu.memory_space<vmem>>, vector<1x32x8xf32>
    %331 = vector.shape_cast %330 : vector<1x32x8xf32> to vector<32x8xf32>
    %c16_174 = arith.constant 16 : index
    %c0_175 = arith.constant 0 : index
    %c0_176 = arith.constant 0 : index
    %332 = vector.load %arg4[%c16_174, %c0_175, %c0_176] : memref<24x32x8xf32, #tpu.memory_space<vmem>>, vector<1x32x8xf32>
    %333 = vector.shape_cast %332 : vector<1x32x8xf32> to vector<32x8xf32>
    %c20 = arith.constant 20 : index
    %c0_177 = arith.constant 0 : index
    %c0_178 = arith.constant 0 : index
    %334 = vector.load %arg4[%c20, %c0_177, %c0_178] : memref<24x32x8xf32, #tpu.memory_space<vmem>>, vector<1x32x8xf32>
    %335 = vector.shape_cast %334 : vector<1x32x8xf32> to vector<32x8xf32>
    %cst_179 = arith.constant dense<0.000000e+00> : vector<16x8xf32>
    %336 = tpu.matmul %329, %331, %cst_179 {dimension_numbers = #tpu.dot_dimension_numbers<[1], [0], [0], [1], [0, 0, 1, 1], [], []>} : vector<16x32xf32>, vector<32x8xf32>, vector<16x8xf32> -> vector<16x8xf32>
    %c12_180 = arith.constant 12 : index
    %c0_181 = arith.constant 0 : index
    %c0_182 = arith.constant 0 : index
    %337 = vector.load %arg5[%c12_180, %c0_181, %c0_182] : memref<24x1x8xf32, #tpu.memory_space<vmem>>, vector<1x1x8xf32>
    %338 = vector.shape_cast %337 : vector<1x1x8xf32> to vector<1x8xf32>
    %339 = vector.broadcast %338 : vector<1x8xf32> to vector<16x8xf32>
    %340 = arith.addf %336, %339 : vector<16x8xf32>
    %cst_183 = arith.constant dense<0.000000e+00> : vector<16x8xf32>
    %341 = tpu.matmul %329, %333, %cst_183 {dimension_numbers = #tpu.dot_dimension_numbers<[1], [0], [0], [1], [0, 0, 1, 1], [], []>} : vector<16x32xf32>, vector<32x8xf32>, vector<16x8xf32> -> vector<16x8xf32>
    %c16_184 = arith.constant 16 : index
    %c0_185 = arith.constant 0 : index
    %c0_186 = arith.constant 0 : index
    %342 = vector.load %arg5[%c16_184, %c0_185, %c0_186] : memref<24x1x8xf32, #tpu.memory_space<vmem>>, vector<1x1x8xf32>
    %343 = vector.shape_cast %342 : vector<1x1x8xf32> to vector<1x8xf32>
    %344 = vector.broadcast %343 : vector<1x8xf32> to vector<16x8xf32>
    %345 = arith.addf %341, %344 : vector<16x8xf32>
    %cst_187 = arith.constant dense<0.000000e+00> : vector<16x8xf32>
    %346 = tpu.matmul %329, %335, %cst_187 {dimension_numbers = #tpu.dot_dimension_numbers<[1], [0], [0], [1], [0, 0, 1, 1], [], []>} : vector<16x32xf32>, vector<32x8xf32>, vector<16x8xf32> -> vector<16x8xf32>
    %c20_188 = arith.constant 20 : index
    %c0_189 = arith.constant 0 : index
    %c0_190 = arith.constant 0 : index
    %347 = vector.load %arg5[%c20_188, %c0_189, %c0_190] : memref<24x1x8xf32, #tpu.memory_space<vmem>>, vector<1x1x8xf32>
    %348 = vector.shape_cast %347 : vector<1x1x8xf32> to vector<1x8xf32>
    %349 = vector.broadcast %348 : vector<1x8xf32> to vector<16x8xf32>
    %350 = arith.addf %346, %349 : vector<16x8xf32>
    %351 = vector.extract_strided_slice %340 {offsets = [0, 0], sizes = [8, 8], strides = [1, 1]} : vector<16x8xf32> to vector<8x8xf32>
    %352 = vector.extract_strided_slice %345 {offsets = [0, 0], sizes = [8, 8], strides = [1, 1]} : vector<16x8xf32> to vector<8x8xf32>
    %353 = vector.extract_strided_slice %350 {offsets = [0, 0], sizes = [8, 8], strides = [1, 1]} : vector<16x8xf32> to vector<8x8xf32>
    %cst_191 = arith.constant dense<0.000000e+00> : vector<8x8xf32>
    %354 = tpu.matmul %351, %352, %cst_191 {dimension_numbers = #tpu.dot_dimension_numbers<[1], [1], [0], [0], [0, 0, 1, 0], [], []>} : vector<8x8xf32>, vector<8x8xf32>, vector<8x8xf32> -> vector<8x8xf32>
    %355 = vector.broadcast %9 : vector<1x8xf32> to vector<8x8xf32>
    %356 = arith.addf %354, %355 : vector<8x8xf32>
    %cst_192 = arith.constant dense<0xFF800000> : vector<8xf32>
    %357 = vector.multi_reduction <maximumf>, %356, %cst_192 [1] : vector<8x8xf32> to vector<8xf32>
    %358 = vector.shape_cast %357 : vector<8xf32> to vector<8x1xf32>
    %359 = vector.broadcast %358 : vector<8x1xf32> to vector<8x8xf32>
    %360 = arith.subf %356, %359 : vector<8x8xf32>
    %361 = math.exp %360 : vector<8x8xf32>
    %cst_193 = arith.constant dense<0.000000e+00> : vector<8xf32>
    %362 = vector.multi_reduction <add>, %361, %cst_193 [1] : vector<8x8xf32> to vector<8xf32>
    %363 = vector.shape_cast %362 : vector<8xf32> to vector<8x1xf32>
    %364 = tpu.reciprocal %363 {approx = true} : vector<8x1xf32> -> vector<8x1xf32>
    %365 = vector.broadcast %364 : vector<8x1xf32> to vector<8x8xf32>
    %366 = arith.mulf %361, %365 : vector<8x8xf32>
    %cst_194 = arith.constant dense<0.000000e+00> : vector<8x8xf32>
    %367 = tpu.matmul %366, %353, %cst_194 {dimension_numbers = #tpu.dot_dimension_numbers<[1], [0], [0], [1], [0, 0, 1, 1], [], []>} : vector<8x8xf32>, vector<8x8xf32>, vector<8x8xf32> -> vector<8x8xf32>
    %368 = vector.extract_strided_slice %340 {offsets = [8, 0], sizes = [8, 8], strides = [1, 1]} : vector<16x8xf32> to vector<8x8xf32>
    %369 = vector.extract_strided_slice %345 {offsets = [8, 0], sizes = [8, 8], strides = [1, 1]} : vector<16x8xf32> to vector<8x8xf32>
    %370 = vector.extract_strided_slice %350 {offsets = [8, 0], sizes = [8, 8], strides = [1, 1]} : vector<16x8xf32> to vector<8x8xf32>
    %cst_195 = arith.constant dense<0.000000e+00> : vector<8x8xf32>
    %371 = tpu.matmul %368, %369, %cst_195 {dimension_numbers = #tpu.dot_dimension_numbers<[1], [1], [0], [0], [0, 0, 1, 0], [], []>} : vector<8x8xf32>, vector<8x8xf32>, vector<8x8xf32> -> vector<8x8xf32>
    %372 = vector.broadcast %16 : vector<1x8xf32> to vector<8x8xf32>
    %373 = arith.addf %371, %372 : vector<8x8xf32>
    %cst_196 = arith.constant dense<0xFF800000> : vector<8xf32>
    %374 = vector.multi_reduction <maximumf>, %373, %cst_196 [1] : vector<8x8xf32> to vector<8xf32>
    %375 = vector.shape_cast %374 : vector<8xf32> to vector<8x1xf32>
    %376 = vector.broadcast %375 : vector<8x1xf32> to vector<8x8xf32>
    %377 = arith.subf %373, %376 : vector<8x8xf32>
    %378 = math.exp %377 : vector<8x8xf32>
    %cst_197 = arith.constant dense<0.000000e+00> : vector<8xf32>
    %379 = vector.multi_reduction <add>, %378, %cst_197 [1] : vector<8x8xf32> to vector<8xf32>
    %380 = vector.shape_cast %379 : vector<8xf32> to vector<8x1xf32>
    %381 = tpu.reciprocal %380 {approx = true} : vector<8x1xf32> -> vector<8x1xf32>
    %382 = vector.broadcast %381 : vector<8x1xf32> to vector<8x8xf32>
    %383 = arith.mulf %378, %382 : vector<8x8xf32>
    %cst_198 = arith.constant dense<0.000000e+00> : vector<8x8xf32>
    %384 = tpu.matmul %383, %370, %cst_198 {dimension_numbers = #tpu.dot_dimension_numbers<[1], [0], [0], [1], [0, 0, 1, 1], [], []>} : vector<8x8xf32>, vector<8x8xf32>, vector<8x8xf32> -> vector<8x8xf32>
    %385 = tpu.concatenate %367, %384 in 0 : vector<8x8xf32>, vector<8x8xf32> -> vector<16x8xf32>
    %c1_199 = arith.constant 1 : index
    %c0_200 = arith.constant 0 : index
    %c0_201 = arith.constant 0 : index
    %386 = vector.load %arg6[%c1_199, %c0_200, %c0_201] : memref<2x32x32xf32, #tpu.memory_space<vmem>>, vector<1x8x32xf32>
    %387 = vector.shape_cast %386 : vector<1x8x32xf32> to vector<8x32xf32>
    %cst_202 = arith.constant dense<0.000000e+00> : vector<16x32xf32>
    %388 = tpu.matmul %385, %387, %cst_202 {dimension_numbers = #tpu.dot_dimension_numbers<[1], [0], [0], [1], [0, 0, 1, 1], [], []>} : vector<16x8xf32>, vector<8x32xf32>, vector<16x32xf32> -> vector<16x32xf32>
    %c13 = arith.constant 13 : index
    %c0_203 = arith.constant 0 : index
    %c0_204 = arith.constant 0 : index
    %389 = vector.load %arg4[%c13, %c0_203, %c0_204] : memref<24x32x8xf32, #tpu.memory_space<vmem>>, vector<1x32x8xf32>
    %390 = vector.shape_cast %389 : vector<1x32x8xf32> to vector<32x8xf32>
    %c17 = arith.constant 17 : index
    %c0_205 = arith.constant 0 : index
    %c0_206 = arith.constant 0 : index
    %391 = vector.load %arg4[%c17, %c0_205, %c0_206] : memref<24x32x8xf32, #tpu.memory_space<vmem>>, vector<1x32x8xf32>
    %392 = vector.shape_cast %391 : vector<1x32x8xf32> to vector<32x8xf32>
    %c21 = arith.constant 21 : index
    %c0_207 = arith.constant 0 : index
    %c0_208 = arith.constant 0 : index
    %393 = vector.load %arg4[%c21, %c0_207, %c0_208] : memref<24x32x8xf32, #tpu.memory_space<vmem>>, vector<1x32x8xf32>
    %394 = vector.shape_cast %393 : vector<1x32x8xf32> to vector<32x8xf32>
    %cst_209 = arith.constant dense<0.000000e+00> : vector<16x8xf32>
    %395 = tpu.matmul %329, %390, %cst_209 {dimension_numbers = #tpu.dot_dimension_numbers<[1], [0], [0], [1], [0, 0, 1, 1], [], []>} : vector<16x32xf32>, vector<32x8xf32>, vector<16x8xf32> -> vector<16x8xf32>
    %c13_210 = arith.constant 13 : index
    %c0_211 = arith.constant 0 : index
    %c0_212 = arith.constant 0 : index
    %396 = vector.load %arg5[%c13_210, %c0_211, %c0_212] : memref<24x1x8xf32, #tpu.memory_space<vmem>>, vector<1x1x8xf32>
    %397 = vector.shape_cast %396 : vector<1x1x8xf32> to vector<1x8xf32>
    %398 = vector.broadcast %397 : vector<1x8xf32> to vector<16x8xf32>
    %399 = arith.addf %395, %398 : vector<16x8xf32>
    %cst_213 = arith.constant dense<0.000000e+00> : vector<16x8xf32>
    %400 = tpu.matmul %329, %392, %cst_213 {dimension_numbers = #tpu.dot_dimension_numbers<[1], [0], [0], [1], [0, 0, 1, 1], [], []>} : vector<16x32xf32>, vector<32x8xf32>, vector<16x8xf32> -> vector<16x8xf32>
    %c17_214 = arith.constant 17 : index
    %c0_215 = arith.constant 0 : index
    %c0_216 = arith.constant 0 : index
    %401 = vector.load %arg5[%c17_214, %c0_215, %c0_216] : memref<24x1x8xf32, #tpu.memory_space<vmem>>, vector<1x1x8xf32>
    %402 = vector.shape_cast %401 : vector<1x1x8xf32> to vector<1x8xf32>
    %403 = vector.broadcast %402 : vector<1x8xf32> to vector<16x8xf32>
    %404 = arith.addf %400, %403 : vector<16x8xf32>
    %cst_217 = arith.constant dense<0.000000e+00> : vector<16x8xf32>
    %405 = tpu.matmul %329, %394, %cst_217 {dimension_numbers = #tpu.dot_dimension_numbers<[1], [0], [0], [1], [0, 0, 1, 1], [], []>} : vector<16x32xf32>, vector<32x8xf32>, vector<16x8xf32> -> vector<16x8xf32>
    %c21_218 = arith.constant 21 : index
    %c0_219 = arith.constant 0 : index
    %c0_220 = arith.constant 0 : index
    %406 = vector.load %arg5[%c21_218, %c0_219, %c0_220] : memref<24x1x8xf32, #tpu.memory_space<vmem>>, vector<1x1x8xf32>
    %407 = vector.shape_cast %406 : vector<1x1x8xf32> to vector<1x8xf32>
    %408 = vector.broadcast %407 : vector<1x8xf32> to vector<16x8xf32>
    %409 = arith.addf %405, %408 : vector<16x8xf32>
    %410 = vector.extract_strided_slice %399 {offsets = [0, 0], sizes = [8, 8], strides = [1, 1]} : vector<16x8xf32> to vector<8x8xf32>
    %411 = vector.extract_strided_slice %404 {offsets = [0, 0], sizes = [8, 8], strides = [1, 1]} : vector<16x8xf32> to vector<8x8xf32>
    %412 = vector.extract_strided_slice %409 {offsets = [0, 0], sizes = [8, 8], strides = [1, 1]} : vector<16x8xf32> to vector<8x8xf32>
    %cst_221 = arith.constant dense<0.000000e+00> : vector<8x8xf32>
    %413 = tpu.matmul %410, %411, %cst_221 {dimension_numbers = #tpu.dot_dimension_numbers<[1], [1], [0], [0], [0, 0, 1, 0], [], []>} : vector<8x8xf32>, vector<8x8xf32>, vector<8x8xf32> -> vector<8x8xf32>
    %414 = vector.broadcast %9 : vector<1x8xf32> to vector<8x8xf32>
    %415 = arith.addf %413, %414 : vector<8x8xf32>
    %cst_222 = arith.constant dense<0xFF800000> : vector<8xf32>
    %416 = vector.multi_reduction <maximumf>, %415, %cst_222 [1] : vector<8x8xf32> to vector<8xf32>
    %417 = vector.shape_cast %416 : vector<8xf32> to vector<8x1xf32>
    %418 = vector.broadcast %417 : vector<8x1xf32> to vector<8x8xf32>
    %419 = arith.subf %415, %418 : vector<8x8xf32>
    %420 = math.exp %419 : vector<8x8xf32>
    %cst_223 = arith.constant dense<0.000000e+00> : vector<8xf32>
    %421 = vector.multi_reduction <add>, %420, %cst_223 [1] : vector<8x8xf32> to vector<8xf32>
    %422 = vector.shape_cast %421 : vector<8xf32> to vector<8x1xf32>
    %423 = tpu.reciprocal %422 {approx = true} : vector<8x1xf32> -> vector<8x1xf32>
    %424 = vector.broadcast %423 : vector<8x1xf32> to vector<8x8xf32>
    %425 = arith.mulf %420, %424 : vector<8x8xf32>
    %cst_224 = arith.constant dense<0.000000e+00> : vector<8x8xf32>
    %426 = tpu.matmul %425, %412, %cst_224 {dimension_numbers = #tpu.dot_dimension_numbers<[1], [0], [0], [1], [0, 0, 1, 1], [], []>} : vector<8x8xf32>, vector<8x8xf32>, vector<8x8xf32> -> vector<8x8xf32>
    %427 = vector.extract_strided_slice %399 {offsets = [8, 0], sizes = [8, 8], strides = [1, 1]} : vector<16x8xf32> to vector<8x8xf32>
    %428 = vector.extract_strided_slice %404 {offsets = [8, 0], sizes = [8, 8], strides = [1, 1]} : vector<16x8xf32> to vector<8x8xf32>
    %429 = vector.extract_strided_slice %409 {offsets = [8, 0], sizes = [8, 8], strides = [1, 1]} : vector<16x8xf32> to vector<8x8xf32>
    %cst_225 = arith.constant dense<0.000000e+00> : vector<8x8xf32>
    %430 = tpu.matmul %427, %428, %cst_225 {dimension_numbers = #tpu.dot_dimension_numbers<[1], [1], [0], [0], [0, 0, 1, 0], [], []>} : vector<8x8xf32>, vector<8x8xf32>, vector<8x8xf32> -> vector<8x8xf32>
    %431 = vector.broadcast %16 : vector<1x8xf32> to vector<8x8xf32>
    %432 = arith.addf %430, %431 : vector<8x8xf32>
    %cst_226 = arith.constant dense<0xFF800000> : vector<8xf32>
    %433 = vector.multi_reduction <maximumf>, %432, %cst_226 [1] : vector<8x8xf32> to vector<8xf32>
    %434 = vector.shape_cast %433 : vector<8xf32> to vector<8x1xf32>
    %435 = vector.broadcast %434 : vector<8x1xf32> to vector<8x8xf32>
    %436 = arith.subf %432, %435 : vector<8x8xf32>
    %437 = math.exp %436 : vector<8x8xf32>
    %cst_227 = arith.constant dense<0.000000e+00> : vector<8xf32>
    %438 = vector.multi_reduction <add>, %437, %cst_227 [1] : vector<8x8xf32> to vector<8xf32>
    %439 = vector.shape_cast %438 : vector<8xf32> to vector<8x1xf32>
    %440 = tpu.reciprocal %439 {approx = true} : vector<8x1xf32> -> vector<8x1xf32>
    %441 = vector.broadcast %440 : vector<8x1xf32> to vector<8x8xf32>
    %442 = arith.mulf %437, %441 : vector<8x8xf32>
    %cst_228 = arith.constant dense<0.000000e+00> : vector<8x8xf32>
    %443 = tpu.matmul %442, %429, %cst_228 {dimension_numbers = #tpu.dot_dimension_numbers<[1], [0], [0], [1], [0, 0, 1, 1], [], []>} : vector<8x8xf32>, vector<8x8xf32>, vector<8x8xf32> -> vector<8x8xf32>
    %444 = tpu.concatenate %426, %443 in 0 : vector<8x8xf32>, vector<8x8xf32> -> vector<16x8xf32>
    %c1_229 = arith.constant 1 : index
    %c8_230 = arith.constant 8 : index
    %c0_231 = arith.constant 0 : index
    %445 = vector.load %arg6[%c1_229, %c8_230, %c0_231] : memref<2x32x32xf32, #tpu.memory_space<vmem>>, vector<1x8x32xf32>
    %446 = vector.shape_cast %445 : vector<1x8x32xf32> to vector<8x32xf32>
    %cst_232 = arith.constant dense<0.000000e+00> : vector<16x32xf32>
    %447 = tpu.matmul %444, %446, %cst_232 {dimension_numbers = #tpu.dot_dimension_numbers<[1], [0], [0], [1], [0, 0, 1, 1], [], []>} : vector<16x8xf32>, vector<8x32xf32>, vector<16x32xf32> -> vector<16x32xf32>
    %448 = arith.addf %388, %447 : vector<16x32xf32>
    %c14 = arith.constant 14 : index
    %c0_233 = arith.constant 0 : index
    %c0_234 = arith.constant 0 : index
    %449 = vector.load %arg4[%c14, %c0_233, %c0_234] : memref<24x32x8xf32, #tpu.memory_space<vmem>>, vector<1x32x8xf32>
    %450 = vector.shape_cast %449 : vector<1x32x8xf32> to vector<32x8xf32>
    %c18 = arith.constant 18 : index
    %c0_235 = arith.constant 0 : index
    %c0_236 = arith.constant 0 : index
    %451 = vector.load %arg4[%c18, %c0_235, %c0_236] : memref<24x32x8xf32, #tpu.memory_space<vmem>>, vector<1x32x8xf32>
    %452 = vector.shape_cast %451 : vector<1x32x8xf32> to vector<32x8xf32>
    %c22 = arith.constant 22 : index
    %c0_237 = arith.constant 0 : index
    %c0_238 = arith.constant 0 : index
    %453 = vector.load %arg4[%c22, %c0_237, %c0_238] : memref<24x32x8xf32, #tpu.memory_space<vmem>>, vector<1x32x8xf32>
    %454 = vector.shape_cast %453 : vector<1x32x8xf32> to vector<32x8xf32>
    %cst_239 = arith.constant dense<0.000000e+00> : vector<16x8xf32>
    %455 = tpu.matmul %329, %450, %cst_239 {dimension_numbers = #tpu.dot_dimension_numbers<[1], [0], [0], [1], [0, 0, 1, 1], [], []>} : vector<16x32xf32>, vector<32x8xf32>, vector<16x8xf32> -> vector<16x8xf32>
    %c14_240 = arith.constant 14 : index
    %c0_241 = arith.constant 0 : index
    %c0_242 = arith.constant 0 : index
    %456 = vector.load %arg5[%c14_240, %c0_241, %c0_242] : memref<24x1x8xf32, #tpu.memory_space<vmem>>, vector<1x1x8xf32>
    %457 = vector.shape_cast %456 : vector<1x1x8xf32> to vector<1x8xf32>
    %458 = vector.broadcast %457 : vector<1x8xf32> to vector<16x8xf32>
    %459 = arith.addf %455, %458 : vector<16x8xf32>
    %cst_243 = arith.constant dense<0.000000e+00> : vector<16x8xf32>
    %460 = tpu.matmul %329, %452, %cst_243 {dimension_numbers = #tpu.dot_dimension_numbers<[1], [0], [0], [1], [0, 0, 1, 1], [], []>} : vector<16x32xf32>, vector<32x8xf32>, vector<16x8xf32> -> vector<16x8xf32>
    %c18_244 = arith.constant 18 : index
    %c0_245 = arith.constant 0 : index
    %c0_246 = arith.constant 0 : index
    %461 = vector.load %arg5[%c18_244, %c0_245, %c0_246] : memref<24x1x8xf32, #tpu.memory_space<vmem>>, vector<1x1x8xf32>
    %462 = vector.shape_cast %461 : vector<1x1x8xf32> to vector<1x8xf32>
    %463 = vector.broadcast %462 : vector<1x8xf32> to vector<16x8xf32>
    %464 = arith.addf %460, %463 : vector<16x8xf32>
    %cst_247 = arith.constant dense<0.000000e+00> : vector<16x8xf32>
    %465 = tpu.matmul %329, %454, %cst_247 {dimension_numbers = #tpu.dot_dimension_numbers<[1], [0], [0], [1], [0, 0, 1, 1], [], []>} : vector<16x32xf32>, vector<32x8xf32>, vector<16x8xf32> -> vector<16x8xf32>
    %c22_248 = arith.constant 22 : index
    %c0_249 = arith.constant 0 : index
    %c0_250 = arith.constant 0 : index
    %466 = vector.load %arg5[%c22_248, %c0_249, %c0_250] : memref<24x1x8xf32, #tpu.memory_space<vmem>>, vector<1x1x8xf32>
    %467 = vector.shape_cast %466 : vector<1x1x8xf32> to vector<1x8xf32>
    %468 = vector.broadcast %467 : vector<1x8xf32> to vector<16x8xf32>
    %469 = arith.addf %465, %468 : vector<16x8xf32>
    %470 = vector.extract_strided_slice %459 {offsets = [0, 0], sizes = [8, 8], strides = [1, 1]} : vector<16x8xf32> to vector<8x8xf32>
    %471 = vector.extract_strided_slice %464 {offsets = [0, 0], sizes = [8, 8], strides = [1, 1]} : vector<16x8xf32> to vector<8x8xf32>
    %472 = vector.extract_strided_slice %469 {offsets = [0, 0], sizes = [8, 8], strides = [1, 1]} : vector<16x8xf32> to vector<8x8xf32>
    %cst_251 = arith.constant dense<0.000000e+00> : vector<8x8xf32>
    %473 = tpu.matmul %470, %471, %cst_251 {dimension_numbers = #tpu.dot_dimension_numbers<[1], [1], [0], [0], [0, 0, 1, 0], [], []>} : vector<8x8xf32>, vector<8x8xf32>, vector<8x8xf32> -> vector<8x8xf32>
    %474 = vector.broadcast %9 : vector<1x8xf32> to vector<8x8xf32>
    %475 = arith.addf %473, %474 : vector<8x8xf32>
    %cst_252 = arith.constant dense<0xFF800000> : vector<8xf32>
    %476 = vector.multi_reduction <maximumf>, %475, %cst_252 [1] : vector<8x8xf32> to vector<8xf32>
    %477 = vector.shape_cast %476 : vector<8xf32> to vector<8x1xf32>
    %478 = vector.broadcast %477 : vector<8x1xf32> to vector<8x8xf32>
    %479 = arith.subf %475, %478 : vector<8x8xf32>
    %480 = math.exp %479 : vector<8x8xf32>
    %cst_253 = arith.constant dense<0.000000e+00> : vector<8xf32>
    %481 = vector.multi_reduction <add>, %480, %cst_253 [1] : vector<8x8xf32> to vector<8xf32>
    %482 = vector.shape_cast %481 : vector<8xf32> to vector<8x1xf32>
    %483 = tpu.reciprocal %482 {approx = true} : vector<8x1xf32> -> vector<8x1xf32>
    %484 = vector.broadcast %483 : vector<8x1xf32> to vector<8x8xf32>
    %485 = arith.mulf %480, %484 : vector<8x8xf32>
    %cst_254 = arith.constant dense<0.000000e+00> : vector<8x8xf32>
    %486 = tpu.matmul %485, %472, %cst_254 {dimension_numbers = #tpu.dot_dimension_numbers<[1], [0], [0], [1], [0, 0, 1, 1], [], []>} : vector<8x8xf32>, vector<8x8xf32>, vector<8x8xf32> -> vector<8x8xf32>
    %487 = vector.extract_strided_slice %459 {offsets = [8, 0], sizes = [8, 8], strides = [1, 1]} : vector<16x8xf32> to vector<8x8xf32>
    %488 = vector.extract_strided_slice %464 {offsets = [8, 0], sizes = [8, 8], strides = [1, 1]} : vector<16x8xf32> to vector<8x8xf32>
    %489 = vector.extract_strided_slice %469 {offsets = [8, 0], sizes = [8, 8], strides = [1, 1]} : vector<16x8xf32> to vector<8x8xf32>
    %cst_255 = arith.constant dense<0.000000e+00> : vector<8x8xf32>
    %490 = tpu.matmul %487, %488, %cst_255 {dimension_numbers = #tpu.dot_dimension_numbers<[1], [1], [0], [0], [0, 0, 1, 0], [], []>} : vector<8x8xf32>, vector<8x8xf32>, vector<8x8xf32> -> vector<8x8xf32>
    %491 = vector.broadcast %16 : vector<1x8xf32> to vector<8x8xf32>
    %492 = arith.addf %490, %491 : vector<8x8xf32>
    %cst_256 = arith.constant dense<0xFF800000> : vector<8xf32>
    %493 = vector.multi_reduction <maximumf>, %492, %cst_256 [1] : vector<8x8xf32> to vector<8xf32>
    %494 = vector.shape_cast %493 : vector<8xf32> to vector<8x1xf32>
    %495 = vector.broadcast %494 : vector<8x1xf32> to vector<8x8xf32>
    %496 = arith.subf %492, %495 : vector<8x8xf32>
    %497 = math.exp %496 : vector<8x8xf32>
    %cst_257 = arith.constant dense<0.000000e+00> : vector<8xf32>
    %498 = vector.multi_reduction <add>, %497, %cst_257 [1] : vector<8x8xf32> to vector<8xf32>
    %499 = vector.shape_cast %498 : vector<8xf32> to vector<8x1xf32>
    %500 = tpu.reciprocal %499 {approx = true} : vector<8x1xf32> -> vector<8x1xf32>
    %501 = vector.broadcast %500 : vector<8x1xf32> to vector<8x8xf32>
    %502 = arith.mulf %497, %501 : vector<8x8xf32>
    %cst_258 = arith.constant dense<0.000000e+00> : vector<8x8xf32>
    %503 = tpu.matmul %502, %489, %cst_258 {dimension_numbers = #tpu.dot_dimension_numbers<[1], [0], [0], [1], [0, 0, 1, 1], [], []>} : vector<8x8xf32>, vector<8x8xf32>, vector<8x8xf32> -> vector<8x8xf32>
    %504 = tpu.concatenate %486, %503 in 0 : vector<8x8xf32>, vector<8x8xf32> -> vector<16x8xf32>
    %c1_259 = arith.constant 1 : index
    %c16_260 = arith.constant 16 : index
    %c0_261 = arith.constant 0 : index
    %505 = vector.load %arg6[%c1_259, %c16_260, %c0_261] : memref<2x32x32xf32, #tpu.memory_space<vmem>>, vector<1x8x32xf32>
    %506 = vector.shape_cast %505 : vector<1x8x32xf32> to vector<8x32xf32>
    %cst_262 = arith.constant dense<0.000000e+00> : vector<16x32xf32>
    %507 = tpu.matmul %504, %506, %cst_262 {dimension_numbers = #tpu.dot_dimension_numbers<[1], [0], [0], [1], [0, 0, 1, 1], [], []>} : vector<16x8xf32>, vector<8x32xf32>, vector<16x32xf32> -> vector<16x32xf32>
    %508 = arith.addf %448, %507 : vector<16x32xf32>
    %c15 = arith.constant 15 : index
    %c0_263 = arith.constant 0 : index
    %c0_264 = arith.constant 0 : index
    %509 = vector.load %arg4[%c15, %c0_263, %c0_264] : memref<24x32x8xf32, #tpu.memory_space<vmem>>, vector<1x32x8xf32>
    %510 = vector.shape_cast %509 : vector<1x32x8xf32> to vector<32x8xf32>
    %c19 = arith.constant 19 : index
    %c0_265 = arith.constant 0 : index
    %c0_266 = arith.constant 0 : index
    %511 = vector.load %arg4[%c19, %c0_265, %c0_266] : memref<24x32x8xf32, #tpu.memory_space<vmem>>, vector<1x32x8xf32>
    %512 = vector.shape_cast %511 : vector<1x32x8xf32> to vector<32x8xf32>
    %c23 = arith.constant 23 : index
    %c0_267 = arith.constant 0 : index
    %c0_268 = arith.constant 0 : index
    %513 = vector.load %arg4[%c23, %c0_267, %c0_268] : memref<24x32x8xf32, #tpu.memory_space<vmem>>, vector<1x32x8xf32>
    %514 = vector.shape_cast %513 : vector<1x32x8xf32> to vector<32x8xf32>
    %cst_269 = arith.constant dense<0.000000e+00> : vector<16x8xf32>
    %515 = tpu.matmul %329, %510, %cst_269 {dimension_numbers = #tpu.dot_dimension_numbers<[1], [0], [0], [1], [0, 0, 1, 1], [], []>} : vector<16x32xf32>, vector<32x8xf32>, vector<16x8xf32> -> vector<16x8xf32>
    %c15_270 = arith.constant 15 : index
    %c0_271 = arith.constant 0 : index
    %c0_272 = arith.constant 0 : index
    %516 = vector.load %arg5[%c15_270, %c0_271, %c0_272] : memref<24x1x8xf32, #tpu.memory_space<vmem>>, vector<1x1x8xf32>
    %517 = vector.shape_cast %516 : vector<1x1x8xf32> to vector<1x8xf32>
    %518 = vector.broadcast %517 : vector<1x8xf32> to vector<16x8xf32>
    %519 = arith.addf %515, %518 : vector<16x8xf32>
    %cst_273 = arith.constant dense<0.000000e+00> : vector<16x8xf32>
    %520 = tpu.matmul %329, %512, %cst_273 {dimension_numbers = #tpu.dot_dimension_numbers<[1], [0], [0], [1], [0, 0, 1, 1], [], []>} : vector<16x32xf32>, vector<32x8xf32>, vector<16x8xf32> -> vector<16x8xf32>
    %c19_274 = arith.constant 19 : index
    %c0_275 = arith.constant 0 : index
    %c0_276 = arith.constant 0 : index
    %521 = vector.load %arg5[%c19_274, %c0_275, %c0_276] : memref<24x1x8xf32, #tpu.memory_space<vmem>>, vector<1x1x8xf32>
    %522 = vector.shape_cast %521 : vector<1x1x8xf32> to vector<1x8xf32>
    %523 = vector.broadcast %522 : vector<1x8xf32> to vector<16x8xf32>
    %524 = arith.addf %520, %523 : vector<16x8xf32>
    %cst_277 = arith.constant dense<0.000000e+00> : vector<16x8xf32>
    %525 = tpu.matmul %329, %514, %cst_277 {dimension_numbers = #tpu.dot_dimension_numbers<[1], [0], [0], [1], [0, 0, 1, 1], [], []>} : vector<16x32xf32>, vector<32x8xf32>, vector<16x8xf32> -> vector<16x8xf32>
    %c23_278 = arith.constant 23 : index
    %c0_279 = arith.constant 0 : index
    %c0_280 = arith.constant 0 : index
    %526 = vector.load %arg5[%c23_278, %c0_279, %c0_280] : memref<24x1x8xf32, #tpu.memory_space<vmem>>, vector<1x1x8xf32>
    %527 = vector.shape_cast %526 : vector<1x1x8xf32> to vector<1x8xf32>
    %528 = vector.broadcast %527 : vector<1x8xf32> to vector<16x8xf32>
    %529 = arith.addf %525, %528 : vector<16x8xf32>
    %530 = vector.extract_strided_slice %519 {offsets = [0, 0], sizes = [8, 8], strides = [1, 1]} : vector<16x8xf32> to vector<8x8xf32>
    %531 = vector.extract_strided_slice %524 {offsets = [0, 0], sizes = [8, 8], strides = [1, 1]} : vector<16x8xf32> to vector<8x8xf32>
    %532 = vector.extract_strided_slice %529 {offsets = [0, 0], sizes = [8, 8], strides = [1, 1]} : vector<16x8xf32> to vector<8x8xf32>
    %cst_281 = arith.constant dense<0.000000e+00> : vector<8x8xf32>
    %533 = tpu.matmul %530, %531, %cst_281 {dimension_numbers = #tpu.dot_dimension_numbers<[1], [1], [0], [0], [0, 0, 1, 0], [], []>} : vector<8x8xf32>, vector<8x8xf32>, vector<8x8xf32> -> vector<8x8xf32>
    %534 = vector.broadcast %9 : vector<1x8xf32> to vector<8x8xf32>
    %535 = arith.addf %533, %534 : vector<8x8xf32>
    %cst_282 = arith.constant dense<0xFF800000> : vector<8xf32>
    %536 = vector.multi_reduction <maximumf>, %535, %cst_282 [1] : vector<8x8xf32> to vector<8xf32>
    %537 = vector.shape_cast %536 : vector<8xf32> to vector<8x1xf32>
    %538 = vector.broadcast %537 : vector<8x1xf32> to vector<8x8xf32>
    %539 = arith.subf %535, %538 : vector<8x8xf32>
    %540 = math.exp %539 : vector<8x8xf32>
    %cst_283 = arith.constant dense<0.000000e+00> : vector<8xf32>
    %541 = vector.multi_reduction <add>, %540, %cst_283 [1] : vector<8x8xf32> to vector<8xf32>
    %542 = vector.shape_cast %541 : vector<8xf32> to vector<8x1xf32>
    %543 = tpu.reciprocal %542 {approx = true} : vector<8x1xf32> -> vector<8x1xf32>
    %544 = vector.broadcast %543 : vector<8x1xf32> to vector<8x8xf32>
    %545 = arith.mulf %540, %544 : vector<8x8xf32>
    %cst_284 = arith.constant dense<0.000000e+00> : vector<8x8xf32>
    %546 = tpu.matmul %545, %532, %cst_284 {dimension_numbers = #tpu.dot_dimension_numbers<[1], [0], [0], [1], [0, 0, 1, 1], [], []>} : vector<8x8xf32>, vector<8x8xf32>, vector<8x8xf32> -> vector<8x8xf32>
    %547 = vector.extract_strided_slice %519 {offsets = [8, 0], sizes = [8, 8], strides = [1, 1]} : vector<16x8xf32> to vector<8x8xf32>
    %548 = vector.extract_strided_slice %524 {offsets = [8, 0], sizes = [8, 8], strides = [1, 1]} : vector<16x8xf32> to vector<8x8xf32>
    %549 = vector.extract_strided_slice %529 {offsets = [8, 0], sizes = [8, 8], strides = [1, 1]} : vector<16x8xf32> to vector<8x8xf32>
    %cst_285 = arith.constant dense<0.000000e+00> : vector<8x8xf32>
    %550 = tpu.matmul %547, %548, %cst_285 {dimension_numbers = #tpu.dot_dimension_numbers<[1], [1], [0], [0], [0, 0, 1, 0], [], []>} : vector<8x8xf32>, vector<8x8xf32>, vector<8x8xf32> -> vector<8x8xf32>
    %551 = vector.broadcast %16 : vector<1x8xf32> to vector<8x8xf32>
    %552 = arith.addf %550, %551 : vector<8x8xf32>
    %cst_286 = arith.constant dense<0xFF800000> : vector<8xf32>
    %553 = vector.multi_reduction <maximumf>, %552, %cst_286 [1] : vector<8x8xf32> to vector<8xf32>
    %554 = vector.shape_cast %553 : vector<8xf32> to vector<8x1xf32>
    %555 = vector.broadcast %554 : vector<8x1xf32> to vector<8x8xf32>
    %556 = arith.subf %552, %555 : vector<8x8xf32>
    %557 = math.exp %556 : vector<8x8xf32>
    %cst_287 = arith.constant dense<0.000000e+00> : vector<8xf32>
    %558 = vector.multi_reduction <add>, %557, %cst_287 [1] : vector<8x8xf32> to vector<8xf32>
    %559 = vector.shape_cast %558 : vector<8xf32> to vector<8x1xf32>
    %560 = tpu.reciprocal %559 {approx = true} : vector<8x1xf32> -> vector<8x1xf32>
    %561 = vector.broadcast %560 : vector<8x1xf32> to vector<8x8xf32>
    %562 = arith.mulf %557, %561 : vector<8x8xf32>
    %cst_288 = arith.constant dense<0.000000e+00> : vector<8x8xf32>
    %563 = tpu.matmul %562, %549, %cst_288 {dimension_numbers = #tpu.dot_dimension_numbers<[1], [0], [0], [1], [0, 0, 1, 1], [], []>} : vector<8x8xf32>, vector<8x8xf32>, vector<8x8xf32> -> vector<8x8xf32>
    %564 = tpu.concatenate %546, %563 in 0 : vector<8x8xf32>, vector<8x8xf32> -> vector<16x8xf32>
    %c1_289 = arith.constant 1 : index
    %c24_290 = arith.constant 24 : index
    %c0_291 = arith.constant 0 : index
    %565 = vector.load %arg6[%c1_289, %c24_290, %c0_291] : memref<2x32x32xf32, #tpu.memory_space<vmem>>, vector<1x8x32xf32>
    %566 = vector.shape_cast %565 : vector<1x8x32xf32> to vector<8x32xf32>
    %cst_292 = arith.constant dense<0.000000e+00> : vector<16x32xf32>
    %567 = tpu.matmul %564, %566, %cst_292 {dimension_numbers = #tpu.dot_dimension_numbers<[1], [0], [0], [1], [0, 0, 1, 1], [], []>} : vector<16x8xf32>, vector<8x32xf32>, vector<16x32xf32> -> vector<16x32xf32>
    %568 = arith.addf %508, %567 : vector<16x32xf32>
    %c1_293 = arith.constant 1 : index
    %c0_294 = arith.constant 0 : index
    %c0_295 = arith.constant 0 : index
    %569 = vector.load %arg9[%c1_293, %c0_294, %c0_295] : memref<2x8x128xf32, #tpu.memory_space<vmem>>, vector<1x1x32xf32>
    %570 = vector.shape_cast %569 : vector<1x1x32xf32> to vector<1x32xf32>
    %c1_296 = arith.constant 1 : index
    %c1_297 = arith.constant 1 : index
    %c0_298 = arith.constant 0 : index
    %571 = vector.load %arg9[%c1_296, %c1_297, %c0_298] : memref<2x8x128xf32, #tpu.memory_space<vmem>>, vector<1x1x32xf32>
    %572 = vector.shape_cast %571 : vector<1x1x32xf32> to vector<1x32xf32>
    %c1_299 = arith.constant 1 : index
    %c2_300 = arith.constant 2 : index
    %c0_301 = arith.constant 0 : index
    %573 = vector.load %arg9[%c1_299, %c2_300, %c0_301] : memref<2x8x128xf32, #tpu.memory_space<vmem>>, vector<1x1x32xf32>
    %574 = vector.shape_cast %573 : vector<1x1x32xf32> to vector<1x32xf32>
    %c1_302 = arith.constant 1 : index
    %c3_303 = arith.constant 3 : index
    %c0_304 = arith.constant 0 : index
    %575 = vector.load %arg9[%c1_302, %c3_303, %c0_304] : memref<2x8x128xf32, #tpu.memory_space<vmem>>, vector<1x1x64xf32>
    %576 = vector.shape_cast %575 : vector<1x1x64xf32> to vector<1x64xf32>
    %c1_305 = arith.constant 1 : index
    %c4_306 = arith.constant 4 : index
    %c0_307 = arith.constant 0 : index
    %577 = vector.load %arg9[%c1_305, %c4_306, %c0_307] : memref<2x8x128xf32, #tpu.memory_space<vmem>>, vector<1x1x32xf32>
    %578 = vector.shape_cast %577 : vector<1x1x32xf32> to vector<1x32xf32>
    %c1_308 = arith.constant 1 : index
    %c5_309 = arith.constant 5 : index
    %c0_310 = arith.constant 0 : index
    %579 = vector.load %arg9[%c1_308, %c5_309, %c0_310] : memref<2x8x128xf32, #tpu.memory_space<vmem>>, vector<1x1x32xf32>
    %580 = vector.shape_cast %579 : vector<1x1x32xf32> to vector<1x32xf32>
    %c1_311 = arith.constant 1 : index
    %c6_312 = arith.constant 6 : index
    %c0_313 = arith.constant 0 : index
    %581 = vector.load %arg9[%c1_311, %c6_312, %c0_313] : memref<2x8x128xf32, #tpu.memory_space<vmem>>, vector<1x1x32xf32>
    %582 = vector.shape_cast %581 : vector<1x1x32xf32> to vector<1x32xf32>
    %583 = arith.addf %329, %568 : vector<16x32xf32>
    %584 = vector.broadcast %570 : vector<1x32xf32> to vector<16x32xf32>
    %585 = arith.addf %583, %584 : vector<16x32xf32>
    %cst_314 = arith.constant dense<0.000000e+00> : vector<16xf32>
    %586 = vector.multi_reduction <add>, %585, %cst_314 [1] : vector<16x32xf32> to vector<16xf32>
    %587 = vector.shape_cast %586 : vector<16xf32> to vector<16x1xf32>
    %cst_315 = arith.constant 3.200000e+01 : f32
    %588 = vector.broadcast %cst_315 : f32 to vector<16x1xf32>
    %589 = arith.divf %587, %588 : vector<16x1xf32>
    %590 = arith.mulf %585, %585 : vector<16x32xf32>
    %cst_316 = arith.constant dense<0.000000e+00> : vector<16xf32>
    %591 = vector.multi_reduction <add>, %590, %cst_316 [1] : vector<16x32xf32> to vector<16xf32>
    %592 = vector.shape_cast %591 : vector<16xf32> to vector<16x1xf32>
    %cst_317 = arith.constant 3.200000e+01 : f32
    %593 = vector.broadcast %cst_317 : f32 to vector<16x1xf32>
    %594 = arith.divf %592, %593 : vector<16x1xf32>
    %595 = arith.mulf %589, %589 : vector<16x1xf32>
    %596 = arith.subf %594, %595 : vector<16x1xf32>
    %597 = vector.broadcast %589 : vector<16x1xf32> to vector<16x32xf32>
    %598 = arith.subf %585, %597 : vector<16x32xf32>
    %cst_318 = arith.constant 9.99999974E-6 : f32
    %599 = vector.broadcast %cst_318 : f32 to vector<16x1xf32>
    %600 = arith.addf %596, %599 : vector<16x1xf32>
    %601 = math.rsqrt %600 : vector<16x1xf32>
    %602 = vector.broadcast %601 : vector<16x1xf32> to vector<16x32xf32>
    %603 = arith.mulf %598, %602 : vector<16x32xf32>
    %604 = vector.broadcast %572 : vector<1x32xf32> to vector<16x32xf32>
    %605 = arith.mulf %603, %604 : vector<16x32xf32>
    %606 = vector.broadcast %574 : vector<1x32xf32> to vector<16x32xf32>
    %607 = arith.addf %605, %606 : vector<16x32xf32>
    %c1_319 = arith.constant 1 : index
    %c0_320 = arith.constant 0 : index
    %c0_321 = arith.constant 0 : index
    %608 = vector.load %arg7[%c1_319, %c0_320, %c0_321] : memref<2x32x64xf32, #tpu.memory_space<vmem>>, vector<1x32x64xf32>
    %609 = vector.shape_cast %608 : vector<1x32x64xf32> to vector<32x64xf32>
    %cst_322 = arith.constant dense<0.000000e+00> : vector<16x64xf32>
    %610 = tpu.matmul %607, %609, %cst_322 {dimension_numbers = #tpu.dot_dimension_numbers<[1], [0], [0], [1], [0, 0, 1, 1], [], []>} : vector<16x32xf32>, vector<32x64xf32>, vector<16x64xf32> -> vector<16x64xf32>
    %611 = vector.broadcast %576 : vector<1x64xf32> to vector<16x64xf32>
    %612 = arith.addf %610, %611 : vector<16x64xf32>
    %cst_323 = arith.constant 0.000000e+00 : f32
    %613 = vector.broadcast %cst_323 : f32 to vector<16x64xf32>
    %614 = arith.maximumf %612, %613 : vector<16x64xf32>
    %c1_324 = arith.constant 1 : index
    %c0_325 = arith.constant 0 : index
    %c0_326 = arith.constant 0 : index
    %615 = vector.load %arg8[%c1_324, %c0_325, %c0_326] : memref<2x64x32xf32, #tpu.memory_space<vmem>>, vector<1x64x32xf32>
    %616 = vector.shape_cast %615 : vector<1x64x32xf32> to vector<64x32xf32>
    %cst_327 = arith.constant dense<0.000000e+00> : vector<16x32xf32>
    %617 = tpu.matmul %614, %616, %cst_327 {dimension_numbers = #tpu.dot_dimension_numbers<[1], [0], [0], [1], [0, 0, 1, 1], [], []>} : vector<16x64xf32>, vector<64x32xf32>, vector<16x32xf32> -> vector<16x32xf32>
    %618 = vector.broadcast %578 : vector<1x32xf32> to vector<16x32xf32>
    %619 = arith.addf %617, %618 : vector<16x32xf32>
    %620 = arith.addf %607, %619 : vector<16x32xf32>
    %cst_328 = arith.constant dense<0.000000e+00> : vector<16xf32>
    %621 = vector.multi_reduction <add>, %620, %cst_328 [1] : vector<16x32xf32> to vector<16xf32>
    %622 = vector.shape_cast %621 : vector<16xf32> to vector<16x1xf32>
    %cst_329 = arith.constant 3.200000e+01 : f32
    %623 = vector.broadcast %cst_329 : f32 to vector<16x1xf32>
    %624 = arith.divf %622, %623 : vector<16x1xf32>
    %625 = arith.mulf %620, %620 : vector<16x32xf32>
    %cst_330 = arith.constant dense<0.000000e+00> : vector<16xf32>
    %626 = vector.multi_reduction <add>, %625, %cst_330 [1] : vector<16x32xf32> to vector<16xf32>
    %627 = vector.shape_cast %626 : vector<16xf32> to vector<16x1xf32>
    %cst_331 = arith.constant 3.200000e+01 : f32
    %628 = vector.broadcast %cst_331 : f32 to vector<16x1xf32>
    %629 = arith.divf %627, %628 : vector<16x1xf32>
    %630 = arith.mulf %624, %624 : vector<16x1xf32>
    %631 = arith.subf %629, %630 : vector<16x1xf32>
    %632 = vector.broadcast %624 : vector<16x1xf32> to vector<16x32xf32>
    %633 = arith.subf %620, %632 : vector<16x32xf32>
    %cst_332 = arith.constant 9.99999974E-6 : f32
    %634 = vector.broadcast %cst_332 : f32 to vector<16x1xf32>
    %635 = arith.addf %631, %634 : vector<16x1xf32>
    %636 = math.rsqrt %635 : vector<16x1xf32>
    %637 = vector.broadcast %636 : vector<16x1xf32> to vector<16x32xf32>
    %638 = arith.mulf %633, %637 : vector<16x32xf32>
    %639 = vector.broadcast %580 : vector<1x32xf32> to vector<16x32xf32>
    %640 = arith.mulf %638, %639 : vector<16x32xf32>
    %641 = vector.broadcast %582 : vector<1x32xf32> to vector<16x32xf32>
    %642 = arith.addf %640, %641 : vector<16x32xf32>
    %c18_333 = arith.constant 18 : index
    %c0_334 = arith.constant 0 : index
    %643 = vector.load %arg11[%c18_333, %c0_334] : memref<24x128xf32, #tpu.memory_space<vmem>>, vector<1x128xf32>
    %c0_335 = arith.constant 0 : index
    %c0_336 = arith.constant 0 : index
    %644 = vector.load %arg10[%c0_335, %c0_336] : memref<32x128xf32, #tpu.memory_space<vmem>>, vector<32x128xf32>
    %cst_337 = arith.constant dense<0.000000e+00> : vector<16x128xf32>
    %645 = tpu.matmul %642, %644, %cst_337 {dimension_numbers = #tpu.dot_dimension_numbers<[1], [0], [0], [1], [0, 0, 1, 1], [], []>} : vector<16x32xf32>, vector<32x128xf32>, vector<16x128xf32> -> vector<16x128xf32>
    %646 = vector.broadcast %643 : vector<1x128xf32> to vector<16x128xf32>
    %647 = arith.addf %645, %646 : vector<16x128xf32>
    %648 = vector.shape_cast %647 : vector<16x128xf32> to vector<2x8x128xf32>
    %c0_338 = arith.constant 0 : index
    %c0_339 = arith.constant 0 : index
    %c0_340 = arith.constant 0 : index
    %649 = vector.load %arg12[%c0_338, %c0_339, %c0_340] : memref<2x8x128xf32, #tpu.memory_space<vmem>>, vector<2x8x128xf32>
    tpu.vector_store %arg12[%c0_338, %c0_339, %c0_340], %648 {strides = array<i32>} : memref<2x8x128xf32, #tpu.memory_space<vmem>>, vector<2x8x128xf32>,
    %c0_341 = arith.constant 0 : index
    %c0_342 = arith.constant 0 : index
    %650 = vector.load %arg11[%c0_341, %c0_342] : memref<24x128xf32, #tpu.memory_space<vmem>>, vector<5x5xf32>
    %c8_343 = arith.constant 8 : index
    %c0_344 = arith.constant 0 : index
    %651 = vector.load %arg11[%c8_343, %c0_344] : memref<24x128xf32, #tpu.memory_space<vmem>>, vector<5x5xf32>
    %c16_345 = arith.constant 16 : index
    %c0_346 = arith.constant 0 : index
    %652 = vector.load %arg11[%c16_345, %c0_346] : memref<24x128xf32, #tpu.memory_space<vmem>>, vector<1x5xf32>
    %c17_347 = arith.constant 17 : index
    %c0_348 = arith.constant 0 : index
    %653 = vector.load %arg11[%c17_347, %c0_348] : memref<24x128xf32, #tpu.memory_space<vmem>>, vector<1x5xf32>
    %654 = tpu.iota {dimensions = array<i32: 1>} : vector<5x5xi32>
    %655 = tpu.iota {dimensions = array<i32: 0>} : vector<5x5xi32>
    %656 = tpu.iota {dimensions = array<i32: 1>} : vector<1x5xi32>
    %657 = tpu.iota {dimensions = array<i32: 0>} : vector<5x1xi32>
    %658 = tpu.iota {dimensions = array<i32: 1>} : vector<1x128xi32>
    %659 = arith.cmpi eq, %655, %654 : vector<5x5xi32>
    %cst_349 = arith.constant 0.000000e+00 : f32
    %cst_350 = arith.constant -1.000000e+09 : f32
    %660 = vector.broadcast %cst_349 : f32 to vector<5x5xf32>
    %661 = vector.broadcast %cst_350 : f32 to vector<5x5xf32>
    %662 = arith.select %659, %660, %661 : vector<5x5xi1>, vector<5x5xf32>
    %663 = tpu.transpose %653, [1, 0] : vector<1x5xf32> -> vector<5x1xf32>
    %c0_i32 = arith.constant 0 : i32
    %664 = arith.addi %0, %c0_i32 : i32
    %665 = arith.index_cast %664 : i32 to index
    %666 = memref.load %arg1[%665] : memref<2xi32, #tpu.memory_space<smem>>
    %c1_i32 = arith.constant 1 : i32
    %667 = arith.subi %666, %c1_i32 : i32
    %668 = vector.extract_strided_slice %647 {offsets = [0, 0], sizes = [8, 5], strides = [1, 1]} : vector<16x128xf32> to vector<8x5xf32>
    %669 = tpu.transpose %668, [1, 0] : vector<8x5xf32> -> vector<5x8xf32>
    %670 = vector.extract_strided_slice %668 {offsets = [0, 0], sizes = [1, 5], strides = [1, 1]} : vector<8x5xf32> to vector<1x5xf32>
    %671 = arith.addf %670, %652 : vector<1x5xf32>
    %c1_i32_351 = arith.constant 1 : i32
    %672 = arith.cmpi sgt, %666, %c1_i32_351 : i32
    %673 = arith.select %672, %651, %662 : vector<5x5xf32>
    %674 = vector.broadcast %671 : vector<1x5xf32> to vector<5x5xf32>
    %675 = arith.addf %673, %674 : vector<5x5xf32>
    %cst_352 = arith.constant dense<0xFF800000> : vector<5xf32>
    %676 = vector.multi_reduction <maximumf>, %675, %cst_352 [1] : vector<5x5xf32> to vector<5xf32>
    %677 = vector.shape_cast %676 : vector<5xf32> to vector<5x1xf32>
    %678 = vector.broadcast %677 : vector<5x1xf32> to vector<5x5xf32>
    %679 = arith.cmpf oge, %675, %678 : vector<5x5xf32>
    %c5_i32 = arith.constant 5 : i32
    %680 = vector.broadcast %c5_i32 : i32 to vector<5x5xi32>
    %681 = arith.select %679, %654, %680 : vector<5x5xi1>, vector<5x5xi32>
    %cst_353 = arith.constant dense<2147483647> : vector<5xi32>
    %682 = vector.multi_reduction <minsi>, %681, %cst_353 [1] : vector<5x5xi32> to vector<5xi32>
    %683 = vector.shape_cast %682 : vector<5xi32> to vector<5x1xi32>
    %684 = vector.extract_strided_slice %669 {offsets = [0, 1], sizes = [5, 1], strides = [1, 1]} : vector<5x8xf32> to vector<5x1xf32>
    %cst_354 = arith.constant 0.000000e+00 : f32
    %685 = vector.broadcast %cst_354 : f32 to vector<5x1xf32>
    %686 = arith.select %672, %684, %685 : vector<5x1xf32>
    %687 = arith.addf %677, %686 : vector<5x1xf32>
    %c2_i32_355 = arith.constant 2 : i32
    %688 = arith.cmpi sgt, %666, %c2_i32_355 : i32
    %689 = arith.select %688, %650, %662 : vector<5x5xf32>
    %690 = vector.broadcast %687 : vector<5x1xf32> to vector<5x5xf32>
    %691 = arith.addf %689, %690 : vector<5x5xf32>
    %cst_356 = arith.constant dense<0xFF800000> : vector<5xf32>
    %692 = vector.multi_reduction <maximumf>, %691, %cst_356 [0] : vector<5x5xf32> to vector<5xf32>
    %693 = vector.shape_cast %692 : vector<5xf32> to vector<1x5xf32>
    %694 = vector.broadcast %693 : vector<1x5xf32> to vector<5x5xf32>
    %695 = arith.cmpf oge, %691, %694 : vector<5x5xf32>
    %c5_i32_357 = arith.constant 5 : i32
    %696 = vector.broadcast %c5_i32_357 : i32 to vector<5x5xi32>
    %697 = arith.select %695, %655, %696 : vector<5x5xi1>, vector<5x5xi32>
    %cst_358 = arith.constant dense<2147483647> : vector<5xi32>
    %698 = vector.multi_reduction <minsi>, %697, %cst_358 [0] : vector<5x5xi32> to vector<5xi32>
    %699 = vector.shape_cast %698 : vector<5xi32> to vector<1x5xi32>
    %700 = vector.extract_strided_slice %668 {offsets = [2, 0], sizes = [1, 5], strides = [1, 1]} : vector<8x5xf32> to vector<1x5xf32>
    %cst_359 = arith.constant 0.000000e+00 : f32
    %701 = vector.broadcast %cst_359 : f32 to vector<1x5xf32>
    %702 = arith.select %688, %700, %701 : vector<1x5xf32>
    %703 = arith.addf %693, %702 : vector<1x5xf32>
    %c3_i32 = arith.constant 3 : i32
    %704 = arith.cmpi sgt, %666, %c3_i32 : i32
    %705 = arith.select %704, %651, %662 : vector<5x5xf32>
    %706 = vector.broadcast %703 : vector<1x5xf32> to vector<5x5xf32>
    %707 = arith.addf %705, %706 : vector<5x5xf32>
    %cst_360 = arith.constant dense<0xFF800000> : vector<5xf32>
    %708 = vector.multi_reduction <maximumf>, %707, %cst_360 [1] : vector<5x5xf32> to vector<5xf32>
    %709 = vector.shape_cast %708 : vector<5xf32> to vector<5x1xf32>
    %710 = vector.broadcast %709 : vector<5x1xf32> to vector<5x5xf32>
    %711 = arith.cmpf oge, %707, %710 : vector<5x5xf32>
    %c5_i32_361 = arith.constant 5 : i32
    %712 = vector.broadcast %c5_i32_361 : i32 to vector<5x5xi32>
    %713 = arith.select %711, %654, %712 : vector<5x5xi1>, vector<5x5xi32>
    %cst_362 = arith.constant dense<2147483647> : vector<5xi32>
    %714 = vector.multi_reduction <minsi>, %713, %cst_362 [1] : vector<5x5xi32> to vector<5xi32>
    %715 = vector.shape_cast %714 : vector<5xi32> to vector<5x1xi32>
    %716 = vector.extract_strided_slice %669 {offsets = [0, 3], sizes = [5, 1], strides = [1, 1]} : vector<5x8xf32> to vector<5x1xf32>
    %cst_363 = arith.constant 0.000000e+00 : f32
    %717 = vector.broadcast %cst_363 : f32 to vector<5x1xf32>
    %718 = arith.select %704, %716, %717 : vector<5x1xf32>
    %719 = arith.addf %709, %718 : vector<5x1xf32>
    %c4_i32 = arith.constant 4 : i32
    %720 = arith.cmpi sgt, %666, %c4_i32 : i32
    %721 = arith.select %720, %650, %662 : vector<5x5xf32>
    %722 = vector.broadcast %719 : vector<5x1xf32> to vector<5x5xf32>
    %723 = arith.addf %721, %722 : vector<5x5xf32>
    %cst_364 = arith.constant dense<0xFF800000> : vector<5xf32>
    %724 = vector.multi_reduction <maximumf>, %723, %cst_364 [0] : vector<5x5xf32> to vector<5xf32>
    %725 = vector.shape_cast %724 : vector<5xf32> to vector<1x5xf32>
    %726 = vector.broadcast %725 : vector<1x5xf32> to vector<5x5xf32>
    %727 = arith.cmpf oge, %723, %726 : vector<5x5xf32>
    %c5_i32_365 = arith.constant 5 : i32
    %728 = vector.broadcast %c5_i32_365 : i32 to vector<5x5xi32>
    %729 = arith.select %727, %655, %728 : vector<5x5xi1>, vector<5x5xi32>
    %cst_366 = arith.constant dense<2147483647> : vector<5xi32>
    %730 = vector.multi_reduction <minsi>, %729, %cst_366 [0] : vector<5x5xi32> to vector<5xi32>
    %731 = vector.shape_cast %730 : vector<5xi32> to vector<1x5xi32>
    %732 = vector.extract_strided_slice %668 {offsets = [4, 0], sizes = [1, 5], strides = [1, 1]} : vector<8x5xf32> to vector<1x5xf32>
    %cst_367 = arith.constant 0.000000e+00 : f32
    %733 = vector.broadcast %cst_367 : f32 to vector<1x5xf32>
    %734 = arith.select %720, %732, %733 : vector<1x5xf32>
    %735 = arith.addf %725, %734 : vector<1x5xf32>
    %c5_i32_368 = arith.constant 5 : i32
    %736 = arith.cmpi sgt, %666, %c5_i32_368 : i32
    %737 = arith.select %736, %651, %662 : vector<5x5xf32>
    %738 = vector.broadcast %735 : vector<1x5xf32> to vector<5x5xf32>
    %739 = arith.addf %737, %738 : vector<5x5xf32>
    %cst_369 = arith.constant dense<0xFF800000> : vector<5xf32>
    %740 = vector.multi_reduction <maximumf>, %739, %cst_369 [1] : vector<5x5xf32> to vector<5xf32>
    %741 = vector.shape_cast %740 : vector<5xf32> to vector<5x1xf32>
    %742 = vector.broadcast %741 : vector<5x1xf32> to vector<5x5xf32>
    %743 = arith.cmpf oge, %739, %742 : vector<5x5xf32>
    %c5_i32_370 = arith.constant 5 : i32
    %744 = vector.broadcast %c5_i32_370 : i32 to vector<5x5xi32>
    %745 = arith.select %743, %654, %744 : vector<5x5xi1>, vector<5x5xi32>
    %cst_371 = arith.constant dense<2147483647> : vector<5xi32>
    %746 = vector.multi_reduction <minsi>, %745, %cst_371 [1] : vector<5x5xi32> to vector<5xi32>
    %747 = vector.shape_cast %746 : vector<5xi32> to vector<5x1xi32>
    %748 = vector.extract_strided_slice %669 {offsets = [0, 5], sizes = [5, 1], strides = [1, 1]} : vector<5x8xf32> to vector<5x1xf32>
    %cst_372 = arith.constant 0.000000e+00 : f32
    %749 = vector.broadcast %cst_372 : f32 to vector<5x1xf32>
    %750 = arith.select %736, %748, %749 : vector<5x1xf32>
    %751 = arith.addf %741, %750 : vector<5x1xf32>
    %c6_i32 = arith.constant 6 : i32
    %752 = arith.cmpi sgt, %666, %c6_i32 : i32
    %753 = arith.select %752, %650, %662 : vector<5x5xf32>
    %754 = vector.broadcast %751 : vector<5x1xf32> to vector<5x5xf32>
    %755 = arith.addf %753, %754 : vector<5x5xf32>
    %cst_373 = arith.constant dense<0xFF800000> : vector<5xf32>
    %756 = vector.multi_reduction <maximumf>, %755, %cst_373 [0] : vector<5x5xf32> to vector<5xf32>
    %757 = vector.shape_cast %756 : vector<5xf32> to vector<1x5xf32>
    %758 = vector.broadcast %757 : vector<1x5xf32> to vector<5x5xf32>
    %759 = arith.cmpf oge, %755, %758 : vector<5x5xf32>
    %c5_i32_374 = arith.constant 5 : i32
    %760 = vector.broadcast %c5_i32_374 : i32 to vector<5x5xi32>
    %761 = arith.select %759, %655, %760 : vector<5x5xi1>, vector<5x5xi32>
    %cst_375 = arith.constant dense<2147483647> : vector<5xi32>
    %762 = vector.multi_reduction <minsi>, %761, %cst_375 [0] : vector<5x5xi32> to vector<5xi32>
    %763 = vector.shape_cast %762 : vector<5xi32> to vector<1x5xi32>
    %764 = vector.extract_strided_slice %668 {offsets = [6, 0], sizes = [1, 5], strides = [1, 1]} : vector<8x5xf32> to vector<1x5xf32>
    %cst_376 = arith.constant 0.000000e+00 : f32
    %765 = vector.broadcast %cst_376 : f32 to vector<1x5xf32>
    %766 = arith.select %752, %764, %765 : vector<1x5xf32>
    %767 = arith.addf %757, %766 : vector<1x5xf32>
    %c7_i32 = arith.constant 7 : i32
    %768 = arith.cmpi sgt, %666, %c7_i32 : i32
    %769 = arith.select %768, %651, %662 : vector<5x5xf32>
    %770 = vector.broadcast %767 : vector<1x5xf32> to vector<5x5xf32>
    %771 = arith.addf %769, %770 : vector<5x5xf32>
    %cst_377 = arith.constant dense<0xFF800000> : vector<5xf32>
    %772 = vector.multi_reduction <maximumf>, %771, %cst_377 [1] : vector<5x5xf32> to vector<5xf32>
    %773 = vector.shape_cast %772 : vector<5xf32> to vector<5x1xf32>
    %774 = vector.broadcast %773 : vector<5x1xf32> to vector<5x5xf32>
    %775 = arith.cmpf oge, %771, %774 : vector<5x5xf32>
    %c5_i32_378 = arith.constant 5 : i32
    %776 = vector.broadcast %c5_i32_378 : i32 to vector<5x5xi32>
    %777 = arith.select %775, %654, %776 : vector<5x5xi1>, vector<5x5xi32>
    %cst_379 = arith.constant dense<2147483647> : vector<5xi32>
    %778 = vector.multi_reduction <minsi>, %777, %cst_379 [1] : vector<5x5xi32> to vector<5xi32>
    %779 = vector.shape_cast %778 : vector<5xi32> to vector<5x1xi32>
    %780 = vector.extract_strided_slice %669 {offsets = [0, 7], sizes = [5, 1], strides = [1, 1]} : vector<5x8xf32> to vector<5x1xf32>
    %cst_380 = arith.constant 0.000000e+00 : f32
    %781 = vector.broadcast %cst_380 : f32 to vector<5x1xf32>
    %782 = arith.select %768, %780, %781 : vector<5x1xf32>
    %783 = arith.addf %773, %782 : vector<5x1xf32>
    %784 = arith.addf %783, %663 : vector<5x1xf32>
    %cst_381 = arith.constant dense<0xFF800000> : vector<1xf32>
    %785 = vector.multi_reduction <maximumf>, %784, %cst_381 [0] : vector<5x1xf32> to vector<1xf32>
    %786 = vector.shape_cast %785 : vector<1xf32> to vector<1x1xf32>
    %787 = vector.broadcast %786 : vector<1x1xf32> to vector<5x1xf32>
    %788 = arith.cmpf oge, %784, %787 : vector<5x1xf32>
    %c5_i32_382 = arith.constant 5 : i32
    %789 = vector.broadcast %c5_i32_382 : i32 to vector<5x1xi32>
    %790 = arith.select %788, %657, %789 : vector<5x1xi1>, vector<5x1xi32>
    %cst_383 = arith.constant dense<2147483647> : vector<1xi32>
    %791 = vector.multi_reduction <minsi>, %790, %cst_383 [0] : vector<5x1xi32> to vector<1xi32>
    %792 = vector.shape_cast %791 : vector<1xi32> to vector<1x1xi32>
    %793 = vector.shape_cast %786 : vector<1x1xf32> to vector<1x1xf32>
    %794 = vector.broadcast %793 : vector<1x1xf32> to vector<1x128xf32>
    %c0_384 = arith.constant 0 : index
    %c0_385 = arith.constant 0 : index
    %c0_386 = arith.constant 0 : index
    %795 = vector.load %arg14[%c0_384, %c0_385, %c0_386] : memref<2x1x128xf32, #tpu.memory_space<vmem>>, vector<1x1x128xf32>
    %796 = vector.shape_cast %795 : vector<1x1x128xf32> to vector<1x128xf32>
    %797 = vector.shape_cast %794 : vector<1x128xf32> to vector<1x1x128xf32>
    tpu.vector_store %arg14[%c0_384, %c0_385, %c0_386], %797 {strides = array<i32>} : memref<2x1x128xf32, #tpu.memory_space<vmem>>, vector<1x1x128xf32>,
    %798 = vector.broadcast %667 : i32 to vector<1x128xi32>
    %799 = arith.cmpi eq, %658, %798 : vector<1x128xi32>
    %c0_i32_387 = arith.constant 0 : i32
    %800 = vector.broadcast %c0_i32_387 : i32 to vector<1x128xi32>
    %801 = vector.shape_cast %792 : vector<1x1xi32> to vector<1x1xi32>
    %802 = vector.broadcast %801 : vector<1x1xi32> to vector<1x128xi32>
    %803 = arith.select %799, %802, %800 : vector<1x128xi1>, vector<1x128xi32>
    %804 = vector.broadcast %792 : vector<1x1xi32> to vector<5x1xi32>
    %805 = arith.cmpi eq, %657, %804 : vector<5x1xi32>
    %c0_i32_388 = arith.constant 0 : i32
    %806 = vector.broadcast %c0_i32_388 : i32 to vector<5x1xi32>
    %807 = arith.select %805, %779, %806 : vector<5x1xi1>, vector<5x1xi32>
    %cst_389 = arith.constant dense<0> : vector<1xi32>
    %808 = vector.multi_reduction <add>, %807, %cst_389 [0] : vector<5x1xi32> to vector<1xi32>
    %809 = vector.shape_cast %808 : vector<1xi32> to vector<1x1xi32>
    %c7_i32_390 = arith.constant 7 : i32
    %810 = arith.cmpi sge, %667, %c7_i32_390 : i32
    %c6_i32_391 = arith.constant 6 : i32
    %811 = vector.broadcast %c6_i32_391 : i32 to vector<1x128xi32>
    %812 = arith.cmpi eq, %658, %811 : vector<1x128xi32>
    %813 = vector.broadcast %810 : i1 to vector<1x128xi1>
    %814 = arith.andi %812, %813 : vector<1x128xi1>
    %815 = vector.shape_cast %809 : vector<1x1xi32> to vector<1x1xi32>
    %816 = vector.broadcast %815 : vector<1x1xi32> to vector<1x128xi32>
    %817 = arith.select %814, %816, %803 : vector<1x128xi1>, vector<1x128xi32>
    %818 = vector.broadcast %809 : vector<1x1xi32> to vector<1x5xi32>
    %819 = arith.cmpi eq, %656, %818 : vector<1x5xi32>
    %c0_i32_392 = arith.constant 0 : i32
    %820 = vector.broadcast %c0_i32_392 : i32 to vector<1x5xi32>
    %821 = arith.select %819, %763, %820 : vector<1x5xi1>, vector<1x5xi32>
    %cst_393 = arith.constant dense<0> : vector<1xi32>
    %822 = vector.multi_reduction <add>, %821, %cst_393 [1] : vector<1x5xi32> to vector<1xi32>
    %823 = vector.shape_cast %822 : vector<1xi32> to vector<1x1xi32>
    %c6_i32_394 = arith.constant 6 : i32
    %824 = arith.cmpi sge, %667, %c6_i32_394 : i32
    %c5_i32_395 = arith.constant 5 : i32
    %825 = vector.broadcast %c5_i32_395 : i32 to vector<1x128xi32>
    %826 = arith.cmpi eq, %658, %825 : vector<1x128xi32>
    %827 = vector.broadcast %824 : i1 to vector<1x128xi1>
    %828 = arith.andi %826, %827 : vector<1x128xi1>
    %829 = vector.shape_cast %823 : vector<1x1xi32> to vector<1x1xi32>
    %830 = vector.broadcast %829 : vector<1x1xi32> to vector<1x128xi32>
    %831 = arith.select %828, %830, %817 : vector<1x128xi1>, vector<1x128xi32>
    %832 = vector.broadcast %823 : vector<1x1xi32> to vector<5x1xi32>
    %833 = arith.cmpi eq, %657, %832 : vector<5x1xi32>
    %c0_i32_396 = arith.constant 0 : i32
    %834 = vector.broadcast %c0_i32_396 : i32 to vector<5x1xi32>
    %835 = arith.select %833, %747, %834 : vector<5x1xi1>, vector<5x1xi32>
    %cst_397 = arith.constant dense<0> : vector<1xi32>
    %836 = vector.multi_reduction <add>, %835, %cst_397 [0] : vector<5x1xi32> to vector<1xi32>
    %837 = vector.shape_cast %836 : vector<1xi32> to vector<1x1xi32>
    %c5_i32_398 = arith.constant 5 : i32
    %838 = arith.cmpi sge, %667, %c5_i32_398 : i32
    %c4_i32_399 = arith.constant 4 : i32
    %839 = vector.broadcast %c4_i32_399 : i32 to vector<1x128xi32>
    %840 = arith.cmpi eq, %658, %839 : vector<1x128xi32>
    %841 = vector.broadcast %838 : i1 to vector<1x128xi1>
    %842 = arith.andi %840, %841 : vector<1x128xi1>
    %843 = vector.shape_cast %837 : vector<1x1xi32> to vector<1x1xi32>
    %844 = vector.broadcast %843 : vector<1x1xi32> to vector<1x128xi32>
    %845 = arith.select %842, %844, %831 : vector<1x128xi1>, vector<1x128xi32>
    %846 = vector.broadcast %837 : vector<1x1xi32> to vector<1x5xi32>
    %847 = arith.cmpi eq, %656, %846 : vector<1x5xi32>
    %c0_i32_400 = arith.constant 0 : i32
    %848 = vector.broadcast %c0_i32_400 : i32 to vector<1x5xi32>
    %849 = arith.select %847, %731, %848 : vector<1x5xi1>, vector<1x5xi32>
    %cst_401 = arith.constant dense<0> : vector<1xi32>
    %850 = vector.multi_reduction <add>, %849, %cst_401 [1] : vector<1x5xi32> to vector<1xi32>
    %851 = vector.shape_cast %850 : vector<1xi32> to vector<1x1xi32>
    %c4_i32_402 = arith.constant 4 : i32
    %852 = arith.cmpi sge, %667, %c4_i32_402 : i32
    %c3_i32_403 = arith.constant 3 : i32
    %853 = vector.broadcast %c3_i32_403 : i32 to vector<1x128xi32>
    %854 = arith.cmpi eq, %658, %853 : vector<1x128xi32>
    %855 = vector.broadcast %852 : i1 to vector<1x128xi1>
    %856 = arith.andi %854, %855 : vector<1x128xi1>
    %857 = vector.shape_cast %851 : vector<1x1xi32> to vector<1x1xi32>
    %858 = vector.broadcast %857 : vector<1x1xi32> to vector<1x128xi32>
    %859 = arith.select %856, %858, %845 : vector<1x128xi1>, vector<1x128xi32>
    %860 = vector.broadcast %851 : vector<1x1xi32> to vector<5x1xi32>
    %861 = arith.cmpi eq, %657, %860 : vector<5x1xi32>
    %c0_i32_404 = arith.constant 0 : i32
    %862 = vector.broadcast %c0_i32_404 : i32 to vector<5x1xi32>
    %863 = arith.select %861, %715, %862 : vector<5x1xi1>, vector<5x1xi32>
    %cst_405 = arith.constant dense<0> : vector<1xi32>
    %864 = vector.multi_reduction <add>, %863, %cst_405 [0] : vector<5x1xi32> to vector<1xi32>
    %865 = vector.shape_cast %864 : vector<1xi32> to vector<1x1xi32>
    %c3_i32_406 = arith.constant 3 : i32
    %866 = arith.cmpi sge, %667, %c3_i32_406 : i32
    %c2_i32_407 = arith.constant 2 : i32
    %867 = vector.broadcast %c2_i32_407 : i32 to vector<1x128xi32>
    %868 = arith.cmpi eq, %658, %867 : vector<1x128xi32>
    %869 = vector.broadcast %866 : i1 to vector<1x128xi1>
    %870 = arith.andi %868, %869 : vector<1x128xi1>
    %871 = vector.shape_cast %865 : vector<1x1xi32> to vector<1x1xi32>
    %872 = vector.broadcast %871 : vector<1x1xi32> to vector<1x128xi32>
    %873 = arith.select %870, %872, %859 : vector<1x128xi1>, vector<1x128xi32>
    %874 = vector.broadcast %865 : vector<1x1xi32> to vector<1x5xi32>
    %875 = arith.cmpi eq, %656, %874 : vector<1x5xi32>
    %c0_i32_408 = arith.constant 0 : i32
    %876 = vector.broadcast %c0_i32_408 : i32 to vector<1x5xi32>
    %877 = arith.select %875, %699, %876 : vector<1x5xi1>, vector<1x5xi32>
    %cst_409 = arith.constant dense<0> : vector<1xi32>
    %878 = vector.multi_reduction <add>, %877, %cst_409 [1] : vector<1x5xi32> to vector<1xi32>
    %879 = vector.shape_cast %878 : vector<1xi32> to vector<1x1xi32>
    %c2_i32_410 = arith.constant 2 : i32
    %880 = arith.cmpi sge, %667, %c2_i32_410 : i32
    %c1_i32_411 = arith.constant 1 : i32
    %881 = vector.broadcast %c1_i32_411 : i32 to vector<1x128xi32>
    %882 = arith.cmpi eq, %658, %881 : vector<1x128xi32>
    %883 = vector.broadcast %880 : i1 to vector<1x128xi1>
    %884 = arith.andi %882, %883 : vector<1x128xi1>
    %885 = vector.shape_cast %879 : vector<1x1xi32> to vector<1x1xi32>
    %886 = vector.broadcast %885 : vector<1x1xi32> to vector<1x128xi32>
    %887 = arith.select %884, %886, %873 : vector<1x128xi1>, vector<1x128xi32>
    %888 = vector.broadcast %879 : vector<1x1xi32> to vector<5x1xi32>
    %889 = arith.cmpi eq, %657, %888 : vector<5x1xi32>
    %c0_i32_412 = arith.constant 0 : i32
    %890 = vector.broadcast %c0_i32_412 : i32 to vector<5x1xi32>
    %891 = arith.select %889, %683, %890 : vector<5x1xi1>, vector<5x1xi32>
    %cst_413 = arith.constant dense<0> : vector<1xi32>
    %892 = vector.multi_reduction <add>, %891, %cst_413 [0] : vector<5x1xi32> to vector<1xi32>
    %893 = vector.shape_cast %892 : vector<1xi32> to vector<1x1xi32>
    %c1_i32_414 = arith.constant 1 : i32
    %894 = arith.cmpi sge, %667, %c1_i32_414 : i32
    %c0_i32_415 = arith.constant 0 : i32
    %895 = vector.broadcast %c0_i32_415 : i32 to vector<1x128xi32>
    %896 = arith.cmpi eq, %658, %895 : vector<1x128xi32>
    %897 = vector.broadcast %894 : i1 to vector<1x128xi1>
    %898 = arith.andi %896, %897 : vector<1x128xi1>
    %899 = vector.shape_cast %893 : vector<1x1xi32> to vector<1x1xi32>
    %900 = vector.broadcast %899 : vector<1x1xi32> to vector<1x128xi32>
    %901 = arith.select %898, %900, %887 : vector<1x128xi1>, vector<1x128xi32>
    %c0_416 = arith.constant 0 : index
    %c0_417 = arith.constant 0 : index
    %c0_418 = arith.constant 0 : index
    %902 = vector.load %arg13[%c0_416, %c0_417, %c0_418] : memref<2x1x128xi32, #tpu.memory_space<vmem>>, vector<1x1x128xi32>
    %903 = vector.shape_cast %902 : vector<1x1x128xi32> to vector<1x128xi32>
    %904 = vector.shape_cast %901 : vector<1x128xi32> to vector<1x1x128xi32>
    tpu.vector_store %arg13[%c0_416, %c0_417, %c0_418], %904 {strides = array<i32>} : memref<2x1x128xi32, #tpu.memory_space<vmem>>, vector<1x1x128xi32>,
    %c1_i32_419 = arith.constant 1 : i32
    %905 = arith.addi %0, %c1_i32_419 : i32
    %906 = arith.index_cast %905 : i32 to index
    %907 = memref.load %arg1[%906] : memref<2xi32, #tpu.memory_space<smem>>
    %c1_i32_420 = arith.constant 1 : i32
    %908 = arith.subi %907, %c1_i32_420 : i32
    %909 = vector.extract_strided_slice %647 {offsets = [8, 0], sizes = [8, 5], strides = [1, 1]} : vector<16x128xf32> to vector<8x5xf32>
    %910 = tpu.transpose %909, [1, 0] : vector<8x5xf32> -> vector<5x8xf32>
    %911 = vector.extract_strided_slice %909 {offsets = [0, 0], sizes = [1, 5], strides = [1, 1]} : vector<8x5xf32> to vector<1x5xf32>
    %912 = arith.addf %911, %652 : vector<1x5xf32>
    %c1_i32_421 = arith.constant 1 : i32
    %913 = arith.cmpi sgt, %907, %c1_i32_421 : i32
    %914 = arith.select %913, %651, %662 : vector<5x5xf32>
    %915 = vector.broadcast %912 : vector<1x5xf32> to vector<5x5xf32>
    %916 = arith.addf %914, %915 : vector<5x5xf32>
    %cst_422 = arith.constant dense<0xFF800000> : vector<5xf32>
    %917 = vector.multi_reduction <maximumf>, %916, %cst_422 [1] : vector<5x5xf32> to vector<5xf32>
    %918 = vector.shape_cast %917 : vector<5xf32> to vector<5x1xf32>
    %919 = vector.broadcast %918 : vector<5x1xf32> to vector<5x5xf32>
    %920 = arith.cmpf oge, %916, %919 : vector<5x5xf32>
    %c5_i32_423 = arith.constant 5 : i32
    %921 = vector.broadcast %c5_i32_423 : i32 to vector<5x5xi32>
    %922 = arith.select %920, %654, %921 : vector<5x5xi1>, vector<5x5xi32>
    %cst_424 = arith.constant dense<2147483647> : vector<5xi32>
    %923 = vector.multi_reduction <minsi>, %922, %cst_424 [1] : vector<5x5xi32> to vector<5xi32>
    %924 = vector.shape_cast %923 : vector<5xi32> to vector<5x1xi32>
    %925 = vector.extract_strided_slice %910 {offsets = [0, 1], sizes = [5, 1], strides = [1, 1]} : vector<5x8xf32> to vector<5x1xf32>
    %cst_425 = arith.constant 0.000000e+00 : f32
    %926 = vector.broadcast %cst_425 : f32 to vector<5x1xf32>
    %927 = arith.select %913, %925, %926 : vector<5x1xf32>
    %928 = arith.addf %918, %927 : vector<5x1xf32>
    %c2_i32_426 = arith.constant 2 : i32
    %929 = arith.cmpi sgt, %907, %c2_i32_426 : i32
    %930 = arith.select %929, %650, %662 : vector<5x5xf32>
    %931 = vector.broadcast %928 : vector<5x1xf32> to vector<5x5xf32>
    %932 = arith.addf %930, %931 : vector<5x5xf32>
    %cst_427 = arith.constant dense<0xFF800000> : vector<5xf32>
    %933 = vector.multi_reduction <maximumf>, %932, %cst_427 [0] : vector<5x5xf32> to vector<5xf32>
    %934 = vector.shape_cast %933 : vector<5xf32> to vector<1x5xf32>
    %935 = vector.broadcast %934 : vector<1x5xf32> to vector<5x5xf32>
    %936 = arith.cmpf oge, %932, %935 : vector<5x5xf32>
    %c5_i32_428 = arith.constant 5 : i32
    %937 = vector.broadcast %c5_i32_428 : i32 to vector<5x5xi32>
    %938 = arith.select %936, %655, %937 : vector<5x5xi1>, vector<5x5xi32>
    %cst_429 = arith.constant dense<2147483647> : vector<5xi32>
    %939 = vector.multi_reduction <minsi>, %938, %cst_429 [0] : vector<5x5xi32> to vector<5xi32>
    %940 = vector.shape_cast %939 : vector<5xi32> to vector<1x5xi32>
    %941 = vector.extract_strided_slice %909 {offsets = [2, 0], sizes = [1, 5], strides = [1, 1]} : vector<8x5xf32> to vector<1x5xf32>
    %cst_430 = arith.constant 0.000000e+00 : f32
    %942 = vector.broadcast %cst_430 : f32 to vector<1x5xf32>
    %943 = arith.select %929, %941, %942 : vector<1x5xf32>
    %944 = arith.addf %934, %943 : vector<1x5xf32>
    %c3_i32_431 = arith.constant 3 : i32
    %945 = arith.cmpi sgt, %907, %c3_i32_431 : i32
    %946 = arith.select %945, %651, %662 : vector<5x5xf32>
    %947 = vector.broadcast %944 : vector<1x5xf32> to vector<5x5xf32>
    %948 = arith.addf %946, %947 : vector<5x5xf32>
    %cst_432 = arith.constant dense<0xFF800000> : vector<5xf32>
    %949 = vector.multi_reduction <maximumf>, %948, %cst_432 [1] : vector<5x5xf32> to vector<5xf32>
    %950 = vector.shape_cast %949 : vector<5xf32> to vector<5x1xf32>
    %951 = vector.broadcast %950 : vector<5x1xf32> to vector<5x5xf32>
    %952 = arith.cmpf oge, %948, %951 : vector<5x5xf32>
    %c5_i32_433 = arith.constant 5 : i32
    %953 = vector.broadcast %c5_i32_433 : i32 to vector<5x5xi32>
    %954 = arith.select %952, %654, %953 : vector<5x5xi1>, vector<5x5xi32>
    %cst_434 = arith.constant dense<2147483647> : vector<5xi32>
    %955 = vector.multi_reduction <minsi>, %954, %cst_434 [1] : vector<5x5xi32> to vector<5xi32>
    %956 = vector.shape_cast %955 : vector<5xi32> to vector<5x1xi32>
    %957 = vector.extract_strided_slice %910 {offsets = [0, 3], sizes = [5, 1], strides = [1, 1]} : vector<5x8xf32> to vector<5x1xf32>
    %cst_435 = arith.constant 0.000000e+00 : f32
    %958 = vector.broadcast %cst_435 : f32 to vector<5x1xf32>
    %959 = arith.select %945, %957, %958 : vector<5x1xf32>
    %960 = arith.addf %950, %959 : vector<5x1xf32>
    %c4_i32_436 = arith.constant 4 : i32
    %961 = arith.cmpi sgt, %907, %c4_i32_436 : i32
    %962 = arith.select %961, %650, %662 : vector<5x5xf32>
    %963 = vector.broadcast %960 : vector<5x1xf32> to vector<5x5xf32>
    %964 = arith.addf %962, %963 : vector<5x5xf32>
    %cst_437 = arith.constant dense<0xFF800000> : vector<5xf32>
    %965 = vector.multi_reduction <maximumf>, %964, %cst_437 [0] : vector<5x5xf32> to vector<5xf32>
    %966 = vector.shape_cast %965 : vector<5xf32> to vector<1x5xf32>
    %967 = vector.broadcast %966 : vector<1x5xf32> to vector<5x5xf32>
    %968 = arith.cmpf oge, %964, %967 : vector<5x5xf32>
    %c5_i32_438 = arith.constant 5 : i32
    %969 = vector.broadcast %c5_i32_438 : i32 to vector<5x5xi32>
    %970 = arith.select %968, %655, %969 : vector<5x5xi1>, vector<5x5xi32>
    %cst_439 = arith.constant dense<2147483647> : vector<5xi32>
    %971 = vector.multi_reduction <minsi>, %970, %cst_439 [0] : vector<5x5xi32> to vector<5xi32>
    %972 = vector.shape_cast %971 : vector<5xi32> to vector<1x5xi32>
    %973 = vector.extract_strided_slice %909 {offsets = [4, 0], sizes = [1, 5], strides = [1, 1]} : vector<8x5xf32> to vector<1x5xf32>
    %cst_440 = arith.constant 0.000000e+00 : f32
    %974 = vector.broadcast %cst_440 : f32 to vector<1x5xf32>
    %975 = arith.select %961, %973, %974 : vector<1x5xf32>
    %976 = arith.addf %966, %975 : vector<1x5xf32>
    %c5_i32_441 = arith.constant 5 : i32
    %977 = arith.cmpi sgt, %907, %c5_i32_441 : i32
    %978 = arith.select %977, %651, %662 : vector<5x5xf32>
    %979 = vector.broadcast %976 : vector<1x5xf32> to vector<5x5xf32>
    %980 = arith.addf %978, %979 : vector<5x5xf32>
    %cst_442 = arith.constant dense<0xFF800000> : vector<5xf32>
    %981 = vector.multi_reduction <maximumf>, %980, %cst_442 [1] : vector<5x5xf32> to vector<5xf32>
    %982 = vector.shape_cast %981 : vector<5xf32> to vector<5x1xf32>
    %983 = vector.broadcast %982 : vector<5x1xf32> to vector<5x5xf32>
    %984 = arith.cmpf oge, %980, %983 : vector<5x5xf32>
    %c5_i32_443 = arith.constant 5 : i32
    %985 = vector.broadcast %c5_i32_443 : i32 to vector<5x5xi32>
    %986 = arith.select %984, %654, %985 : vector<5x5xi1>, vector<5x5xi32>
    %cst_444 = arith.constant dense<2147483647> : vector<5xi32>
    %987 = vector.multi_reduction <minsi>, %986, %cst_444 [1] : vector<5x5xi32> to vector<5xi32>
    %988 = vector.shape_cast %987 : vector<5xi32> to vector<5x1xi32>
    %989 = vector.extract_strided_slice %910 {offsets = [0, 5], sizes = [5, 1], strides = [1, 1]} : vector<5x8xf32> to vector<5x1xf32>
    %cst_445 = arith.constant 0.000000e+00 : f32
    %990 = vector.broadcast %cst_445 : f32 to vector<5x1xf32>
    %991 = arith.select %977, %989, %990 : vector<5x1xf32>
    %992 = arith.addf %982, %991 : vector<5x1xf32>
    %c6_i32_446 = arith.constant 6 : i32
    %993 = arith.cmpi sgt, %907, %c6_i32_446 : i32
    %994 = arith.select %993, %650, %662 : vector<5x5xf32>
    %995 = vector.broadcast %992 : vector<5x1xf32> to vector<5x5xf32>
    %996 = arith.addf %994, %995 : vector<5x5xf32>
    %cst_447 = arith.constant dense<0xFF800000> : vector<5xf32>
    %997 = vector.multi_reduction <maximumf>, %996, %cst_447 [0] : vector<5x5xf32> to vector<5xf32>
    %998 = vector.shape_cast %997 : vector<5xf32> to vector<1x5xf32>
    %999 = vector.broadcast %998 : vector<1x5xf32> to vector<5x5xf32>
    %1000 = arith.cmpf oge, %996, %999 : vector<5x5xf32>
    %c5_i32_448 = arith.constant 5 : i32
    %1001 = vector.broadcast %c5_i32_448 : i32 to vector<5x5xi32>
    %1002 = arith.select %1000, %655, %1001 : vector<5x5xi1>, vector<5x5xi32>
    %cst_449 = arith.constant dense<2147483647> : vector<5xi32>
    %1003 = vector.multi_reduction <minsi>, %1002, %cst_449 [0] : vector<5x5xi32> to vector<5xi32>
    %1004 = vector.shape_cast %1003 : vector<5xi32> to vector<1x5xi32>
    %1005 = vector.extract_strided_slice %909 {offsets = [6, 0], sizes = [1, 5], strides = [1, 1]} : vector<8x5xf32> to vector<1x5xf32>
    %cst_450 = arith.constant 0.000000e+00 : f32
    %1006 = vector.broadcast %cst_450 : f32 to vector<1x5xf32>
    %1007 = arith.select %993, %1005, %1006 : vector<1x5xf32>
    %1008 = arith.addf %998, %1007 : vector<1x5xf32>
    %c7_i32_451 = arith.constant 7 : i32
    %1009 = arith.cmpi sgt, %907, %c7_i32_451 : i32
    %1010 = arith.select %1009, %651, %662 : vector<5x5xf32>
    %1011 = vector.broadcast %1008 : vector<1x5xf32> to vector<5x5xf32>
    %1012 = arith.addf %1010, %1011 : vector<5x5xf32>
    %cst_452 = arith.constant dense<0xFF800000> : vector<5xf32>
    %1013 = vector.multi_reduction <maximumf>, %1012, %cst_452 [1] : vector<5x5xf32> to vector<5xf32>
    %1014 = vector.shape_cast %1013 : vector<5xf32> to vector<5x1xf32>
    %1015 = vector.broadcast %1014 : vector<5x1xf32> to vector<5x5xf32>
    %1016 = arith.cmpf oge, %1012, %1015 : vector<5x5xf32>
    %c5_i32_453 = arith.constant 5 : i32
    %1017 = vector.broadcast %c5_i32_453 : i32 to vector<5x5xi32>
    %1018 = arith.select %1016, %654, %1017 : vector<5x5xi1>, vector<5x5xi32>
    %cst_454 = arith.constant dense<2147483647> : vector<5xi32>
    %1019 = vector.multi_reduction <minsi>, %1018, %cst_454 [1] : vector<5x5xi32> to vector<5xi32>
    %1020 = vector.shape_cast %1019 : vector<5xi32> to vector<5x1xi32>
    %1021 = vector.extract_strided_slice %910 {offsets = [0, 7], sizes = [5, 1], strides = [1, 1]} : vector<5x8xf32> to vector<5x1xf32>
    %cst_455 = arith.constant 0.000000e+00 : f32
    %1022 = vector.broadcast %cst_455 : f32 to vector<5x1xf32>
    %1023 = arith.select %1009, %1021, %1022 : vector<5x1xf32>
    %1024 = arith.addf %1014, %1023 : vector<5x1xf32>
    %1025 = arith.addf %1024, %663 : vector<5x1xf32>
    %cst_456 = arith.constant dense<0xFF800000> : vector<1xf32>
    %1026 = vector.multi_reduction <maximumf>, %1025, %cst_456 [0] : vector<5x1xf32> to vector<1xf32>
    %1027 = vector.shape_cast %1026 : vector<1xf32> to vector<1x1xf32>
    %1028 = vector.broadcast %1027 : vector<1x1xf32> to vector<5x1xf32>
    %1029 = arith.cmpf oge, %1025, %1028 : vector<5x1xf32>
    %c5_i32_457 = arith.constant 5 : i32
    %1030 = vector.broadcast %c5_i32_457 : i32 to vector<5x1xi32>
    %1031 = arith.select %1029, %657, %1030 : vector<5x1xi1>, vector<5x1xi32>
    %cst_458 = arith.constant dense<2147483647> : vector<1xi32>
    %1032 = vector.multi_reduction <minsi>, %1031, %cst_458 [0] : vector<5x1xi32> to vector<1xi32>
    %1033 = vector.shape_cast %1032 : vector<1xi32> to vector<1x1xi32>
    %1034 = vector.shape_cast %1027 : vector<1x1xf32> to vector<1x1xf32>
    %1035 = vector.broadcast %1034 : vector<1x1xf32> to vector<1x128xf32>
    %c1_459 = arith.constant 1 : index
    %c0_460 = arith.constant 0 : index
    %c0_461 = arith.constant 0 : index
    %1036 = vector.load %arg14[%c1_459, %c0_460, %c0_461] : memref<2x1x128xf32, #tpu.memory_space<vmem>>, vector<1x1x128xf32>
    %1037 = vector.shape_cast %1036 : vector<1x1x128xf32> to vector<1x128xf32>
    %1038 = vector.shape_cast %1035 : vector<1x128xf32> to vector<1x1x128xf32>
    tpu.vector_store %arg14[%c1_459, %c0_460, %c0_461], %1038 {strides = array<i32>} : memref<2x1x128xf32, #tpu.memory_space<vmem>>, vector<1x1x128xf32>,
    %1039 = vector.broadcast %908 : i32 to vector<1x128xi32>
    %1040 = arith.cmpi eq, %658, %1039 : vector<1x128xi32>
    %c0_i32_462 = arith.constant 0 : i32
    %1041 = vector.broadcast %c0_i32_462 : i32 to vector<1x128xi32>
    %1042 = vector.shape_cast %1033 : vector<1x1xi32> to vector<1x1xi32>
    %1043 = vector.broadcast %1042 : vector<1x1xi32> to vector<1x128xi32>
    %1044 = arith.select %1040, %1043, %1041 : vector<1x128xi1>, vector<1x128xi32>
    %1045 = vector.broadcast %1033 : vector<1x1xi32> to vector<5x1xi32>
    %1046 = arith.cmpi eq, %657, %1045 : vector<5x1xi32>
    %c0_i32_463 = arith.constant 0 : i32
    %1047 = vector.broadcast %c0_i32_463 : i32 to vector<5x1xi32>
    %1048 = arith.select %1046, %1020, %1047 : vector<5x1xi1>, vector<5x1xi32>
    %cst_464 = arith.constant dense<0> : vector<1xi32>
    %1049 = vector.multi_reduction <add>, %1048, %cst_464 [0] : vector<5x1xi32> to vector<1xi32>
    %1050 = vector.shape_cast %1049 : vector<1xi32> to vector<1x1xi32>
    %c7_i32_465 = arith.constant 7 : i32
    %1051 = arith.cmpi sge, %908, %c7_i32_465 : i32
    %c6_i32_466 = arith.constant 6 : i32
    %1052 = vector.broadcast %c6_i32_466 : i32 to vector<1x128xi32>
    %1053 = arith.cmpi eq, %658, %1052 : vector<1x128xi32>
    %1054 = vector.broadcast %1051 : i1 to vector<1x128xi1>
    %1055 = arith.andi %1053, %1054 : vector<1x128xi1>
    %1056 = vector.shape_cast %1050 : vector<1x1xi32> to vector<1x1xi32>
    %1057 = vector.broadcast %1056 : vector<1x1xi32> to vector<1x128xi32>
    %1058 = arith.select %1055, %1057, %1044 : vector<1x128xi1>, vector<1x128xi32>
    %1059 = vector.broadcast %1050 : vector<1x1xi32> to vector<1x5xi32>
    %1060 = arith.cmpi eq, %656, %1059 : vector<1x5xi32>
    %c0_i32_467 = arith.constant 0 : i32
    %1061 = vector.broadcast %c0_i32_467 : i32 to vector<1x5xi32>
    %1062 = arith.select %1060, %1004, %1061 : vector<1x5xi1>, vector<1x5xi32>
    %cst_468 = arith.constant dense<0> : vector<1xi32>
    %1063 = vector.multi_reduction <add>, %1062, %cst_468 [1] : vector<1x5xi32> to vector<1xi32>
    %1064 = vector.shape_cast %1063 : vector<1xi32> to vector<1x1xi32>
    %c6_i32_469 = arith.constant 6 : i32
    %1065 = arith.cmpi sge, %908, %c6_i32_469 : i32
    %c5_i32_470 = arith.constant 5 : i32
    %1066 = vector.broadcast %c5_i32_470 : i32 to vector<1x128xi32>
    %1067 = arith.cmpi eq, %658, %1066 : vector<1x128xi32>
    %1068 = vector.broadcast %1065 : i1 to vector<1x128xi1>
    %1069 = arith.andi %1067, %1068 : vector<1x128xi1>
    %1070 = vector.shape_cast %1064 : vector<1x1xi32> to vector<1x1xi32>
    %1071 = vector.broadcast %1070 : vector<1x1xi32> to vector<1x128xi32>
    %1072 = arith.select %1069, %1071, %1058 : vector<1x128xi1>, vector<1x128xi32>
    %1073 = vector.broadcast %1064 : vector<1x1xi32> to vector<5x1xi32>
    %1074 = arith.cmpi eq, %657, %1073 : vector<5x1xi32>
    %c0_i32_471 = arith.constant 0 : i32
    %1075 = vector.broadcast %c0_i32_471 : i32 to vector<5x1xi32>
    %1076 = arith.select %1074, %988, %1075 : vector<5x1xi1>, vector<5x1xi32>
    %cst_472 = arith.constant dense<0> : vector<1xi32>
    %1077 = vector.multi_reduction <add>, %1076, %cst_472 [0] : vector<5x1xi32> to vector<1xi32>
    %1078 = vector.shape_cast %1077 : vector<1xi32> to vector<1x1xi32>
    %c5_i32_473 = arith.constant 5 : i32
    %1079 = arith.cmpi sge, %908, %c5_i32_473 : i32
    %c4_i32_474 = arith.constant 4 : i32
    %1080 = vector.broadcast %c4_i32_474 : i32 to vector<1x128xi32>
    %1081 = arith.cmpi eq, %658, %1080 : vector<1x128xi32>
    %1082 = vector.broadcast %1079 : i1 to vector<1x128xi1>
    %1083 = arith.andi %1081, %1082 : vector<1x128xi1>
    %1084 = vector.shape_cast %1078 : vector<1x1xi32> to vector<1x1xi32>
    %1085 = vector.broadcast %1084 : vector<1x1xi32> to vector<1x128xi32>
    %1086 = arith.select %1083, %1085, %1072 : vector<1x128xi1>, vector<1x128xi32>
    %1087 = vector.broadcast %1078 : vector<1x1xi32> to vector<1x5xi32>
    %1088 = arith.cmpi eq, %656, %1087 : vector<1x5xi32>
    %c0_i32_475 = arith.constant 0 : i32
    %1089 = vector.broadcast %c0_i32_475 : i32 to vector<1x5xi32>
    %1090 = arith.select %1088, %972, %1089 : vector<1x5xi1>, vector<1x5xi32>
    %cst_476 = arith.constant dense<0> : vector<1xi32>
    %1091 = vector.multi_reduction <add>, %1090, %cst_476 [1] : vector<1x5xi32> to vector<1xi32>
    %1092 = vector.shape_cast %1091 : vector<1xi32> to vector<1x1xi32>
    %c4_i32_477 = arith.constant 4 : i32
    %1093 = arith.cmpi sge, %908, %c4_i32_477 : i32
    %c3_i32_478 = arith.constant 3 : i32
    %1094 = vector.broadcast %c3_i32_478 : i32 to vector<1x128xi32>
    %1095 = arith.cmpi eq, %658, %1094 : vector<1x128xi32>
    %1096 = vector.broadcast %1093 : i1 to vector<1x128xi1>
    %1097 = arith.andi %1095, %1096 : vector<1x128xi1>
    %1098 = vector.shape_cast %1092 : vector<1x1xi32> to vector<1x1xi32>
    %1099 = vector.broadcast %1098 : vector<1x1xi32> to vector<1x128xi32>
    %1100 = arith.select %1097, %1099, %1086 : vector<1x128xi1>, vector<1x128xi32>
    %1101 = vector.broadcast %1092 : vector<1x1xi32> to vector<5x1xi32>
    %1102 = arith.cmpi eq, %657, %1101 : vector<5x1xi32>
    %c0_i32_479 = arith.constant 0 : i32
    %1103 = vector.broadcast %c0_i32_479 : i32 to vector<5x1xi32>
    %1104 = arith.select %1102, %956, %1103 : vector<5x1xi1>, vector<5x1xi32>
    %cst_480 = arith.constant dense<0> : vector<1xi32>
    %1105 = vector.multi_reduction <add>, %1104, %cst_480 [0] : vector<5x1xi32> to vector<1xi32>
    %1106 = vector.shape_cast %1105 : vector<1xi32> to vector<1x1xi32>
    %c3_i32_481 = arith.constant 3 : i32
    %1107 = arith.cmpi sge, %908, %c3_i32_481 : i32
    %c2_i32_482 = arith.constant 2 : i32
    %1108 = vector.broadcast %c2_i32_482 : i32 to vector<1x128xi32>
    %1109 = arith.cmpi eq, %658, %1108 : vector<1x128xi32>
    %1110 = vector.broadcast %1107 : i1 to vector<1x128xi1>
    %1111 = arith.andi %1109, %1110 : vector<1x128xi1>
    %1112 = vector.shape_cast %1106 : vector<1x1xi32> to vector<1x1xi32>
    %1113 = vector.broadcast %1112 : vector<1x1xi32> to vector<1x128xi32>
    %1114 = arith.select %1111, %1113, %1100 : vector<1x128xi1>, vector<1x128xi32>
    %1115 = vector.broadcast %1106 : vector<1x1xi32> to vector<1x5xi32>
    %1116 = arith.cmpi eq, %656, %1115 : vector<1x5xi32>
    %c0_i32_483 = arith.constant 0 : i32
    %1117 = vector.broadcast %c0_i32_483 : i32 to vector<1x5xi32>
    %1118 = arith.select %1116, %940, %1117 : vector<1x5xi1>, vector<1x5xi32>
    %cst_484 = arith.constant dense<0> : vector<1xi32>
    %1119 = vector.multi_reduction <add>, %1118, %cst_484 [1] : vector<1x5xi32> to vector<1xi32>
    %1120 = vector.shape_cast %1119 : vector<1xi32> to vector<1x1xi32>
    %c2_i32_485 = arith.constant 2 : i32
    %1121 = arith.cmpi sge, %908, %c2_i32_485 : i32
    %c1_i32_486 = arith.constant 1 : i32
    %1122 = vector.broadcast %c1_i32_486 : i32 to vector<1x128xi32>
    %1123 = arith.cmpi eq, %658, %1122 : vector<1x128xi32>
    %1124 = vector.broadcast %1121 : i1 to vector<1x128xi1>
    %1125 = arith.andi %1123, %1124 : vector<1x128xi1>
    %1126 = vector.shape_cast %1120 : vector<1x1xi32> to vector<1x1xi32>
    %1127 = vector.broadcast %1126 : vector<1x1xi32> to vector<1x128xi32>
    %1128 = arith.select %1125, %1127, %1114 : vector<1x128xi1>, vector<1x128xi32>
    %1129 = vector.broadcast %1120 : vector<1x1xi32> to vector<5x1xi32>
    %1130 = arith.cmpi eq, %657, %1129 : vector<5x1xi32>
    %c0_i32_487 = arith.constant 0 : i32
    %1131 = vector.broadcast %c0_i32_487 : i32 to vector<5x1xi32>
    %1132 = arith.select %1130, %924, %1131 : vector<5x1xi1>, vector<5x1xi32>
    %cst_488 = arith.constant dense<0> : vector<1xi32>
    %1133 = vector.multi_reduction <add>, %1132, %cst_488 [0] : vector<5x1xi32> to vector<1xi32>
    %1134 = vector.shape_cast %1133 : vector<1xi32> to vector<1x1xi32>
    %c1_i32_489 = arith.constant 1 : i32
    %1135 = arith.cmpi sge, %908, %c1_i32_489 : i32
    %c0_i32_490 = arith.constant 0 : i32
    %1136 = vector.broadcast %c0_i32_490 : i32 to vector<1x128xi32>
    %1137 = arith.cmpi eq, %658, %1136 : vector<1x128xi32>
    %1138 = vector.broadcast %1135 : i1 to vector<1x128xi1>
    %1139 = arith.andi %1137, %1138 : vector<1x128xi1>
    %1140 = vector.shape_cast %1134 : vector<1x1xi32> to vector<1x1xi32>
    %1141 = vector.broadcast %1140 : vector<1x1xi32> to vector<1x128xi32>
    %1142 = arith.select %1139, %1141, %1128 : vector<1x128xi1>, vector<1x128xi32>
    %c1_491 = arith.constant 1 : index
    %c0_492 = arith.constant 0 : index
    %c0_493 = arith.constant 0 : index
    %1143 = vector.load %arg13[%c1_491, %c0_492, %c0_493] : memref<2x1x128xi32, #tpu.memory_space<vmem>>, vector<1x1x128xi32>
    %1144 = vector.shape_cast %1143 : vector<1x1x128xi32> to vector<1x128xi32>
    %1145 = vector.shape_cast %1142 : vector<1x128xi32> to vector<1x1x128xi32>
    tpu.vector_store %arg13[%c1_491, %c0_492, %c0_493], %1145 {strides = array<i32>} : memref<2x1x128xi32, #tpu.memory_space<vmem>>, vector<1x1x128xi32>,
    return
  }
  func.func @transform_0(%arg0: i32, %arg1: memref<2xi32, #tpu.memory_space<smem>>) -> (i32, i32, i32) {
    %c0_i32 = arith.constant 0 : i32
    %c0_i32_0 = arith.constant 0 : i32
    %c0_i32_1 = arith.constant 0 : i32
    return %arg0, %c0_i32, %c0_i32_0 : i32, i32, i32
  }
  func.func @transform_1(%arg0: i32, %arg1: memref<2xi32, #tpu.memory_space<smem>>) -> (i32, i32, i32) {
    %c0_i32 = arith.constant 0 : i32
    %c0_i32_0 = arith.constant 0 : i32
    %c0_i32_1 = arith.constant 0 : i32
    return %arg0, %c0_i32, %c0_i32_0 : i32, i32, i32
  }
  func.func @transform_2(%arg0: i32, %arg1: memref<2xi32, #tpu.memory_space<smem>>) -> (i32, i32, i32) {
    %c0_i32 = arith.constant 0 : i32
    %c0_i32_0 = arith.constant 0 : i32
    %c0_i32_1 = arith.constant 0 : i32
    %c0_i32_2 = arith.constant 0 : i32
    return %c0_i32, %c0_i32_0, %c0_i32_1 : i32, i32, i32
  }
  func.func @transform_3(%arg0: i32, %arg1: memref<2xi32, #tpu.memory_space<smem>>) -> (i32, i32, i32) {
    %c0_i32 = arith.constant 0 : i32
    %c0_i32_0 = arith.constant 0 : i32
    %c0_i32_1 = arith.constant 0 : i32
    %c0_i32_2 = arith.constant 0 : i32
    return %c0_i32, %c0_i32_0, %c0_i32_1 : i32, i32, i32
  }
  func.func @transform_4(%arg0: i32, %arg1: memref<2xi32, #tpu.memory_space<smem>>) -> (i32, i32, i32) {
    %c0_i32 = arith.constant 0 : i32
    %c0_i32_0 = arith.constant 0 : i32
    %c0_i32_1 = arith.constant 0 : i32
    %c0_i32_2 = arith.constant 0 : i32
    return %c0_i32, %c0_i32_0, %c0_i32_1 : i32, i32, i32
  }
  func.func @transform_5(%arg0: i32, %arg1: memref<2xi32, #tpu.memory_space<smem>>) -> (i32, i32, i32) {
    %c0_i32 = arith.constant 0 : i32
    %c0_i32_0 = arith.constant 0 : i32
    %c0_i32_1 = arith.constant 0 : i32
    %c0_i32_2 = arith.constant 0 : i32
    return %c0_i32, %c0_i32_0, %c0_i32_1 : i32, i32, i32
  }
  func.func @transform_6(%arg0: i32, %arg1: memref<2xi32, #tpu.memory_space<smem>>) -> (i32, i32, i32) {
    %c0_i32 = arith.constant 0 : i32
    %c0_i32_0 = arith.constant 0 : i32
    %c0_i32_1 = arith.constant 0 : i32
    %c0_i32_2 = arith.constant 0 : i32
    return %c0_i32, %c0_i32_0, %c0_i32_1 : i32, i32, i32
  }
  func.func @transform_7(%arg0: i32, %arg1: memref<2xi32, #tpu.memory_space<smem>>) -> (i32, i32, i32) {
    %c0_i32 = arith.constant 0 : i32
    %c0_i32_0 = arith.constant 0 : i32
    %c0_i32_1 = arith.constant 0 : i32
    %c0_i32_2 = arith.constant 0 : i32
    return %c0_i32, %c0_i32_0, %c0_i32_1 : i32, i32, i32
  }
  func.func @transform_8(%arg0: i32, %arg1: memref<2xi32, #tpu.memory_space<smem>>) -> (i32, i32) {
    %c0_i32 = arith.constant 0 : i32
    %c0_i32_0 = arith.constant 0 : i32
    %c0_i32_1 = arith.constant 0 : i32
    return %c0_i32, %c0_i32_0 : i32, i32
  }
  func.func @transform_9(%arg0: i32, %arg1: memref<2xi32, #tpu.memory_space<smem>>) -> (i32, i32) {
    %c0_i32 = arith.constant 0 : i32
    %c0_i32_0 = arith.constant 0 : i32
    %c0_i32_1 = arith.constant 0 : i32
    return %c0_i32, %c0_i32_0 : i32, i32
  }
  func.func @transform_10(%arg0: i32, %arg1: memref<2xi32, #tpu.memory_space<smem>>) -> (i32, i32, i32) {
    %c0_i32 = arith.constant 0 : i32
    %c0_i32_0 = arith.constant 0 : i32
    %c0_i32_1 = arith.constant 0 : i32
    return %arg0, %c0_i32, %c0_i32_0 : i32, i32, i32
  }
  func.func @transform_11(%arg0: i32, %arg1: memref<2xi32, #tpu.memory_space<smem>>) -> (i32, i32, i32) {
    %c0_i32 = arith.constant 0 : i32
    %c0_i32_0 = arith.constant 0 : i32
    %c0_i32_1 = arith.constant 0 : i32
    return %arg0, %c0_i32, %c0_i32_0 : i32, i32, i32
  }
  func.func @transform_12(%arg0: i32, %arg1: memref<2xi32, #tpu.memory_space<smem>>) -> (i32, i32, i32) {
    %c0_i32 = arith.constant 0 : i32
    %c0_i32_0 = arith.constant 0 : i32
    %c0_i32_1 = arith.constant 0 : i32
    return %arg0, %c0_i32, %c0_i32_0 : i32, i32, i32
  }
}

</mosaic_0001>

<bundles_post_ra>
// kernel: srl_forward.1
= control target key start
LH: loop header
LB: loop body
LE: loop exit
PB: predicated region body
PF: predicated region fallthrough
CT: control target
= control target key end

     0   :  { %s10040_s0 = inlined_call_operand.vmem [shape: s32[2], index: 0, kind: input, shape index: {}]   ;;  %s10041_s1 = inlined_call_operand.vmem [shape: f32[2,8,32], index: 1, kind: input, shape index: {}]   ;;  %s10042_s2 = inlined_call_operand.vmem [shape: f32[2,1,8], index: 2, kind: input, shape index: {}]   ;;  %s10043_s3 = inlined_call_operand.vmem [shape: f32[24,32,8], index: 3, kind: input, shape index: {}]   ;;  %s10044_s4 = inlined_call_operand.vmem [shape: f32[24,1,8], index: 4, kind: input, shape index: {}]   ;;  %s10045_s5 = inlined_call_operand.vmem [shape: f32[2,32,32], index: 5, kind: input, shape index: {}]   ;;  %s10046_s6 = inlined_call_operand.vmem [shape: f32[2,32,64], index: 6, kind: input, shape index: {}]   ;;  %s10047_s7 = inlined_call_operand.vmem [shape: f32[2,64,32], index: 7, kind: input, shape index: {}]   ;;  %s10048_s8 = inlined_call_operand.vmem [shape: f32[2,8,128], index: 8, kind: input, shape index: {}]   ;;  %s10049_s9 = inlined_call_operand.vmem [shape: f32[32,128], index: 9, kind: input, shape index: {}]   ;;  %s10050_s10 = inlined_call_operand.vmem [shape: f32[24,128], index: 10, kind: input, shape index: {}]   ;;  %s10051_s11 = inlined_call_operand.vmem [shape: f32[2,8,128], index: 11, kind: output, shape index: {0}]   ;;  %s10052_s12 = inlined_call_operand.hbm [shape: s32[2,1,128], index: 12, kind: output, shape index: {1}]   ;;  %s10053_s13 = inlined_call_operand.vmem [shape: f32[2,1,128], index: 13, kind: output, shape index: {2}]  }
   0x1   :  { %s19_s27 = sshll.u32 %s10040_s0, 4  ;;  %s20_s27 = int_to_ptr.vmem [resolvable:$true] %s19_s27 }
   0x2   :  { %s8212_s28 = scalar_lea.vmem %s20_s27, 16  ;;  %p8217_p1 = scmp.lt.s32.totalorder %s20_s27, %s20_s27 }
   0x3   :  { %p8213_p0 = scmp.ne.s32.totalorder %s20_s27, %s8212_s28  ;;  %p8218_p2 = scmp.lt.s32.totalorder %s8212_s28, %s8212_s28 }
   0x5   :  { %p8219_p3 = por %p8218_p2, %p8217_p1 }
   0x7   :  { %p8220_p4 = pnand %p8219_p3, %p8213_p0 }
   0x9   :  { %8223 = shalt.err (!%p8220_p4)  }
   0xa   :  { %s8248_s29 = smov [#allocation3]  }
   0xb   :  { %22 = dma.vmem_to_smem %s20_s27, 16, %s8248_s29, [#allocation2] }
   0xc   :  { %8244 = dma.done.wait [#allocation2], 16 }
   0xd   :  { %8245 = vsyncadd [#allocation2], 4294967280 }
   0xe   :  { %24 = sfence }
   0xf   :  { %v7008_v0 = vld [vmem:[%s10043_s3 + $0x98] sm:$0xff]  ;;  %v7007_v2 = vld [vmem:[%s10043_s3 + $0x90] sm:$0xff]  ;;  %v7006_v4 = vld [vmem:[%s10043_s3 + $0x88] sm:$0xff] }
  0x10   :  { %v59_v1 = vld [vmem:[%s10043_s3 + $0x18] sm:$0xff]  ;;  %7589 = vmatprep.subr.mxu1 %v7008_v0  ;;  %v58_v3 = vld [vmem:[%s10043_s3 + $0x10] sm:$0xff]  ;;  %v57_v5 = vld [vmem:[%s10043_s3 + $0x8] sm:$0xff] }
  0x11   :  { %7578 = vmatprep.subr.mxu0 %v59_v1  ;;  %7590 = vmatpush3.msra.mxu1 %v7008_v0  ;;  %v7005_v6 = vld [vmem:[%s10043_s3 + $0x80] sm:$0xff] }
  0x12   :  { %7579 = vmatpush3.msra.mxu0 %v59_v1  ;;  %7591 = vmatprep.subr.mxu1 %v7007_v2  ;;  %v56_v7 = vld [vmem:[%s10043_s3] sm:$0xff] }
  0x13   :  { %7580 = vmatprep.subr.mxu0 %v58_v3  ;;  %7592 = vmatpush3.msra.mxu1 %v7007_v2 }
  0x14   :  { %7581 = vmatpush3.msra.mxu0 %v58_v3 }
  0x15   :  { %25 = vsyncpa [#allocation5], 0  ;;  %7593 = vmatprep.subr.mxu1 %v7006_v4  ;;  %7582 = vmatprep.subr.mxu0 %v57_v5  ;;  %v8360_v8 = vld [vmem:[%s10041_s1] sm:$0xff]  ;;  %vm77_vm0 = vcmask 261120   ;;  %v8365_v9 = vld [vmem:[%s10041_s1 + $0x8] sm:$0xff]  ;;  %v8249_v14 = vmov 0.0   ;;  %v326_v30 = vlaneseq }
  0x16   :  { %7594 = vmatpush3.msra.mxu1 %v7006_v4  ;;  %7583 = vmatpush3.msra.mxu0 %v57_v5  ;;  %v7012_v10 = vld [vmem:[%s10043_s3 + $0x118] sm:$0xff]  ;;  %v7011_v11 = vld [vmem:[%s10043_s3 + $0x110] sm:$0xff]  ;;  %v7010_v12 = vld [vmem:[%s10043_s3 + $0x108] sm:$0xff]  ;;  %vm8250_vm1 = vmmov 0   ;;  %vm331_vm2 = vcmask 64512   ;;  %vm2903_vm5 = vcmask 523264  }
  0x17   :  { %7595 = vmatprep.subr.mxu1 %v7005_v6  ;;  %7584 = vmatprep.subr.mxu0 %v56_v7  ;;  %v7009_v13 = vld [vmem:[%s10043_s3 + $0x100] sm:$0xff]  ;;  %v7021_v25 = vld [vmem:[%s10044_s4 + $0x8] ss:$0 sm:$0xff]  ;;  %v8425_v33 = vshrl.u32 %v326_v30, 7  ;;  %v8251_v34 = vmov -1e+09  }
  0x18   :  { %7596 = vmatpush3.msra.mxu1 %v7005_v6  ;;  %7597 = vmatprep.mubr.msk.f32.mxu1 %vm77_vm0, %v8360_v8  ;;  %v7017_v15 = vld [vmem:[%s10044_s4 + $0x4] ss:$0 sm:$0xff]  ;;  %v7013_v16 = vld [vmem:[%s10044_s4] ss:$0 sm:$0xff]  ;;  %v7004_v32 = vld [vmem:[%s10042_s2 + $0x1] sm:$0x1] }
  0x19   :  { %7585 = vmatpush3.msra.mxu0 %v56_v7  ;;  %7586 = vmatprep.mubr.msk.f32.mxu0 %vm77_vm0, %v8360_v8  ;;  %v49_v31 = vld [vmem:[%s10042_s2] sm:$0x1]  ;;  %vm54_vm4 = vcmp.gt.f32.partialorder %v7004_v32, 0.0  ;;  %v8429_v36 = vsub.s32 0, %v8425_v33  ;;  %v7033_v58 = vld [vmem:[%s10043_s3 + $0x38] sm:$0xff]  ;;  %v7032_v59 = vld [vmem:[%s10043_s3 + $0x30] sm:$0xff] }
  0x1a   :  { %7598 = vmatmul.mubr.msk.f32.vlgmr.msra.gmra.mxu1 %vm77_vm0, %v8365_v9  ;;  %7587 = vmatmul.mubr.msk.f32.vlgmr.msra.gmra.mxu0 %vm77_vm0, %v8365_v9  ;;  %vm50_vm3 = vcmp.gt.f32.partialorder %v49_v31, 0.0  ;;  %v55_v37 = vsel %vm54_vm4, 0.0, %v8251_v34  ;;  %v7031_v60 = vld [vmem:[%s10043_s3 + $0x28] sm:$0xff]  ;;  %v7030_v61 = vld [vmem:[%s10043_s3 + $0x20] sm:$0xff]  ;;  %v7037_v2 = vld [vmem:[%s10043_s3 + $0xb8] sm:$0xff]  ;;  %s9265_s30 = sld [smem:[#allocation3 + $0x1]] }
  0x1b   :  { %7600 = vmatprep.subr.mxu0 %v7012_v10  ;;  %7608 = vmatprep.mubr.msk.f32.mxu0 %vm77_vm0, %v8360_v8  ;;  %v51_v35 = vsel %vm50_vm3, 0.0, %v8251_v34  ;;  %v8436_v40 = vrot.slane %v55_v37, %v8429_v36  ;;  %v7036_v5 = vld [vmem:[%s10043_s3 + $0xb0] sm:$0xff]  ;;  %v7035_v6 = vld [vmem:[%s10043_s3 + $0xa8] sm:$0xff]  ;;  %v7034_v7 = vld [vmem:[%s10043_s3 + $0xa0] sm:$0xff]  ;;  %s9267_s2 = sld [smem:[#allocation3]]  ;;  %vm6171_vm9 = vcmask 36864  }
  0x1c   :  { %7601 = vmatpush3.msra.mxu0 %v7012_v10  ;;  %7611 = vmatprep.subr.mxu1 %v8249_v14  ;;  %v8433_v38 = vrot.slane %v51_v35, %v8429_v36  ;;  %v7041_v10 = vld [vmem:[%s10043_s3 + $0x138] sm:$0xff]  ;;  %s8255_s14 = smov 7  }
  0x1d   :  { %7602 = vmatprep.subr.mxu0 %v7011_v11  ;;  %7613 = vmatprep.mubr.msk.f32.mxu1 %vm8250_vm1, %v8249_v14 }
  0x1e   :  { %7603 = vmatpush3.msra.mxu0 %v7011_v11  ;;  %v7040_v11 = vld [vmem:[%s10043_s3 + $0x130] sm:$0xff] }
  0x1f   :  { %7604 = vmatprep.subr.mxu0 %v7010_v12 }
  0x20   :  { %7605 = vmatpush3.msra.mxu0 %v7010_v12  ;;  %v7039_v12 = vld [vmem:[%s10043_s3 + $0x128] sm:$0xff]  ;;  %p6595_p5 = scmp.gt.s32.totalorder %s9265_s30, 1  ;;  %p6627_p8 = scmp.gt.s32.totalorder %s9265_s30, 2 }
  0x21   :  { %7606 = vmatprep.subr.mxu0 %v7009_v13  ;;  %p6161_p6 = scmp.gt.s32.totalorder %s9267_s2, 1  ;;  %p6194_p7 = scmp.gt.s32.totalorder %s9267_s2, 2 }
  0x22   :  { %7607 = vmatpush3.msra.mxu0 %v7009_v13  ;;  %v7038_v13 = vld [vmem:[%s10043_s3 + $0x120] sm:$0xff]  ;;  %s6628_s21 = scalar_select %p6627_p8, 1, 0 }
  0x23   :  { %7609 = vmatmul.mubr.msk.f32.vlgmr.msra.gmra.mxu0 %vm77_vm0, %v8365_v9  ;;  %7621 = vmatprep.subr.mxu0 %v8249_v14  ;;  %p6226_p9 = scmp.gt.s32.totalorder %s9267_s2, 3  ;;  %p6659_p10 = scmp.gt.s32.totalorder %s9265_s30, 3 }
  0x24   :  { %7623 = vmatprep.mubr.msk.f32.mxu0 %vm8250_vm1, %v8249_v14  ;;  %p6258_p11 = scmp.gt.s32.totalorder %s9267_s2, 4  ;;  %p6691_p12 = scmp.gt.s32.totalorder %s9265_s30, 4 }
  0x25   :  { %s6227_s23 = scalar_select %p6226_p9, 1, 0 }
  0x26   :  { %s6660_s24 = scalar_select %p6659_p10, 1, 0 }
  0x27   :  { %s6259_s25 = scalar_select %p6258_p11, 1, 0 }
  0x28   :  { %s6692_s26 = scalar_select %p6691_p12, 1, 0 }
  0x29   :  { %p6290_p13 = scmp.gt.s32.totalorder %s9267_s2, 5  ;;  %p6723_p0 = scmp.gt.s32.totalorder %s9265_s30, 5 }
  0x2a   :  { %p6322_p1 = scmp.gt.s32.totalorder %s9267_s2, 6  ;;  %p6755_p2 = scmp.gt.s32.totalorder %s9265_s30, 6 }
  0x2b   :  { %s6291_s27 = scalar_select %p6290_p13, 1, 0 }
  0x2c   :  { %s6756_s28 = scalar_select %p6755_p2, 1, 0 }
  0x2d   :  { %p6354_p3 = scmp.gt.s32.totalorder %s9267_s2, 7  ;;  %p6787_p4 = scmp.gt.s32.totalorder %s9265_s30, 7 }
  0x2e   :  { %s9767_s16 = sadd.s32 4294967295, %s9267_s2  ;;  %s9779_s0 = sadd.s32 4294967295, %s9265_s30 }
  0x2f   :  { %s6788_s29 = scalar_select %p6787_p4, 1, 0 }
  0x30   :  { %p6497_p8 = scmp.ge.s32.totalorder %s9767_s16, 4  ;;  %p6513_p9 = scmp.ge.s32.totalorder %s9767_s16, 3 }
  0x31   :  { %p6861_p10 = scmp.ge.s32.totalorder %s9779_s0, 7  ;;  %p6885_p11 = scmp.ge.s32.totalorder %s9779_s0, 6 }
  0x32   :  { %s9785_s17 = scalar_select %p6497_p8, 1, 0 }
  0x33   :  { %s9789_s30 = scalar_select %p6513_p9, 1, 0 }
  0x34   :  { %p6900_p12 = scmp.ge.s32.totalorder %s9779_s0, 5  ;;  %p6921_p13 = scmp.ge.s32.totalorder %s9779_s0, 4 }
  0x35   :  { %s9794_s18 = scalar_select %p6861_p10, 1, 0 }
  0x36   :  { %s9798_s19 = scalar_select %p6885_p11, 1, 0 }
  0x37   :  { %s9811_s20 = scalar_select %p6900_p12, 1, 0 }
  0x38   :  { %p6972_p2 = scmp.ge.s32.totalorder %s9779_s0, 1  ;;  %p6551_p4 = scmp.ge.s32.totalorder %s9767_s16, 1 }
  0x3a   :  { %s9859_s22 = scalar_select %p6972_p2, 1, 0 }
  0xda   :  { %v7599_v17 = vpop.f32.mrf.mxu1  ;;  %v7588_v18 = vpop.f32.mrf.mxu0 }
  0xdb   :  { %v239_v19 = vadd.f32 %v7599_v17, %v7017_v15  ;;  %v156_v20 = vadd.f32 %v7588_v18, %v7013_v16 }
  0xdc   :  { %v233_v21 = vpop.f32.mrf.mxu1  ;;  %v150_v23 = vpop.f32.mrf.mxu0 }
  0xdd   :  { %v234_v22 = vadd.f32 %v7017_v15, %v233_v21  ;;  %7622 = vmatpush3.xpose.msk.msra.mxu0 %vm331_vm2, %v239_v19  ;;  %v151_v24 = vadd.f32 %v7013_v16, %v150_v23  ;;  %v7047_v19 = vld [vmem:[%s10044_s4 + $0x5] ss:$0 sm:$0xff]  ;;  %v7043_v21 = vld [vmem:[%s10044_s4 + $0x1] ss:$0 sm:$0xff] }
  0xde   :  { %7631 = vmatprep.subr.mxu0 %v7033_v58 }
  0xdf   :  { %7612 = vmatpush3.xpose.msk.msra.mxu1 %vm331_vm2, %v234_v22 }
  0xe0   :  { %7624 = vmatmul.mubr.msk.f32.vlgmr.msra.gmra.mxu0 %vm331_vm2, %v156_v20  ;;  %7616 = vmatprep.subr.mxu1 %v8249_v14 }
  0xe1   :  { %7639 = vmatprep.mubr.msk.f32.mxu0 %vm77_vm0, %v8360_v8  ;;  %7632 = vmatpush3.msra.mxu0 %v7033_v58 }
  0xe2   :  { %7614 = vmatmul.mubr.msk.f32.vlgmr.msra.gmra.mxu1 %vm331_vm2, %v151_v24  ;;  %7633 = vmatprep.subr.mxu0 %v7032_v59 }
  0xe3   :  { %7618 = vmatprep.mubr.msk.f32.mxu1 %vm8250_vm1, %v8249_v14  ;;  %v7610_v26 = vpop.f32.mrf.mxu0  ;;  %7634 = vmatpush3.msra.mxu0 %v7032_v59 }
  0xe4   :  { %v8415_v27 = vadd.f32 %v7610_v26, %v7021_v25  ;;  %7635 = vmatprep.subr.mxu0 %v7031_v60 }
  0xe5   :  { %v316_v28 = vpop.f32.mrf.mxu0  ;;  %7636 = vmatpush3.msra.mxu0 %v7031_v60 }
  0xe6   :  { %v317_v29 = vadd.f32 %v7021_v25, %v316_v28  ;;  %7637 = vmatprep.subr.mxu0 %v7030_v61 }
  0xe7   :  { %7638 = vmatpush3.msra.mxu0 %v7030_v61 }
  0xe8   :  { %7617 = vmatpush3.msra.mxu1 %v317_v29  ;;  %7640 = vmatmul.mubr.msk.f32.vlgmr.msra.gmra.mxu0 %vm77_vm0, %v8365_v9  ;;  %v7051_v29 = vld [vmem:[%s10044_s4 + $0x9] ss:$0 sm:$0xff] }
  0xe9   :  { %7626 = vmatprep.subr.mxu1 %v8249_v14  ;;  %7661 = vmatprep.mubr.msk.f32.mxu0 %vm77_vm0, %v8360_v8 }
  0xea   :  { %7653 = vmatprep.subr.mxu0 %v7041_v10 }
  0xeb   :  { %7654 = vmatpush3.msra.mxu0 %v7041_v10 }
  0xec   :  { %7655 = vmatprep.subr.mxu0 %v7040_v11 }
  0xed   :  { %7656 = vmatpush3.msra.mxu0 %v7040_v11 }
  0xee   :  { %7657 = vmatprep.subr.mxu0 %v7039_v12 }
  0xef   :  { %7658 = vmatpush3.msra.mxu0 %v7039_v12  ;;  %v7066_v12 = vld [vmem:[%s10043_s3 + $0x50] sm:$0xff] }
  0xf0   :  { %7659 = vmatprep.subr.mxu0 %v7038_v13 }
  0xf1   :  { %7660 = vmatpush3.msra.mxu0 %v7038_v13 }
  0xf2   :  { %7662 = vmatmul.mubr.msk.f32.vlgmr.msra.gmra.mxu0 %vm77_vm0, %v8365_v9  ;;  %7674 = vmatprep.subr.mxu0 %v8249_v14 }
  0xf3   :  { %7676 = vmatprep.mubr.msk.f32.mxu0 %vm8250_vm1, %v8249_v14 }
 0x1a0   :  { %v570_v39 = vpop.f32.mrf.mxu0 }
 0x1a1   :  { %v571_v45 = vadd.f32 %v570_v39, %v8436_v40 }
 0x1a2   :  { %v404_v41 = vpop.f32.mrf.mxu1  ;;  %v7625_v42 = vpop.f32.mrf.mxu0 }
 0x1a3   :  { %v405_v43 = vadd.f32 %v404_v41, %v8433_v38  ;;  %v574_v47 = vsel %vm331_vm2, %v571_v45, -inf }
 0x1a4   :  { %v7615_v44 = vpop.f32.mrf.mxu1 }
 0x1a5   :  { %v408_v46 = vsel %vm331_vm2, %v405_v43, -inf }
 0x1a6   :  { %409 = vmax.xlane.f32.xlu0 %v408_v46 }
 0x1a8   :  { %v7641_v20 = vpop.f32.mrf.mxu0 }
 0x1a9   :  { %v754_v24 = vadd.f32 %v7641_v20, %v7043_v21 }
 0x1aa   :  { %575 = vmax.xlane.f32.xlu0 %v574_v47 }
 0x22f   :  { %v410_v48 = vpop.xlane.xlu0 %409 }
 0x230   :  { %v411_v49 = vsub.f32 %v405_v43, %v410_v48 }
 0x232   :  { %v412_v50 = vmul.f32 1.442695, %v411_v49 }
 0x233   :  { %v576_v51 = vpop.xlane.xlu0 %575 }
 0x234   :  { %8132 = vpow2.f32 %v412_v50  ;;  %v577_v52 = vsub.f32 %v571_v45, %v576_v51 }
 0x236   :  { %v578_v53 = vmul.f32 1.442695, %v577_v52 }
 0x238   :  { %8134 = vpow2.f32 %v578_v53 }
 0x241   :  { %v8133_v54 = vpop.eup %8132 }
 0x242   :  { %v414_v55 = vsel %vm331_vm2, %v8133_v54, 0.0 }
 0x243   :  { %415 = vadd.xlane.f32.xlu1 %v414_v55 }
 0x245   :  { %v8135_v56 = vpop.eup %8134 }
 0x246   :  { %v580_v57 = vsel %vm331_vm2, %v8135_v56, 0.0 }
 0x247   :  { %581 = vadd.xlane.f32.xlu1 %v580_v57 }
 0x2cc   :  { %v416_v62 = vpop.xlane.xlu1 %415 }
 0x2cd   :  { %8136 = vrcp.f32 %v416_v62 }
 0x2d0   :  { %v582_v63 = vpop.xlane.xlu1 %581 }
 0x2d1   :  { %8138 = vrcp.f32 %v582_v63  ;;  %v658_v63 = vld [vmem:[%s10045_s5] sm:$0xff] }
 0x2da   :  { %v8137_v0 = vpop.eup %8136 }
 0x2db   :  { %v418_v1 = vmul.f32 %v8137_v0, %v8133_v54 }
 0x2dd   :  { %7619 = vmatmul.mubr.msk.f32.vlgmr.msra.gmra.mxu1 %vm331_vm2, %v418_v1  ;;  %v7071_v1 = vld [vmem:[%s10043_s3 + $0xd8] sm:$0xff] }
 0x2de   :  { %v8139_v3 = vpop.eup %8138  ;;  %7627 = vmatpush3.msra.mxu1 %v8415_v27  ;;  %7628 = vmatprep.mubr.msk.f32.mxu1 %vm8250_vm1, %v8249_v14  ;;  %v748_v27 = vpop.f32.mrf.mxu0 }
 0x2df   :  { %7642 = vmatprep.subr.mxu1 %v7037_v2  ;;  %v584_v4 = vmul.f32 %v8139_v3, %v8135_v56  ;;  %v749_v28 = vadd.f32 %v7043_v21, %v748_v27  ;;  %v7070_v3 = vld [vmem:[%s10043_s3 + $0xd0] sm:$0xff]  ;;  %v7073_v21 = vld [vmem:[%s10043_s3 + $0x148] sm:$0xff] }
 0x2e0   :  { %v7663_v31 = vpop.f32.mrf.mxu0 }
 0x2e1   :  { %7629 = vmatmul.mubr.msk.f32.vlgmr.msra.gmra.mxu1 %vm331_vm2, %v584_v4  ;;  %v920_v32 = vadd.f32 %v7663_v31, %v7051_v29  ;;  %v7069_v4 = vld [vmem:[%s10043_s3 + $0xc8] sm:$0xff]  ;;  %v7077_v31 = vld [vmem:[%s10044_s4 + $0x2] ss:$0 sm:$0xff] }
 0x2e2   :  { %7643 = vmatpush3.msra.mxu1 %v7037_v2  ;;  %7650 = vmatprep.mubr.msk.f32.mxu1 %vm77_vm0, %v8360_v8  ;;  %v914_v35 = vpop.f32.mrf.mxu0  ;;  %v1243_v2 = vld [vmem:[%s10045_s5 + $0x8] sm:$0xff] }
 0x2e3   :  { %7644 = vmatprep.subr.mxu1 %v7036_v5  ;;  %v915_v37 = vadd.f32 %v7051_v29, %v914_v35 }
 0x2e4   :  { %7645 = vmatpush3.msra.mxu1 %v7036_v5  ;;  %v7067_v5 = vld [vmem:[%s10043_s3 + $0x58] sm:$0xff] }
 0x2e5   :  { %7646 = vmatprep.subr.mxu1 %v7035_v6 }
 0x2e6   :  { %7647 = vmatpush3.msra.mxu1 %v7035_v6  ;;  %v7068_v6 = vld [vmem:[%s10043_s3 + $0xc0] sm:$0xff] }
 0x2e7   :  { %7648 = vmatprep.subr.mxu1 %v7034_v7 }
 0x2e8   :  { %7649 = vmatpush3.msra.mxu1 %v7034_v7 }
 0x2e9   :  { %7651 = vmatmul.mubr.msk.f32.vlgmr.msra.gmra.mxu1 %vm77_vm0, %v8365_v9  ;;  %7664 = vmatprep.subr.mxu1 %v8249_v14 }
 0x2ea   :  { %7666 = vmatprep.mubr.msk.f32.mxu1 %vm8250_vm1, %v8249_v14 }
 0x39d   :  { %v8501_v15 = vpop.f32.mrf.mxu1 }
 0x39f   :  { %v7620_v16 = vpop.f32.mrf.mxu1 }
 0x3a0   :  { %v7064_v16 = vld [vmem:[%s10043_s3 + $0x40] sm:$0xff] }
 0x3a1   :  { %v8503_v17 = vpop.f32.mrf.mxu1 }
 0x3a3   :  { %v7630_v18 = vpop.f32.mrf.mxu1 }
 0x3a9   :  { %v7652_v22 = vpop.f32.mrf.mxu1 }
 0x3aa   :  { %v837_v23 = vadd.f32 %v7652_v22, %v7047_v19 }
 0x3ab   :  { %v831_v25 = vpop.f32.mrf.mxu1 }
 0x3ac   :  { %v832_v26 = vadd.f32 %v7047_v19, %v831_v25  ;;  %7675 = vmatpush3.xpose.msk.msra.mxu0 %vm331_vm2, %v837_v23  ;;  %v7074_v19 = vld [vmem:[%s10043_s3 + $0x150] sm:$0xff]  ;;  %v7081_v23 = vld [vmem:[%s10044_s4 + $0x6] ss:$0 sm:$0xff] }
 0x3ad   :  { %7684 = vmatprep.subr.mxu0 %v1243_v2 }
 0x3ae   :  { %7665 = vmatpush3.xpose.msk.msra.mxu1 %vm331_vm2, %v832_v26 }
 0x3af   :  { %7677 = vmatmul.mubr.msk.f32.vlgmr.msra.gmra.mxu0 %vm331_vm2, %v754_v24  ;;  %7669 = vmatprep.subr.mxu1 %v8249_v14  ;;  %v7072_v24 = vld [vmem:[%s10043_s3 + $0x140] sm:$0xff] }
 0x3b0   :  { %7685 = vmatpush3.msra.mxu0 %v1243_v2 }
 0x3b1   :  { %7667 = vmatmul.mubr.msk.f32.vlgmr.msra.gmra.mxu1 %vm331_vm2, %v749_v28  ;;  %7694 = vmatprep.subr.mxu0 %v7067_v5 }
 0x3b2   :  { %7671 = vmatprep.mubr.msk.f32.mxu1 %vm8250_vm1, %v8249_v14  ;;  %7670 = vmatpush3.msra.mxu1 %v915_v37 }
 0x3b3   :  { %7679 = vmatprep.subr.mxu1 %v8249_v14 }
 0x46f   :  { %v1155_v39 = vpop.f32.mrf.mxu0 }
 0x470   :  { %v1156_v41 = vadd.f32 %v1155_v39, %v8436_v40 }
 0x471   :  { %v995_v42 = vpop.f32.mrf.mxu1  ;;  %v7678_v43 = vpop.f32.mrf.mxu0 }
 0x472   :  { %v996_v44 = vadd.f32 %v995_v42, %v8433_v38  ;;  %v1159_v45 = vsel %vm331_vm2, %v1156_v41, -inf }
 0x473   :  { %1160 = vmax.xlane.f32.xlu1 %v1159_v45  ;;  %v7668_v46 = vpop.f32.mrf.mxu1 }
 0x474   :  { %v999_v47 = vsel %vm331_vm2, %v996_v44, -inf }
 0x475   :  { %1000 = vmax.xlane.f32.xlu0 %v999_v47 }
 0x4fc   :  { %v1161_v48 = vpop.xlane.xlu1 %1160 }
 0x4fd   :  { %v1162_v49 = vsub.f32 %v1156_v41, %v1161_v48  ;;  %v7085_v41 = vld [vmem:[%s10044_s4 + $0xa] ss:$0 sm:$0xff] }
 0x4fe   :  { %v1001_v50 = vpop.xlane.xlu0 %1000 }
 0x4ff   :  { %v1163_v51 = vmul.f32 1.442695, %v1162_v49  ;;  %v1002_v52 = vsub.f32 %v996_v44, %v1001_v50 }
 0x501   :  { %8140 = vpow2.f32 %v1163_v51  ;;  %v1003_v53 = vmul.f32 1.442695, %v1002_v52 }
 0x503   :  { %8142 = vpow2.f32 %v1003_v53 }
 0x50e   :  { %v8141_v54 = vpop.eup %8140 }
 0x50f   :  { %v1165_v55 = vsel %vm331_vm2, %v8141_v54, 0.0 }
 0x510   :  { %v8143_v56 = vpop.eup %8142  ;;  %1166 = vadd.xlane.f32.xlu1 %v1165_v55 }
 0x511   :  { %v1005_v57 = vsel %vm331_vm2, %v8143_v56, 0.0 }
 0x512   :  { %1006 = vadd.xlane.f32.xlu0 %v1005_v57 }
 0x599   :  { %v1167_v58 = vpop.xlane.xlu1 %1166 }
 0x59b   :  { %v1007_v59 = vpop.xlane.xlu0 %1006 }
 0x59c   :  { %8144 = vrcp.f32 %v1007_v59 }
 0x59d   :  { %8146 = vrcp.f32 %v1167_v58 }
 0x5a9   :  { %v8145_v60 = vpop.eup %8144 }
 0x5aa   :  { %v1009_v61 = vmul.f32 %v8145_v60, %v8143_v56  ;;  %v8147_v62 = vpop.eup %8146 }
 0x5ab   :  { %v1169_v0 = vmul.f32 %v8147_v62, %v8141_v54 }
 0x5ac   :  { %7672 = vmatmul.mubr.msk.f32.vlgmr.msra.gmra.mxu1 %vm331_vm2, %v1009_v61 }
 0x5ad   :  { %7680 = vmatpush3.msra.mxu1 %v920_v32  ;;  %7681 = vmatprep.mubr.msk.f32.mxu1 %vm8250_vm1, %v8249_v14 }
 0x5ae   :  { %7689 = vmatprep.subr.mxu1 %v658_v63 }
 0x5b0   :  { %7682 = vmatmul.mubr.msk.f32.vlgmr.msra.gmra.mxu1 %vm331_vm2, %v1169_v0 }
 0x5b1   :  { %7691 = vmatprep.mubr.msk.f32.mxu1 %vm331_vm2, %v8501_v15  ;;  %7690 = vmatpush3.msra.mxu1 %v658_v63  ;;  %v7065_v15 = vld [vmem:[%s10043_s3 + $0x48] sm:$0xff] }
 0x5b2   :  { %7705 = vmatprep.subr.mxu1 %v7071_v1 }
 0x5b4   :  { %7692 = vmatmul.mubr.msk.f32.vlgmr.msra.gmra.mxu1 %vm331_vm2, %v8503_v17  ;;  %v7075_v17 = vld [vmem:[%s10043_s3 + $0x158] sm:$0xff] }
 0x5b5   :  { %7706 = vmatpush3.msra.mxu1 %v7071_v1  ;;  %7713 = vmatprep.mubr.msk.f32.mxu1 %vm77_vm0, %v8360_v8 }
 0x5b6   :  { %7707 = vmatprep.subr.mxu1 %v7070_v3 }
 0x5b7   :  { %7708 = vmatpush3.msra.mxu1 %v7070_v3 }
 0x5b8   :  { %7709 = vmatprep.subr.mxu1 %v7069_v4 }
 0x5b9   :  { %7710 = vmatpush3.msra.mxu1 %v7069_v4 }
 0x5ba   :  { %7711 = vmatprep.subr.mxu1 %v7068_v6 }
 0x5bb   :  { %7712 = vmatpush3.msra.mxu1 %v7068_v6  ;;  %v1990_v6 = vld [vmem:[%s10045_s5 + $0x10] sm:$0xff] }
 0x5bc   :  { %7714 = vmatmul.mubr.msk.f32.vlgmr.msra.gmra.mxu1 %vm77_vm0, %v8365_v9  ;;  %7727 = vmatprep.subr.mxu1 %v8249_v14 }
 0x5bd   :  { %7729 = vmatprep.mubr.msk.f32.mxu1 %vm8250_vm1, %v8249_v14 }
 0x66c   :  { %v1079_v7 = vpop.f32.mrf.mxu1 }
 0x66d   :  { %7686 = vmatprep.mubr.msk.f32.mxu0 %vm331_vm2, %v1079_v7  ;;  %v7103_v7 = vld [vmem:[%s10043_s3 + $0xf8] sm:$0xff] }
 0x66e   :  { %v7673_v10 = vpop.f32.mrf.mxu1 }
 0x66f   :  { %v7099_v10 = vld [vmem:[%s10043_s3 + $0x78] sm:$0xff] }
 0x670   :  { %v1239_v11 = vpop.f32.mrf.mxu1 }
 0x671   :  { %7687 = vmatmul.mubr.msk.f32.vlgmr.msra.gmra.mxu0 %vm331_vm2, %v1239_v11  ;;  %v7098_v11 = vld [vmem:[%s10043_s3 + $0x70] sm:$0xff] }
 0x672   :  { %7695 = vmatpush3.msra.mxu0 %v7067_v5  ;;  %v7683_v13 = vpop.f32.mrf.mxu1  ;;  %7702 = vmatprep.mubr.msk.f32.mxu0 %vm77_vm0, %v8360_v8 }
 0x673   :  { %7696 = vmatprep.subr.mxu0 %v7066_v12  ;;  %v7096_v13 = vld [vmem:[%s10043_s3 + $0x60] sm:$0xff] }
 0x674   :  { %7697 = vmatpush3.msra.mxu0 %v7066_v12  ;;  %v8584_v18 = vpop.f32.mrf.mxu1  ;;  %v7097_v12 = vld [vmem:[%s10043_s3 + $0x68] sm:$0xff] }
 0x675   :  { %7698 = vmatprep.subr.mxu0 %v7065_v15 }
 0x676   :  { %7699 = vmatpush3.msra.mxu0 %v7065_v15  ;;  %v8589_v20 = vpop.f32.mrf.mxu1 }
 0x677   :  { %7700 = vmatprep.subr.mxu0 %v7064_v16 }
 0x678   :  { %7701 = vmatpush3.msra.mxu0 %v7064_v16 }
 0x679   :  { %7703 = vmatmul.mubr.msk.f32.vlgmr.msra.gmra.mxu0 %vm77_vm0, %v8365_v9  ;;  %7716 = vmatprep.subr.mxu0 %v7075_v17 }
 0x67a   :  { %7717 = vmatpush3.msra.mxu0 %v7075_v17  ;;  %7724 = vmatprep.mubr.msk.f32.mxu0 %vm77_vm0, %v8360_v8 }
 0x67b   :  { %7718 = vmatprep.subr.mxu0 %v7074_v19 }
 0x67c   :  { %7719 = vmatpush3.msra.mxu0 %v7074_v19  ;;  %v7715_v22 = vpop.f32.mrf.mxu1  ;;  %v7102_v19 = vld [vmem:[%s10043_s3 + $0xf0] sm:$0xff] }
 0x67d   :  { %7720 = vmatprep.subr.mxu0 %v7073_v21  ;;  %v1584_v25 = vadd.f32 %v7715_v22, %v7081_v23  ;;  %v7101_v22 = vld [vmem:[%s10043_s3 + $0xe8] sm:$0xff] }
 0x67e   :  { %7721 = vmatpush3.msra.mxu0 %v7073_v21  ;;  %v1578_v26 = vpop.f32.mrf.mxu1 }
 0x67f   :  { %7722 = vmatprep.subr.mxu0 %v7072_v24  ;;  %v1579_v27 = vadd.f32 %v7081_v23, %v1578_v26  ;;  %v7100_v23 = vld [vmem:[%s10043_s3 + $0xe0] sm:$0xff]  ;;  %v7105_v26 = vld [vmem:[%s10043_s3 + $0x168] sm:$0xff] }
 0x680   :  { %7723 = vmatpush3.msra.mxu0 %v7072_v24  ;;  %v7107_v24 = vld [vmem:[%s10043_s3 + $0x178] sm:$0xff] }
 0x681   :  { %7725 = vmatmul.mubr.msk.f32.vlgmr.msra.gmra.mxu0 %vm77_vm0, %v8365_v9  ;;  %7737 = vmatprep.subr.mxu0 %v8249_v14 }
 0x682   :  { %7728 = vmatpush3.xpose.msk.msra.mxu1 %vm331_vm2, %v1579_v27  ;;  %7738 = vmatpush3.xpose.msk.msra.mxu0 %vm331_vm2, %v1584_v25  ;;  %v7106_v25 = vld [vmem:[%s10043_s3 + $0x170] sm:$0xff]  ;;  %v7104_v27 = vld [vmem:[%s10043_s3 + $0x160] sm:$0xff] }
 0x683   :  { %7739 = vmatprep.mubr.msk.f32.mxu0 %vm8250_vm1, %v8249_v14  ;;  %7732 = vmatprep.subr.mxu1 %v8249_v14 }
 0x684   :  { %7747 = vmatprep.subr.mxu0 %v1990_v6 }
 0x731   :  { %v8608_v28 = vpop.f32.mrf.mxu0 }
 0x733   :  { %v8610_v29 = vpop.f32.mrf.mxu0 }
 0x739   :  { %v7704_v32 = vpop.f32.mrf.mxu0 }
 0x73a   :  { %v1501_v35 = vadd.f32 %v7704_v32, %v7077_v31 }
 0x73b   :  { %v1495_v37 = vpop.f32.mrf.mxu0 }
 0x73c   :  { %v1496_v39 = vadd.f32 %v7077_v31, %v1495_v37  ;;  %7740 = vmatmul.mubr.msk.f32.vlgmr.msra.gmra.mxu0 %vm331_vm2, %v1501_v35  ;;  %v1403_v31 = vadd.f32 %v8584_v18, %v8608_v28  ;;  %v1398_v35 = vadd.f32 %v8589_v20, %v8610_v29 }
 0x73d   :  { %7748 = vmatpush3.msra.mxu0 %v1990_v6 }
 0x73e   :  { %7730 = vmatmul.mubr.msk.f32.vlgmr.msra.gmra.mxu1 %vm331_vm2, %v1496_v39  ;;  %7763 = vmatprep.subr.mxu0 %v7103_v7 }
 0x73f   :  { %7734 = vmatprep.mubr.msk.f32.mxu1 %vm8250_vm1, %v8249_v14 }
 0x741   :  { %v7726_v42 = vpop.f32.mrf.mxu0 }
 0x742   :  { %v1667_v43 = vadd.f32 %v7726_v42, %v7085_v41  ;;  %v7113_v42 = vld [vmem:[%s10044_s4 + $0x7] ss:$0 sm:$0xff] }
 0x743   :  { %v1661_v44 = vpop.f32.mrf.mxu0 }
 0x744   :  { %v1662_v45 = vadd.f32 %v7085_v41, %v1661_v44  ;;  %v7109_v44 = vld [vmem:[%s10044_s4 + $0x3] ss:$0 sm:$0xff] }
 0x746   :  { %7733 = vmatpush3.msra.mxu1 %v1662_v45 }
 0x747   :  { %7742 = vmatprep.subr.mxu1 %v8249_v14 }
 0x7fc   :  { %v1902_v46 = vpop.f32.mrf.mxu0 }
 0x7fd   :  { %v1903_v47 = vadd.f32 %v1902_v46, %v8436_v40 }
 0x7fe   :  { %v1742_v48 = vpop.f32.mrf.mxu1  ;;  %v7741_v49 = vpop.f32.mrf.mxu0 }
 0x7ff   :  { %v1743_v50 = vadd.f32 %v1742_v48, %v8433_v38  ;;  %v1906_v51 = vsel %vm331_vm2, %v1903_v47, -inf  ;;  %v7117_v48 = vld [vmem:[%s10044_s4 + $0xb] ss:$0 sm:$0xff] }
 0x800   :  { %1907 = vmax.xlane.f32.xlu1 %v1906_v51  ;;  %v7731_v52 = vpop.f32.mrf.mxu1 }
 0x801   :  { %v1746_v53 = vsel %vm331_vm2, %v1743_v50, -inf }
 0x802   :  { %1747 = vmax.xlane.f32.xlu0 %v1746_v53 }
 0x889   :  { %v1908_v54 = vpop.xlane.xlu1 %1907 }
 0x88a   :  { %v1909_v55 = vsub.f32 %v1903_v47, %v1908_v54 }
 0x88b   :  { %v1748_v56 = vpop.xlane.xlu0 %1747 }
 0x88c   :  { %v1910_v57 = vmul.f32 1.442695, %v1909_v55  ;;  %v1749_v58 = vsub.f32 %v1743_v50, %v1748_v56 }
 0x88e   :  { %8148 = vpow2.f32 %v1910_v57  ;;  %v1750_v59 = vmul.f32 1.442695, %v1749_v58 }
 0x890   :  { %8150 = vpow2.f32 %v1750_v59 }
 0x89b   :  { %v8149_v60 = vpop.eup %8148 }
 0x89c   :  { %v1912_v61 = vsel %vm331_vm2, %v8149_v60, 0.0 }
 0x89d   :  { %v8151_v62 = vpop.eup %8150  ;;  %1913 = vadd.xlane.f32.xlu1 %v1912_v61 }
 0x89e   :  { %v1752_v63 = vsel %vm331_vm2, %v8151_v62, 0.0 }
 0x89f   :  { %1753 = vadd.xlane.f32.xlu0 %v1752_v63 }
 0x926   :  { %v1914_v0 = vpop.xlane.xlu1 %1913 }
 0x928   :  { %v1754_v1 = vpop.xlane.xlu0 %1753 }
 0x929   :  { %8152 = vrcp.f32 %v1754_v1 }
 0x92a   :  { %8154 = vrcp.f32 %v1914_v0 }
 0x936   :  { %v8153_v2 = vpop.eup %8152 }
 0x937   :  { %v1756_v3 = vmul.f32 %v8153_v2, %v8151_v62  ;;  %v8155_v4 = vpop.eup %8154 }
 0x938   :  { %v1916_v5 = vmul.f32 %v8155_v4, %v8149_v60 }
 0x939   :  { %7735 = vmatmul.mubr.msk.f32.vlgmr.msra.gmra.mxu1 %vm331_vm2, %v1756_v3 }
 0x93a   :  { %7743 = vmatpush3.msra.mxu1 %v1667_v43  ;;  %7744 = vmatprep.mubr.msk.f32.mxu1 %vm8250_vm1, %v8249_v14 }
 0x93b   :  { %7752 = vmatprep.subr.mxu1 %v7099_v10 }
 0x93d   :  { %7745 = vmatmul.mubr.msk.f32.vlgmr.msra.gmra.mxu1 %vm331_vm2, %v1916_v5 }
 0x93e   :  { %7760 = vmatprep.mubr.msk.f32.mxu1 %vm77_vm0, %v8360_v8  ;;  %7753 = vmatpush3.msra.mxu1 %v7099_v10 }
 0x93f   :  { %7754 = vmatprep.subr.mxu1 %v7098_v11 }
 0x940   :  { %7755 = vmatpush3.msra.mxu1 %v7098_v11 }
 0x941   :  { %7756 = vmatprep.subr.mxu1 %v7097_v12 }
 0x942   :  { %7757 = vmatpush3.msra.mxu1 %v7097_v12 }
 0x943   :  { %7758 = vmatprep.subr.mxu1 %v7096_v13 }
 0x944   :  { %7759 = vmatpush3.msra.mxu1 %v7096_v13 }
 0x945   :  { %7761 = vmatmul.mubr.msk.f32.vlgmr.msra.gmra.mxu1 %vm77_vm0, %v8365_v9  ;;  %7774 = vmatprep.subr.mxu1 %v7107_v24 }
 0x946   :  { %7782 = vmatprep.mubr.msk.f32.mxu1 %vm77_vm0, %v8360_v8  ;;  %7775 = vmatpush3.msra.mxu1 %v7107_v24 }
 0x947   :  { %7776 = vmatprep.subr.mxu1 %v7106_v25 }
 0x948   :  { %7777 = vmatpush3.msra.mxu1 %v7106_v25  ;;  %v7128_v25 = vld [vmem:[%s10048_s8] ss:$0 sm:$0xff] }
 0x949   :  { %7778 = vmatprep.subr.mxu1 %v7105_v26 }
 0x94a   :  { %7779 = vmatpush3.msra.mxu1 %v7105_v26 }
 0x94b   :  { %7780 = vmatprep.subr.mxu1 %v7104_v27 }
 0x94c   :  { %7781 = vmatpush3.msra.mxu1 %v7104_v27 }
 0x94d   :  { %7783 = vmatmul.mubr.msk.f32.vlgmr.msra.gmra.mxu1 %vm77_vm0, %v8365_v9  ;;  %7795 = vmatprep.subr.mxu1 %v8249_v14 }
 0x94e   :  { %7797 = vmatprep.mubr.msk.f32.mxu1 %vm8250_vm1, %v8249_v14 }
 0x9f9   :  { %v1826_v15 = vpop.f32.mrf.mxu1 }
 0x9fa   :  { %7749 = vmatprep.mubr.msk.f32.mxu0 %vm331_vm2, %v1826_v15 }
 0x9fb   :  { %v7736_v16 = vpop.f32.mrf.mxu1 }
 0x9fc   :  { %v2658_v16 = vld [vmem:[%s10045_s5 + $0x18] sm:$0xff] }
 0x9fd   :  { %v1986_v17 = vpop.f32.mrf.mxu1 }
 0x9fe   :  { %7750 = vmatmul.mubr.msk.f32.vlgmr.msra.gmra.mxu0 %vm331_vm2, %v1986_v17 }
 0x9ff   :  { %7764 = vmatpush3.msra.mxu0 %v7103_v7  ;;  %v7746_v21 = vpop.f32.mrf.mxu1  ;;  %7771 = vmatprep.mubr.msk.f32.mxu0 %vm77_vm0, %v8360_v8 }
 0xa00   :  { %7765 = vmatprep.subr.mxu0 %v7102_v19 }
 0xa01   :  { %7766 = vmatpush3.msra.mxu0 %v7102_v19 }
 0xa02   :  { %7767 = vmatprep.subr.mxu0 %v7101_v22 }
 0xa03   :  { %7768 = vmatpush3.msra.mxu0 %v7101_v22 }
 0xa04   :  { %7769 = vmatprep.subr.mxu0 %v7100_v23 }
 0xa05   :  { %7770 = vmatpush3.msra.mxu0 %v7100_v23  ;;  %v7762_v43 = vpop.f32.mrf.mxu1 }
 0xa06   :  { %7772 = vmatmul.mubr.msk.f32.vlgmr.msra.gmra.mxu0 %vm77_vm0, %v8365_v9  ;;  %7785 = vmatprep.subr.mxu0 %v8249_v14  ;;  %v2169_v28 = vadd.f32 %v7762_v43, %v7109_v44 }
 0xa07   :  { %7787 = vmatprep.mubr.msk.f32.mxu0 %vm8250_vm1, %v8249_v14  ;;  %v2163_v20 = vpop.f32.mrf.mxu1 }
 0xa08   :  { %v2164_v29 = vadd.f32 %v7109_v44, %v2163_v20  ;;  %v2896_v20 = vld [vmem:[%s10047_s7 + $0x28] sm:$0xff] }
 0xa0d   :  { %v7784_v49 = vpop.f32.mrf.mxu1 }
 0xa0e   :  { %v2335_v50 = vadd.f32 %v7784_v49, %v7117_v48 }
 0xa0f   :  { %v2329_v51 = vpop.f32.mrf.mxu1 }
 0xa10   :  { %v2330_v52 = vadd.f32 %v7117_v48, %v2329_v51 }
 0xabe   :  { %v7751_v32 = vpop.f32.mrf.mxu0 }
 0xabf   :  { %v8696_v37 = vadd.f32 %v7751_v32, %v1403_v31 }
 0xac0   :  { %v2063_v39 = vpop.f32.mrf.mxu0 }
 0xac1   :  { %v8698_v41 = vadd.f32 %v2063_v39, %v1398_v35 }
 0xac6   :  { %v7773_v45 = vpop.f32.mrf.mxu0 }
 0xac7   :  { %v2252_v18 = vadd.f32 %v7773_v45, %v7113_v42 }
 0xac8   :  { %v2246_v46 = vpop.f32.mrf.mxu0 }
 0xac9   :  { %v2247_v47 = vadd.f32 %v7113_v42, %v2246_v46  ;;  %7796 = vmatpush3.xpose.msk.msra.mxu1 %vm331_vm2, %v2252_v18  ;;  %v2898_v46 = vld [vmem:[%s10047_s7 + $0x38] sm:$0xff] }
 0xaca   :  { %7805 = vmatprep.subr.mxu1 %v2658_v16 }
 0xacb   :  { %7786 = vmatpush3.xpose.msk.msra.mxu0 %vm331_vm2, %v2247_v47  ;;  %v2897_v47 = vld [vmem:[%s10047_s7 + $0x30] sm:$0xff] }
 0xacc   :  { %7798 = vmatmul.mubr.msk.f32.vlgmr.msra.gmra.mxu1 %vm331_vm2, %v2169_v28  ;;  %7790 = vmatprep.subr.mxu0 %v8249_v14  ;;  %v2800_v28 = vld [vmem:[%s10046_s6] sm:$0xff] }
 0xacd   :  { %7806 = vmatpush3.msra.mxu1 %v2658_v16  ;;  %v2891_v16 = vld [vmem:[%s10047_s7] sm:$0xff] }
 0xace   :  { %7788 = vmatmul.mubr.msk.f32.vlgmr.msra.gmra.mxu0 %vm331_vm2, %v2164_v29  ;;  %7821 = vmatprep.subr.mxu1 %v2898_v46  ;;  %v2895_v29 = vld [vmem:[%s10047_s7 + $0x20] sm:$0xff] }
 0xacf   :  { %7792 = vmatprep.mubr.msk.f32.mxu0 %vm8250_vm1, %v8249_v14  ;;  %7791 = vmatpush3.msra.mxu0 %v2330_v52 }
 0xad0   :  { %7800 = vmatprep.subr.mxu0 %v8249_v14 }
 0xb8c   :  { %v2570_v53 = vpop.f32.mrf.mxu1 }
 0xb8d   :  { %v2571_v54 = vadd.f32 %v2570_v53, %v8436_v40 }
 0xb8e   :  { %v2410_v55 = vpop.f32.mrf.mxu0  ;;  %v7799_v56 = vpop.f32.mrf.mxu1 }
 0xb8f   :  { %v2411_v57 = vadd.f32 %v2410_v55, %v8433_v38  ;;  %v2574_v58 = vsel %vm331_vm2, %v2571_v54, -inf }
 0xb90   :  { %2575 = vmax.xlane.f32.xlu1 %v2574_v58  ;;  %v7789_v59 = vpop.f32.mrf.mxu0 }
 0xb91   :  { %v2414_v60 = vsel %vm331_vm2, %v2411_v57, -inf }
 0xb92   :  { %2415 = vmax.xlane.f32.xlu0 %v2414_v60 }
 0xc19   :  { %v2576_v61 = vpop.xlane.xlu1 %2575 }
 0xc1a   :  { %v2577_v62 = vsub.f32 %v2571_v54, %v2576_v61 }
 0xc1b   :  { %v2416_v63 = vpop.xlane.xlu0 %2415 }
 0xc1c   :  { %v2578_v0 = vmul.f32 1.442695, %v2577_v62  ;;  %v2417_v1 = vsub.f32 %v2411_v57, %v2416_v63 }
 0xc1e   :  { %8156 = vpow2.f32 %v2578_v0  ;;  %v2418_v2 = vmul.f32 1.442695, %v2417_v1  ;;  %v7129_v1 = vld [vmem:[%s10048_s8 + $0x1] ss:$0 sm:$0xff] }
 0xc20   :  { %8158 = vpow2.f32 %v2418_v2 }
 0xc2b   :  { %v8157_v3 = vpop.eup %8156 }
 0xc2c   :  { %v2580_v4 = vsel %vm331_vm2, %v8157_v3, 0.0 }
 0xc2d   :  { %v8159_v5 = vpop.eup %8158  ;;  %2581 = vadd.xlane.f32.xlu1 %v2580_v4 }
 0xc2e   :  { %v2420_v6 = vsel %vm331_vm2, %v8159_v5, 0.0 }
 0xc2f   :  { %2421 = vadd.xlane.f32.xlu0 %v2420_v6  ;;  %v7130_v6 = vld [vmem:[%s10048_s8 + $0x2] ss:$0 sm:$0xff] }
 0xcb6   :  { %v2582_v7 = vpop.xlane.xlu1 %2581 }
 0xcb8   :  { %v2422_v10 = vpop.xlane.xlu0 %2421 }
 0xcb9   :  { %8160 = vrcp.f32 %v2422_v10 }
 0xcba   :  { %8162 = vrcp.f32 %v2582_v7 }
 0xcc6   :  { %v8161_v11 = vpop.eup %8160 }
 0xcc7   :  { %v2424_v12 = vmul.f32 %v8161_v11, %v8159_v5  ;;  %v8163_v13 = vpop.eup %8162 }
 0xcc8   :  { %v2584_v15 = vmul.f32 %v8163_v13, %v8157_v3  ;;  %v2893_v13 = vld [vmem:[%s10047_s7 + $0x10] sm:$0xff] }
 0xcc9   :  { %7793 = vmatmul.mubr.msk.f32.vlgmr.msra.gmra.mxu0 %vm331_vm2, %v2424_v12  ;;  %v2894_v12 = vld [vmem:[%s10047_s7 + $0x18] sm:$0xff] }
 0xcca   :  { %7801 = vmatpush3.msra.mxu0 %v2335_v50  ;;  %7802 = vmatprep.mubr.msk.f32.mxu0 %vm8250_vm1, %v8249_v14 }
 0xccd   :  { %7803 = vmatmul.mubr.msk.f32.vlgmr.msra.gmra.mxu0 %vm331_vm2, %v2584_v15  ;;  %v2892_v15 = vld [vmem:[%s10047_s7 + $0x8] sm:$0xff] }
 0xd89   :  { %v2494_v17 = vpop.f32.mrf.mxu0 }
 0xd8a   :  { %7807 = vmatprep.mubr.msk.f32.mxu1 %vm331_vm2, %v2494_v17  ;;  %v7131_v17 = vld [vmem:[%s10048_s8 + $0x3] ss:$0 sm:$0xff] }
 0xd8b   :  { %v7794_v19 = vpop.f32.mrf.mxu0 }
 0xd8d   :  { %v2654_v21 = vpop.f32.mrf.mxu0 }
 0xd8e   :  { %7808 = vmatmul.mubr.msk.f32.vlgmr.msra.gmra.mxu1 %vm331_vm2, %v2654_v21 }
 0xd8f   :  { %v7804_v22 = vpop.f32.mrf.mxu0  ;;  %7822 = vmatpush3.msra.mxu1 %v2898_v46  ;;  %v7149_v46 = vld [vmem:[%s10043_s3 + $0x290] sm:$0xff] }
 0xd90   :  { %7823 = vmatprep.subr.mxu1 %v2897_v47 }
 0xd91   :  { %7824 = vmatpush3.msra.mxu1 %v2897_v47  ;;  %v7140_v47 = vld [vmem:[%s10043_s3 + $0x188] sm:$0xff] }
 0xd92   :  { %7825 = vmatprep.subr.mxu1 %v2896_v20 }
 0xd93   :  { %7826 = vmatpush3.msra.mxu1 %v2896_v20  ;;  %v7148_v20 = vld [vmem:[%s10043_s3 + $0x288] sm:$0xff] }
 0xd94   :  { %7827 = vmatprep.subr.mxu1 %v2895_v29 }
 0xd95   :  { %7828 = vmatpush3.msra.mxu1 %v2895_v29  ;;  %v7139_v29 = vld [vmem:[%s10043_s3 + $0x180] sm:$0xff] }
 0xd96   :  { %7829 = vmatprep.subr.mxu1 %v2894_v12 }
 0xd97   :  { %7830 = vmatpush3.msra.mxu1 %v2894_v12 }
 0xd98   :  { %7831 = vmatprep.subr.mxu1 %v2893_v13 }
 0xd99   :  { %7832 = vmatpush3.msra.mxu1 %v2893_v13 }
 0xd9a   :  { %7833 = vmatprep.subr.mxu1 %v2892_v15 }
 0xd9b   :  { %7834 = vmatpush3.msra.mxu1 %v2892_v15  ;;  %v7145_v15 = vld [vmem:[%s10043_s3 + $0x210] sm:$0xff] }
 0xd9c   :  { %7835 = vmatprep.subr.mxu1 %v2891_v16 }
 0xd9d   :  { %7836 = vmatpush3.msra.mxu1 %v2891_v16  ;;  %v7144_v16 = vld [vmem:[%s10043_s3 + $0x208] sm:$0xff] }
 0xe4e   :  { %v7809_v23 = vpop.f32.mrf.mxu1 }
 0xe4f   :  { %v2741_v24 = vadd.f32 %v7809_v23, %v8696_v37 }
 0xe50   :  { %v2731_v26 = vpop.f32.mrf.mxu1 }
 0xe51   :  { %v2750_v27 = vadd.f32 %v2741_v24, %v8365_v9  ;;  %v2740_v31 = vadd.f32 %v2731_v26, %v8698_v41  ;;  %v2803_v9 = vld [vmem:[%s10046_s6 + $0x18] sm:$0xff]  ;;  %v2801_v41 = vld [vmem:[%s10046_s6 + $0x8] sm:$0xff]  ;;  %v7134_v26 = vld [vmem:[%s10048_s8 + $0x4] ss:$0 sm:$0xff] }
 0xe52   :  { %7810 = vmatprep.subr.mxu0 %v2803_v9 }
 0xe53   :  { %v2756_v32 = vadd.f32 %v7128_v25, %v2750_v27  ;;  %v2749_v35 = vadd.f32 %v2740_v31, %v8360_v8  ;;  %v2802_v8 = vld [vmem:[%s10046_s6 + $0x10] sm:$0xff]  ;;  %7811 = vmatpush3.msra.mxu0 %v2803_v9 }
 0xe54   :  { %7812 = vmatprep.subr.mxu0 %v2802_v8 }
 0xe55   :  { %v2755_v39 = vadd.f32 %v7128_v25, %v2749_v35  ;;  %v2760_v42 = vsel %vm77_vm0, %v2756_v32, 0.0  ;;  %v2767_v43 = vmul.f32 %v2756_v32, %v2756_v32  ;;  %7813 = vmatpush3.msra.mxu0 %v2802_v8  ;;  %v7142_v8 = vld [vmem:[%s10043_s3 + $0x198] sm:$0xff] }
 0xe56   :  { %2761 = vadd.xlane.f32.xlu1 %v2760_v42  ;;  %7814 = vmatprep.subr.mxu0 %v2801_v41 }
 0xe57   :  { %v2757_v44 = vsel %vm77_vm0, %v2755_v39, 0.0  ;;  %v2766_v37 = vmul.f32 %v2755_v39, %v2755_v39  ;;  %v2771_v45 = vsel %vm77_vm0, %v2767_v43, 0.0  ;;  %7815 = vmatpush3.msra.mxu0 %v2801_v41  ;;  %v7150_v41 = vld [vmem:[%s10043_s3 + $0x298] sm:$0xff] }
 0xe58   :  { %2758 = vadd.xlane.f32.xlu0 %v2757_v44  ;;  %7816 = vmatprep.subr.mxu0 %v2800_v28 }
 0xe59   :  { %v2768_v18 = vsel %vm77_vm0, %v2766_v37, 0.0  ;;  %7817 = vmatpush3.msra.mxu0 %v2800_v28  ;;  %7862 = vmatprep.subr.mxu1 %v7150_v41  ;;  %v7141_v28 = vld [vmem:[%s10043_s3 + $0x190] sm:$0xff] }
 0xe5a   :  { %2772 = vadd.xlane.f32.xlu1 %v2771_v45  ;;  %7840 = vmatprep.subr.mxu0 %v7142_v8 }
 0xe5c   :  { %2769 = vadd.xlane.f32.xlu0 %v2768_v18 }
 0xedf   :  { %v2762_v48 = vpop.xlane.xlu1 %2761 }
 0xee0   :  { %v2765_v49 = vmul.f32 0.03125, %v2762_v48  ;;  %v7147_v48 = vld [vmem:[%s10043_s3 + $0x280] sm:$0xff] }
 0xee1   :  { %v2759_v50 = vpop.xlane.xlu0 %2758 }
 0xee2   :  { %v2764_v51 = vmul.f32 0.03125, %v2759_v50  ;;  %v2777_v53 = vmul.f32 %v2765_v49, %v2765_v49  ;;  %v2781_v62 = vsub.f32 %v2756_v32, %v2765_v49  ;;  %v7146_v49 = vld [vmem:[%s10043_s3 + $0x218] sm:$0xff] }
 0xee3   :  { %v2773_v52 = vpop.xlane.xlu1 %2772 }
 0xee4   :  { %v2775_v54 = vmul.f32 0.03125, %v2773_v52  ;;  %v2776_v56 = vmul.f32 %v2764_v51, %v2764_v51  ;;  %v2780_v0 = vsub.f32 %v2755_v39, %v2764_v51 }
 0xee5   :  { %v2770_v55 = vpop.xlane.xlu0 %2769 }
 0xee6   :  { %v2779_v57 = vsub.f32 %v2775_v54, %v2777_v53  ;;  %v2774_v58 = vmul.f32 0.03125, %v2770_v55 }
 0xee8   :  { %v2783_v59 = vadd.f32 1e-05, %v2779_v57  ;;  %v2778_v60 = vsub.f32 %v2774_v58, %v2776_v56 }
 0xeea   :  { %8164 = vrsqrt.f32 %v2783_v59  ;;  %v2782_v61 = vadd.f32 1e-05, %v2778_v60 }
 0xeec   :  { %8166 = vrsqrt.f32 %v2782_v61 }
 0xef7   :  { %v8165_v63 = vpop.eup %8164 }
 0xef8   :  { %v2787_v2 = vmul.f32 %v8165_v63, %v2781_v62 }
 0xef9   :  { %v8167_v3 = vpop.eup %8166 }
 0xefa   :  { %v2786_v4 = vmul.f32 %v8167_v3, %v2780_v0  ;;  %v2793_v5 = vmul.f32 %v7129_v1, %v2787_v2  ;;  %v7137_v3 = vld [vmem:[%s10048_s8 + $0x5] ss:$0 sm:$0xff] }
 0xefc   :  { %v2792_v7 = vmul.f32 %v7129_v1, %v2786_v4  ;;  %v2799_v11 = vadd.f32 %v7130_v6, %v2793_v5 }
 0xefe   :  { %v2798_v10 = vadd.f32 %v7130_v6, %v2792_v7 }
 0xf00   :  { %7818 = vmatprep.mubr.msk.f32.mxu0 %vm77_vm0, %v2798_v10 }
 0xf01   :  { %7819 = vmatmul.mubr.msk.f32.vlgmr.msra.gmra.mxu0 %vm77_vm0, %v2799_v11 }
 0xf02   :  { %7841 = vmatpush3.msra.mxu0 %v7142_v8  ;;  %v7181_v8 = vld [vmem:[%s10043_s3 + $0x2b8] sm:$0xff] }
 0xf03   :  { %7842 = vmatprep.subr.mxu0 %v7141_v28 }
 0xf04   :  { %7843 = vmatpush3.msra.mxu0 %v7141_v28  ;;  %v7179_v28 = vld [vmem:[%s10043_s3 + $0x2a8] sm:$0xff] }
 0xf05   :  { %7844 = vmatprep.subr.mxu0 %v7140_v47 }
 0xf06   :  { %7845 = vmatpush3.msra.mxu0 %v7140_v47 }
 0xf07   :  { %7846 = vmatprep.subr.mxu0 %v7139_v29 }
 0xf08   :  { %7847 = vmatpush3.msra.mxu0 %v7139_v29 }
 0xf09   :  { %7851 = vmatprep.subr.mxu0 %v7146_v49 }
 0xfc1   :  { %v7820_v19 = vpop.f32.mrf.mxu0 }
 0xfc2   :  { %v2886_v21 = vadd.f32 %v7820_v19, %v7131_v17  ;;  %v7160_v19 = vld [vmem:[%s10044_s4 + $0x14] ss:$0 sm:$0xff] }
 0xfc3   :  { %v2880_v22 = vpop.f32.mrf.mxu0 }
 0xfc4   :  { %v2881_v23 = vadd.f32 %v7131_v17, %v2880_v22  ;;  %v2890_v25 = vmax.f32 %v2886_v21, 0.0  ;;  %v7143_v17 = vld [vmem:[%s10043_s3 + $0x200] sm:$0xff] }
 0xfc6   :  { %v2889_v24 = vmax.f32 %v2881_v23, 0.0 }
 0xfc8   :  { %7837 = vmatprep.mubr.msk.f32.mxu1 %vm2903_vm5, %v2889_v24 }
 0xfc9   :  { %7838 = vmatmul.mubr.msk.f32.vlgmr.msra.gmra.mxu1 %vm2903_vm5, %v2890_v25 }
 0xfca   :  { %7863 = vmatpush3.msra.mxu1 %v7150_v41  ;;  %v7180_v41 = vld [vmem:[%s10043_s3 + $0x2b0] sm:$0xff] }
 0xfcb   :  { %7864 = vmatprep.subr.mxu1 %v7149_v46 }
 0xfcc   :  { %7865 = vmatpush3.msra.mxu1 %v7149_v46  ;;  %v7178_v46 = vld [vmem:[%s10043_s3 + $0x2a0] sm:$0xff] }
 0xfcd   :  { %7866 = vmatprep.subr.mxu1 %v7148_v20 }
 0xfce   :  { %7867 = vmatpush3.msra.mxu1 %v7148_v20 }
 0xfcf   :  { %7868 = vmatprep.subr.mxu1 %v7147_v48 }
 0xfd0   :  { %7869 = vmatpush3.msra.mxu1 %v7147_v48 }
 0xfd1   :  { %7878 = vmatprep.subr.mxu1 %v8249_v14 }
0x1089   :  { %v7839_v27 = vpop.f32.mrf.mxu1 }
0x108a   :  { %v2982_v31 = vadd.f32 %v7839_v27, %v7134_v26 }
0x108b   :  { %v2976_v32 = vpop.f32.mrf.mxu1 }
0x108c   :  { %v2986_v35 = vadd.f32 %v2982_v31, %v2799_v11  ;;  %v2977_v39 = vadd.f32 %v7134_v26, %v2976_v32  ;;  %v7156_v31 = vld [vmem:[%s10044_s4 + $0x10] ss:$0 sm:$0xff] }
0x108e   :  { %v2985_v42 = vadd.f32 %v2977_v39, %v2798_v10  ;;  %v2990_v43 = vsel %vm77_vm0, %v2986_v35, 0.0  ;;  %v2996_v44 = vmul.f32 %v2986_v35, %v2986_v35  ;;  %v7138_v10 = vld [vmem:[%s10048_s8 + $0x6] ss:$0 sm:$0xff]  ;;  %v7152_v39 = vld [vmem:[%s10044_s4 + $0xc] ss:$0 sm:$0xff] }
0x108f   :  { %2991 = vadd.xlane.f32.xlu1 %v2990_v43 }
0x1090   :  { %v2987_v37 = vsel %vm77_vm0, %v2985_v42, 0.0  ;;  %v2995_v45 = vmul.f32 %v2985_v42, %v2985_v42  ;;  %v3000_v18 = vsel %vm77_vm0, %v2996_v44, 0.0  ;;  %v7173_v44 = vld [vmem:[%s10043_s3 + $0x1b8] sm:$0xff] }
0x1091   :  { %2988 = vadd.xlane.f32.xlu0 %v2987_v37 }
0x1092   :  { %v2997_v9 = vsel %vm77_vm0, %v2995_v45, 0.0  ;;  %v7172_v45 = vld [vmem:[%s10043_s3 + $0x1b0] sm:$0xff] }
0x1093   :  { %3001 = vadd.xlane.f32.xlu1 %v3000_v18  ;;  %v7171_v18 = vld [vmem:[%s10043_s3 + $0x1a8] sm:$0xff] }
0x1095   :  { %2998 = vadd.xlane.f32.xlu0 %v2997_v9  ;;  %v7170_v9 = vld [vmem:[%s10043_s3 + $0x1a0] sm:$0xff] }
0x1118   :  { %v2992_v50 = vpop.xlane.xlu1 %2991 }
0x1119   :  { %v2994_v51 = vmul.f32 0.03125, %v2992_v50 }
0x111a   :  { %v2989_v52 = vpop.xlane.xlu0 %2988 }
0x111b   :  { %v2993_v53 = vmul.f32 0.03125, %v2989_v52  ;;  %v3006_v55 = vmul.f32 %v2994_v51, %v2994_v51  ;;  %v3010_v0 = vsub.f32 %v2986_v35, %v2994_v51 }
0x111c   :  { %v3002_v54 = vpop.xlane.xlu1 %3001 }
0x111d   :  { %v3004_v56 = vmul.f32 0.03125, %v3002_v54  ;;  %v3005_v58 = vmul.f32 %v2993_v53, %v2993_v53  ;;  %v3009_v2 = vsub.f32 %v2985_v42, %v2993_v53 }
0x111e   :  { %v2999_v57 = vpop.xlane.xlu0 %2998 }
0x111f   :  { %v3008_v59 = vsub.f32 %v3004_v56, %v3006_v55  ;;  %v3003_v60 = vmul.f32 0.03125, %v2999_v57  ;;  %v7191_v55 = vld [vmem:[%s10044_s4 + $0x15] ss:$0 sm:$0xff] }
0x1121   :  { %v3012_v61 = vadd.f32 1e-05, %v3008_v59  ;;  %v3007_v62 = vsub.f32 %v3003_v60, %v3005_v58 }
0x1123   :  { %8168 = vrsqrt.f32 %v3012_v61  ;;  %v3011_v63 = vadd.f32 1e-05, %v3007_v62 }
0x1125   :  { %8170 = vrsqrt.f32 %v3011_v63 }
0x1130   :  { %v8169_v1 = vpop.eup %8168 }
0x1131   :  { %v3016_v4 = vmul.f32 %v8169_v1, %v3010_v0 }
0x1132   :  { %v8171_v5 = vpop.eup %8170 }
0x1133   :  { %v3015_v6 = vmul.f32 %v8171_v5, %v3009_v2  ;;  %v3022_v7 = vmul.f32 %v7137_v3, %v3016_v4 }
0x1135   :  { %v3021_v11 = vmul.f32 %v7137_v3, %v3015_v6  ;;  %v8835_v13 = vadd.f32 %v7138_v10, %v3022_v7 }
0x1137   :  { %v8833_v12 = vadd.f32 %v7138_v10, %v3021_v11  ;;  %v7177_v10 = vld [vmem:[%s10043_s3 + $0x238] sm:$0xff] }
0x1139   :  { %7848 = vmatprep.mubr.msk.f32.mxu0 %vm77_vm0, %v8833_v12  ;;  %7870 = vmatprep.mubr.msk.f32.mxu1 %vm77_vm0, %v8833_v12 }
0x113a   :  { %7849 = vmatmul.mubr.msk.f32.vlgmr.msra.gmra.mxu0 %vm77_vm0, %v8835_v13  ;;  %7871 = vmatmul.mubr.msk.f32.vlgmr.msra.gmra.mxu1 %vm77_vm0, %v8835_v13 }
0x113b   :  { %7852 = vmatpush3.msra.mxu0 %v7146_v49  ;;  %7859 = vmatprep.mubr.msk.f32.mxu0 %vm77_vm0, %v8833_v12 }
0x113c   :  { %7853 = vmatprep.subr.mxu0 %v7145_v15  ;;  %7880 = vmatprep.mubr.msk.f32.mxu1 %vm8250_vm1, %v8249_v14 }
0x113d   :  { %7854 = vmatpush3.msra.mxu0 %v7145_v15 }
0x113e   :  { %7855 = vmatprep.subr.mxu0 %v7144_v16 }
0x113f   :  { %7856 = vmatpush3.msra.mxu0 %v7144_v16  ;;  %v7176_v16 = vld [vmem:[%s10043_s3 + $0x230] sm:$0xff] }
0x1140   :  { %7857 = vmatprep.subr.mxu0 %v7143_v17 }
0x1141   :  { %7858 = vmatpush3.msra.mxu0 %v7143_v17  ;;  %v7175_v17 = vld [vmem:[%s10043_s3 + $0x228] sm:$0xff] }
0x1142   :  { %7860 = vmatmul.mubr.msk.f32.vlgmr.msra.gmra.mxu0 %vm77_vm0, %v8835_v13  ;;  %7873 = vmatprep.subr.mxu0 %v8249_v14 }
0x1143   :  { %7875 = vmatprep.mubr.msk.f32.mxu0 %vm8250_vm1, %v8249_v14 }
0x11fa   :  { %v7872_v21 = vpop.f32.mrf.mxu1  ;;  %v7850_v23 = vpop.f32.mrf.mxu0 }
0x11fb   :  { %v8866_v22 = vadd.f32 %v7872_v21, %v7160_v19  ;;  %v3130_v37 = vadd.f32 %v7850_v23, %v7152_v39 }
0x11fc   :  { %v3290_v24 = vpop.f32.mrf.mxu1  ;;  %v3124_v26 = vpop.f32.mrf.mxu0 }
0x11fd   :  { %v3291_v25 = vadd.f32 %v7160_v19, %v3290_v24  ;;  %v3125_v42 = vadd.f32 %v7152_v39, %v3124_v26  ;;  %v7174_v19 = vld [vmem:[%s10043_s3 + $0x220] sm:$0xff] }
0x11ff   :  { %7879 = vmatpush3.msra.mxu1 %v3291_v25  ;;  %v7187_v25 = vld [vmem:[%s10044_s4 + $0x11] ss:$0 sm:$0xff] }
0x1200   :  { %7888 = vmatprep.subr.mxu1 %v8249_v14 }
0x1202   :  { %v7861_v27 = vpop.f32.mrf.mxu0 }
0x1203   :  { %v3213_v43 = vadd.f32 %v7861_v27, %v7156_v31  ;;  %v7183_v27 = vld [vmem:[%s10044_s4 + $0xd] ss:$0 sm:$0xff] }
0x1204   :  { %v3207_v32 = vpop.f32.mrf.mxu0 }
0x1205   :  { %v3208_v35 = vadd.f32 %v7156_v31, %v3207_v32 }
0x1207   :  { %7874 = vmatpush3.xpose.msk.msra.mxu0 %vm331_vm2, %v3208_v35 }
0x1208   :  { %7883 = vmatprep.subr.mxu0 %v8249_v14 }
0x120a   :  { %7876 = vmatmul.mubr.msk.f32.vlgmr.msra.gmra.mxu0 %vm331_vm2, %v3125_v42 }
0x120b   :  { %7884 = vmatpush3.xpose.msk.msra.mxu0 %vm331_vm2, %v3213_v43  ;;  %7885 = vmatprep.mubr.msk.f32.mxu0 %vm8250_vm1, %v8249_v14 }
0x120c   :  { %7893 = vmatprep.subr.mxu0 %v7173_v44 }
0x120e   :  { %7886 = vmatmul.mubr.msk.f32.vlgmr.msra.gmra.mxu0 %vm331_vm2, %v3130_v37 }
0x120f   :  { %7894 = vmatpush3.msra.mxu0 %v7173_v44  ;;  %7901 = vmatprep.mubr.msk.f32.mxu0 %vm77_vm0, %v8833_v12 }
0x1210   :  { %7895 = vmatprep.subr.mxu0 %v7172_v45 }
0x1211   :  { %7896 = vmatpush3.msra.mxu0 %v7172_v45 }
0x1212   :  { %7897 = vmatprep.subr.mxu0 %v7171_v18 }
0x1213   :  { %7898 = vmatpush3.msra.mxu0 %v7171_v18 }
0x1214   :  { %7899 = vmatprep.subr.mxu0 %v7170_v9 }
0x1215   :  { %7900 = vmatpush3.msra.mxu0 %v7170_v9 }
0x1216   :  { %7902 = vmatmul.mubr.msk.f32.vlgmr.msra.gmra.mxu0 %vm77_vm0, %v8835_v13  ;;  %7915 = vmatprep.subr.mxu0 %v7181_v8 }
0x1217   :  { %7916 = vmatpush3.msra.mxu0 %v7181_v8  ;;  %7923 = vmatprep.mubr.msk.f32.mxu0 %vm77_vm0, %v8833_v12 }
0x1218   :  { %7917 = vmatprep.subr.mxu0 %v7180_v41 }
0x1219   :  { %7918 = vmatpush3.msra.mxu0 %v7180_v41 }
0x121a   :  { %7919 = vmatprep.subr.mxu0 %v7179_v28 }
0x121b   :  { %7920 = vmatpush3.msra.mxu0 %v7179_v28 }
0x121c   :  { %7921 = vmatprep.subr.mxu0 %v7178_v46 }
0x121d   :  { %7922 = vmatpush3.msra.mxu0 %v7178_v46 }
0x121e   :  { %7924 = vmatmul.mubr.msk.f32.vlgmr.msra.gmra.mxu0 %vm77_vm0, %v8835_v13  ;;  %7936 = vmatprep.subr.mxu0 %v8249_v14 }
0x121f   :  { %7938 = vmatprep.mubr.msk.f32.mxu0 %vm8250_vm1, %v8249_v14 }
0x12ca   :  { %v3371_v47 = vpop.f32.mrf.mxu0 }
0x12cb   :  { %v3372_v20 = vadd.f32 %v3371_v47, %v8433_v38 }
0x12cc   :  { %v7877_v29 = vpop.f32.mrf.mxu0 }
0x12cd   :  { %v3375_v48 = vsel %vm331_vm2, %v3372_v20, -inf }
0x12ce   :  { %3376 = vmax.xlane.f32.xlu0 %v3375_v48  ;;  %v3531_v49 = vpop.f32.mrf.mxu0 }
0x12cf   :  { %v3532_v50 = vadd.f32 %v3531_v49, %v8436_v40 }
0x12d0   :  { %v7887_v51 = vpop.f32.mrf.mxu0 }
0x12d1   :  { %v3535_v52 = vsel %vm331_vm2, %v3532_v50, -inf }
0x12d2   :  { %3536 = vmax.xlane.f32.xlu1 %v3535_v52 }
0x12d6   :  { %v7903_v53 = vpop.f32.mrf.mxu0 }
0x12d7   :  { %v3716_v39 = vadd.f32 %v7903_v53, %v7183_v27 }
0x12d8   :  { %v3710_v54 = vpop.f32.mrf.mxu0 }
0x12d9   :  { %v3711_v43 = vadd.f32 %v7183_v27, %v3710_v54 }
0x12de   :  { %v7925_v56 = vpop.f32.mrf.mxu0 }
0x12df   :  { %v8924_v57 = vadd.f32 %v7925_v56, %v7191_v55 }
0x12e0   :  { %v3876_v42 = vpop.f32.mrf.mxu0 }
0x12e1   :  { %v3877_v44 = vadd.f32 %v7191_v55, %v3876_v42 }
0x1357   :  { %v3377_v58 = vpop.xlane.xlu0 %3376 }
0x1358   :  { %v3378_v59 = vsub.f32 %v3372_v20, %v3377_v58 }
0x135a   :  { %v3379_v60 = vmul.f32 1.442695, %v3378_v59 }
0x135b   :  { %v3537_v61 = vpop.xlane.xlu1 %3536 }
0x135c   :  { %8172 = vpow2.f32 %v3379_v60  ;;  %v3538_v62 = vsub.f32 %v3532_v50, %v3537_v61  ;;  %v7169_v61 = vld [vmem:[%s10045_s5 + $0x20] sm:$0xff] }
0x135e   :  { %v3539_v63 = vmul.f32 1.442695, %v3538_v62 }
0x1360   :  { %8174 = vpow2.f32 %v3539_v63  ;;  %v7212_v63 = vld [vmem:[%s10043_s3 + $0x258] sm:$0xff] }
0x1369   :  { %v8173_v0 = vpop.eup %8172 }
0x136a   :  { %v3381_v1 = vsel %vm331_vm2, %v8173_v0, 0.0 }
0x136b   :  { %3382 = vadd.xlane.f32.xlu0 %v3381_v1  ;;  %v7209_v1 = vld [vmem:[%s10043_s3 + $0x240] sm:$0xff] }
0x136d   :  { %v8175_v2 = vpop.eup %8174 }
0x136e   :  { %v3541_v3 = vsel %vm331_vm2, %v8175_v2, 0.0 }
0x136f   :  { %3542 = vadd.xlane.f32.xlu1 %v3541_v3  ;;  %v7208_v3 = vld [vmem:[%s10043_s3 + $0x1d8] sm:$0xff] }
0x13f4   :  { %v3383_v4 = vpop.xlane.xlu0 %3382 }
0x13f5   :  { %8176 = vrcp.f32 %v3383_v4 }
0x13f8   :  { %v3543_v5 = vpop.xlane.xlu1 %3542 }
0x13f9   :  { %8178 = vrcp.f32 %v3543_v5 }
0x1402   :  { %v8177_v6 = vpop.eup %8176 }
0x1403   :  { %v3385_v7 = vmul.f32 %v8177_v6, %v8173_v0  ;;  %v7211_v0 = vld [vmem:[%s10043_s3 + $0x250] sm:$0xff] }
0x1405   :  { %7881 = vmatmul.mubr.msk.f32.vlgmr.msra.gmra.mxu1 %vm331_vm2, %v3385_v7  ;;  %v7207_v7 = vld [vmem:[%s10043_s3 + $0x1d0] sm:$0xff] }
0x1406   :  { %v8179_v11 = vpop.eup %8178  ;;  %7889 = vmatpush3.msra.mxu1 %v8866_v22  ;;  %7890 = vmatprep.mubr.msk.f32.mxu1 %vm8250_vm1, %v8249_v14 }
0x1407   :  { %7904 = vmatprep.subr.mxu1 %v7177_v10  ;;  %v3545_v15 = vmul.f32 %v8179_v11, %v8175_v2  ;;  %v7200_v2 = vld [vmem:[%s10045_s5 + $0x28] sm:$0xff] }
0x1408   :  { %v7206_v11 = vld [vmem:[%s10043_s3 + $0x1c8] sm:$0xff] }
0x1409   :  { %7891 = vmatmul.mubr.msk.f32.vlgmr.msra.gmra.mxu1 %vm331_vm2, %v3545_v15  ;;  %v7205_v15 = vld [vmem:[%s10043_s3 + $0x1c0] sm:$0xff] }
0x140a   :  { %7905 = vmatpush3.msra.mxu1 %v7177_v10  ;;  %7912 = vmatprep.mubr.msk.f32.mxu1 %vm77_vm0, %v8833_v12 }
0x140b   :  { %7906 = vmatprep.subr.mxu1 %v7176_v16 }
0x140c   :  { %7907 = vmatpush3.msra.mxu1 %v7176_v16 }
0x140d   :  { %7908 = vmatprep.subr.mxu1 %v7175_v17 }
0x140e   :  { %7909 = vmatpush3.msra.mxu1 %v7175_v17  ;;  %v7216_v17 = vld [vmem:[%s10043_s3 + $0x2d8] sm:$0xff] }
0x140f   :  { %7910 = vmatprep.subr.mxu1 %v7174_v19 }
0x1410   :  { %7911 = vmatpush3.msra.mxu1 %v7174_v19  ;;  %v7215_v19 = vld [vmem:[%s10043_s3 + $0x2d0] sm:$0xff] }
0x1411   :  { %7913 = vmatmul.mubr.msk.f32.vlgmr.msra.gmra.mxu1 %vm77_vm0, %v8835_v13  ;;  %7926 = vmatprep.subr.mxu1 %v8249_v14 }
0x1412   :  { %7928 = vmatprep.mubr.msk.f32.mxu1 %vm8250_vm1, %v8249_v14 }
0x14c5   :  { %v3455_v21 = vpop.f32.mrf.mxu1 }
0x14c7   :  { %v7882_v22 = vpop.f32.mrf.mxu1 }
0x14c8   :  { %v7214_v22 = vld [vmem:[%s10043_s3 + $0x2c8] sm:$0xff] }
0x14c9   :  { %v8952_v23 = vpop.f32.mrf.mxu1 }
0x14cb   :  { %v7892_v24 = vpop.f32.mrf.mxu1 }
0x14cc   :  { %v7213_v24 = vld [vmem:[%s10043_s3 + $0x2c0] sm:$0xff] }
0x14d1   :  { %v7914_v26 = vpop.f32.mrf.mxu1 }
0x14d2   :  { %v3799_v31 = vadd.f32 %v7914_v26, %v7187_v25 }
0x14d3   :  { %v3793_v32 = vpop.f32.mrf.mxu1 }
0x14d4   :  { %v3794_v35 = vadd.f32 %v7187_v25, %v3793_v32  ;;  %7937 = vmatpush3.xpose.msk.msra.mxu0 %vm331_vm2, %v3799_v31  ;;  %v7222_v25 = vld [vmem:[%s10044_s4 + $0x12] ss:$0 sm:$0xff] }
0x14d5   :  { %7946 = vmatprep.subr.mxu0 %v7200_v2 }
0x14d6   :  { %7927 = vmatpush3.xpose.msk.msra.mxu1 %vm331_vm2, %v3794_v35 }
0x14d7   :  { %7939 = vmatmul.mubr.msk.f32.vlgmr.msra.gmra.mxu0 %vm331_vm2, %v3716_v39  ;;  %7931 = vmatprep.subr.mxu1 %v8249_v14  ;;  %v7218_v39 = vld [vmem:[%s10044_s4 + $0xe] ss:$0 sm:$0xff] }
0x14d8   :  { %7947 = vmatpush3.msra.mxu0 %v7200_v2  ;;  %v7241_v2 = vld [vmem:[%s10043_s3 + $0x1f8] sm:$0xff] }
0x14d9   :  { %7929 = vmatmul.mubr.msk.f32.vlgmr.msra.gmra.mxu1 %vm331_vm2, %v3711_v43  ;;  %7956 = vmatprep.subr.mxu0 %v7208_v3 }
0x14da   :  { %7932 = vmatpush3.msra.mxu1 %v3877_v44  ;;  %7933 = vmatprep.mubr.msk.f32.mxu1 %vm8250_vm1, %v8249_v14 }
0x14db   :  { %7941 = vmatprep.subr.mxu1 %v8249_v14 }
0x1597   :  { %v4117_v37 = vpop.f32.mrf.mxu0 }
0x1598   :  { %v4118_v45 = vadd.f32 %v4117_v37, %v8436_v40 }
0x1599   :  { %v3957_v18 = vpop.f32.mrf.mxu1  ;;  %v7940_v9 = vpop.f32.mrf.mxu0 }
0x159a   :  { %v3958_v8 = vadd.f32 %v3957_v18, %v8433_v38  ;;  %v4121_v41 = vsel %vm331_vm2, %v4118_v45, -inf }
0x159b   :  { %4122 = vmax.xlane.f32.xlu1 %v4121_v41  ;;  %v7930_v28 = vpop.f32.mrf.mxu1 }
0x159c   :  { %v3961_v46 = vsel %vm331_vm2, %v3958_v8, -inf }
0x159d   :  { %3962 = vmax.xlane.f32.xlu0 %v3961_v46 }
0x1624   :  { %v4123_v47 = vpop.xlane.xlu1 %4122 }
0x1625   :  { %v4124_v20 = vsub.f32 %v4118_v45, %v4123_v47  ;;  %v7226_v45 = vld [vmem:[%s10044_s4 + $0x16] ss:$0 sm:$0xff] }
0x1626   :  { %v3963_v29 = vpop.xlane.xlu0 %3962 }
0x1627   :  { %v4125_v48 = vmul.f32 1.442695, %v4124_v20  ;;  %v3964_v49 = vsub.f32 %v3958_v8, %v3963_v29 }
0x1629   :  { %8180 = vpow2.f32 %v4125_v48  ;;  %v3965_v50 = vmul.f32 1.442695, %v3964_v49 }
0x162b   :  { %8182 = vpow2.f32 %v3965_v50 }
0x1636   :  { %v8181_v51 = vpop.eup %8180 }
0x1637   :  { %v4127_v52 = vsel %vm331_vm2, %v8181_v51, 0.0 }
0x1638   :  { %v8183_v53 = vpop.eup %8182  ;;  %4128 = vadd.xlane.f32.xlu1 %v4127_v52 }
0x1639   :  { %v3967_v54 = vsel %vm331_vm2, %v8183_v53, 0.0 }
0x163a   :  { %3968 = vadd.xlane.f32.xlu0 %v3967_v54 }
0x16c1   :  { %v4129_v55 = vpop.xlane.xlu1 %4128 }
0x16c3   :  { %v3969_v56 = vpop.xlane.xlu0 %3968 }
0x16c4   :  { %8184 = vrcp.f32 %v3969_v56 }
0x16c5   :  { %8186 = vrcp.f32 %v4129_v55 }
0x16d1   :  { %v8185_v58 = vpop.eup %8184 }
0x16d2   :  { %v3971_v59 = vmul.f32 %v8185_v58, %v8183_v53  ;;  %v8187_v60 = vpop.eup %8186 }
0x16d3   :  { %v4131_v62 = vmul.f32 %v8187_v60, %v8181_v51 }
0x16d4   :  { %7934 = vmatmul.mubr.msk.f32.vlgmr.msra.gmra.mxu1 %vm331_vm2, %v3971_v59 }
0x16d5   :  { %7942 = vmatpush3.msra.mxu1 %v8924_v57  ;;  %7943 = vmatprep.mubr.msk.f32.mxu1 %vm8250_vm1, %v8249_v14  ;;  %v7210_v57 = vld [vmem:[%s10043_s3 + $0x248] sm:$0xff] }
0x16d6   :  { %7951 = vmatprep.subr.mxu1 %v7169_v61 }
0x16d8   :  { %7944 = vmatmul.mubr.msk.f32.vlgmr.msra.gmra.mxu1 %vm331_vm2, %v4131_v62 }
0x16d9   :  { %7953 = vmatprep.mubr.msk.f32.mxu1 %vm331_vm2, %v3455_v21  ;;  %7952 = vmatpush3.msra.mxu1 %v7169_v61 }
0x16da   :  { %7967 = vmatprep.subr.mxu1 %v7212_v63 }
0x16dc   :  { %7954 = vmatmul.mubr.msk.f32.vlgmr.msra.gmra.mxu1 %vm331_vm2, %v8952_v23 }
0x16dd   :  { %7968 = vmatpush3.msra.mxu1 %v7212_v63  ;;  %7975 = vmatprep.mubr.msk.f32.mxu1 %vm77_vm0, %v8833_v12 }
0x16de   :  { %7969 = vmatprep.subr.mxu1 %v7211_v0 }
0x16df   :  { %7970 = vmatpush3.msra.mxu1 %v7211_v0 }
0x16e0   :  { %7971 = vmatprep.subr.mxu1 %v7210_v57 }
0x16e1   :  { %7972 = vmatpush3.msra.mxu1 %v7210_v57 }
0x16e2   :  { %7973 = vmatprep.subr.mxu1 %v7209_v1 }
0x16e3   :  { %7974 = vmatpush3.msra.mxu1 %v7209_v1 }
0x16e4   :  { %7976 = vmatmul.mubr.msk.f32.vlgmr.msra.gmra.mxu1 %vm77_vm0, %v8835_v13  ;;  %7989 = vmatprep.subr.mxu1 %v8249_v14 }
0x16e5   :  { %7991 = vmatprep.mubr.msk.f32.mxu1 %vm8250_vm1, %v8249_v14 }
0x1794   :  { %v4041_v4 = vpop.f32.mrf.mxu1 }
0x1795   :  { %7948 = vmatprep.mubr.msk.f32.mxu0 %vm331_vm2, %v4041_v4  ;;  %v7240_v4 = vld [vmem:[%s10043_s3 + $0x1f0] sm:$0xff] }
0x1796   :  { %v7935_v5 = vpop.f32.mrf.mxu1 }
0x1797   :  { %v7239_v5 = vld [vmem:[%s10043_s3 + $0x1e8] sm:$0xff] }
0x1798   :  { %v4201_v6 = vpop.f32.mrf.mxu1 }
0x1799   :  { %7949 = vmatmul.mubr.msk.f32.vlgmr.msra.gmra.mxu0 %vm331_vm2, %v4201_v6  ;;  %v7238_v6 = vld [vmem:[%s10043_s3 + $0x1e0] sm:$0xff] }
0x179a   :  { %7957 = vmatpush3.msra.mxu0 %v7208_v3  ;;  %v7945_v10 = vpop.f32.mrf.mxu1  ;;  %7964 = vmatprep.mubr.msk.f32.mxu0 %vm77_vm0, %v8833_v12 }
0x179b   :  { %7958 = vmatprep.subr.mxu0 %v7207_v7  ;;  %v7248_v10 = vld [vmem:[%s10043_s3 + $0x2f0] sm:$0xff] }
0x179c   :  { %7959 = vmatpush3.msra.mxu0 %v7207_v7  ;;  %v9023_v16 = vpop.f32.mrf.mxu1  ;;  %v7249_v7 = vld [vmem:[%s10043_s3 + $0x2f8] sm:$0xff] }
0x179d   :  { %7960 = vmatprep.subr.mxu0 %v7206_v11 }
0x179e   :  { %7961 = vmatpush3.msra.mxu0 %v7206_v11  ;;  %v9033_v21 = vpop.f32.mrf.mxu1  ;;  %v7247_v11 = vld [vmem:[%s10043_s3 + $0x2e8] sm:$0xff] }
0x179f   :  { %7962 = vmatprep.subr.mxu0 %v7205_v15 }
0x17a0   :  { %7963 = vmatpush3.msra.mxu0 %v7205_v15  ;;  %v7246_v15 = vld [vmem:[%s10043_s3 + $0x2e0] sm:$0xff] }
0x17a1   :  { %7965 = vmatmul.mubr.msk.f32.vlgmr.msra.gmra.mxu0 %vm77_vm0, %v8835_v13  ;;  %7978 = vmatprep.subr.mxu0 %v7216_v17 }
0x17a2   :  { %7979 = vmatpush3.msra.mxu0 %v7216_v17  ;;  %7986 = vmatprep.mubr.msk.f32.mxu0 %vm77_vm0, %v8833_v12  ;;  %v7235_v17 = vld [vmem:[%s10045_s5 + $0x30] sm:$0xff] }
0x17a3   :  { %7980 = vmatprep.subr.mxu0 %v7215_v19 }
0x17a4   :  { %v7977_v23 = vpop.f32.mrf.mxu1  ;;  %7981 = vmatpush3.msra.mxu0 %v7215_v19  ;;  %v7245_v19 = vld [vmem:[%s10043_s3 + $0x278] sm:$0xff] }
0x17a5   :  { %7982 = vmatprep.subr.mxu0 %v7214_v22  ;;  %v4546_v31 = vadd.f32 %v7977_v23, %v7222_v25 }
0x17a6   :  { %v4540_v26 = vpop.f32.mrf.mxu1  ;;  %7983 = vmatpush3.msra.mxu0 %v7214_v22 }
0x17a7   :  { %v4541_v27 = vadd.f32 %v7222_v25, %v4540_v26  ;;  %7984 = vmatprep.subr.mxu0 %v7213_v24  ;;  %v7244_v25 = vld [vmem:[%s10043_s3 + $0x270] sm:$0xff] }
0x17a8   :  { %7985 = vmatpush3.msra.mxu0 %v7213_v24 }
0x17a9   :  { %7987 = vmatmul.mubr.msk.f32.vlgmr.msra.gmra.mxu0 %vm77_vm0, %v8835_v13  ;;  %7990 = vmatpush3.xpose.msk.msra.mxu1 %vm331_vm2, %v4541_v27  ;;  %v7243_v27 = vld [vmem:[%s10043_s3 + $0x268] sm:$0xff] }
0x17aa   :  { %7999 = vmatprep.subr.mxu0 %v8249_v14  ;;  %8001 = vmatprep.mubr.msk.f32.mxu0 %vm8250_vm1, %v8249_v14 }
0x17ab   :  { %8000 = vmatpush3.xpose.msk.msra.mxu0 %vm331_vm2, %v4546_v31  ;;  %7994 = vmatprep.subr.mxu1 %v8249_v14  ;;  %v7242_v31 = vld [vmem:[%s10043_s3 + $0x260] sm:$0xff]  ;;  %s6355_s3 = scalar_select %p6354_p3, 1, 0 }
0x17ac   :  { %8009 = vmatprep.subr.mxu0 %v7235_v17  ;;  %p6535_p3 = scmp.ge.s32.totalorder %s9767_s16, 2 }
0x1859   :  { %v9054_v32 = vpop.f32.mrf.mxu0 }
0x185b   :  { %v9056_v35 = vpop.f32.mrf.mxu0 }
0x1861   :  { %v7966_v42 = vpop.f32.mrf.mxu0 }
0x1862   :  { %v4463_v43 = vadd.f32 %v7966_v42, %v7218_v39 }
0x1863   :  { %v4457_v44 = vpop.f32.mrf.mxu0 }
0x1864   :  { %v4458_v37 = vadd.f32 %v7218_v39, %v4457_v44  ;;  %8002 = vmatmul.mubr.msk.f32.vlgmr.msra.gmra.mxu0 %vm331_vm2, %v4463_v43  ;;  %v7259_v43 = vld [vmem:[%s10044_s4 + $0x17] ss:$0 sm:$0xff] }
0x1865   :  { %8010 = vmatpush3.msra.mxu0 %v7235_v17 }
0x1866   :  { %7992 = vmatmul.mubr.msk.f32.vlgmr.msra.gmra.mxu1 %vm331_vm2, %v4458_v37  ;;  %8025 = vmatprep.subr.mxu0 %v7245_v19 }
0x1867   :  { %7996 = vmatprep.mubr.msk.f32.mxu1 %vm8250_vm1, %v8249_v14 }
0x1869   :  { %v7988_v18 = vpop.f32.mrf.mxu0 }
0x186a   :  { %v4629_v9 = vadd.f32 %v7988_v18, %v7226_v45 }
0x186b   :  { %v4623_v8 = vpop.f32.mrf.mxu0 }
0x186c   :  { %v4624_v41 = vadd.f32 %v7226_v45, %v4623_v8  ;;  %v4365_v45 = vadd.f32 %v9023_v16, %v9054_v32 }
0x186e   :  { %7995 = vmatpush3.msra.mxu1 %v4624_v41 }
0x186f   :  { %8004 = vmatprep.subr.mxu1 %v8249_v14 }
0x1924   :  { %v4864_v28 = vpop.f32.mrf.mxu0 }
0x1925   :  { %v4865_v46 = vadd.f32 %v4864_v28, %v8436_v40 }
0x1926   :  { %v4704_v47 = vpop.f32.mrf.mxu1  ;;  %v8003_v20 = vpop.f32.mrf.mxu0 }
0x1927   :  { %v4705_v29 = vadd.f32 %v4704_v47, %v8433_v38  ;;  %v4868_v48 = vsel %vm331_vm2, %v4865_v46, -inf  ;;  %v7251_v20 = vld [vmem:[%s10044_s4 + $0xf] ss:$0 sm:$0xff] }
0x1928   :  { %4869 = vmax.xlane.f32.xlu1 %v4868_v48  ;;  %v7993_v49 = vpop.f32.mrf.mxu1 }
0x1929   :  { %v4708_v50 = vsel %vm331_vm2, %v4705_v29, -inf }
0x192a   :  { %4709 = vmax.xlane.f32.xlu0 %v4708_v50 }
0x19b1   :  { %v4870_v51 = vpop.xlane.xlu1 %4869 }
0x19b2   :  { %v4871_v52 = vsub.f32 %v4865_v46, %v4870_v51  ;;  %v7255_v46 = vld [vmem:[%s10044_s4 + $0x13] ss:$0 sm:$0xff]  ;;  %s6596_s4 = scalar_select %p6595_p5, 1, 0 }
0x19b3   :  { %v4710_v53 = vpop.xlane.xlu0 %4709  ;;  %p6432_p5 = scmp.ge.s32.totalorder %s9767_s16, 7 }
0x19b4   :  { %v4872_v54 = vmul.f32 1.442695, %v4871_v52  ;;  %v4711_v55 = vsub.f32 %v4705_v29, %v4710_v53 }
0x19b6   :  { %8188 = vpow2.f32 %v4872_v54  ;;  %v4712_v56 = vmul.f32 1.442695, %v4711_v55 }
0x19b8   :  { %8190 = vpow2.f32 %v4712_v56 }
0x19c3   :  { %v8189_v58 = vpop.eup %8188 }
0x19c4   :  { %v4874_v59 = vsel %vm331_vm2, %v8189_v58, 0.0 }
0x19c5   :  { %v8191_v60 = vpop.eup %8190  ;;  %4875 = vadd.xlane.f32.xlu1 %v4874_v59 }
0x19c6   :  { %v4714_v61 = vsel %vm331_vm2, %v8191_v60, 0.0 }
0x19c7   :  { %4715 = vadd.xlane.f32.xlu0 %v4714_v61 }
0x1a4e   :  { %v4876_v62 = vpop.xlane.xlu1 %4875 }
0x1a50   :  { %v4716_v63 = vpop.xlane.xlu0 %4715 }
0x1a51   :  { %8192 = vrcp.f32 %v4716_v63 }
0x1a52   :  { %8194 = vrcp.f32 %v4876_v62 }
0x1a5e   :  { %v8193_v0 = vpop.eup %8192 }
0x1a5f   :  { %v4718_v57 = vmul.f32 %v8193_v0, %v8191_v60  ;;  %v8195_v1 = vpop.eup %8194 }
0x1a60   :  { %v4878_v3 = vmul.f32 %v8195_v1, %v8189_v58 }
0x1a61   :  { %7997 = vmatmul.mubr.msk.f32.vlgmr.msra.gmra.mxu1 %vm331_vm2, %v4718_v57 }
0x1a62   :  { %8005 = vmatpush3.msra.mxu1 %v4629_v9  ;;  %8006 = vmatprep.mubr.msk.f32.mxu1 %vm8250_vm1, %v8249_v14  ;;  %v4360_v9 = vadd.f32 %v9033_v21, %v9056_v35 }
0x1a63   :  { %8014 = vmatprep.subr.mxu1 %v7241_v2 }
0x1a65   :  { %8007 = vmatmul.mubr.msk.f32.vlgmr.msra.gmra.mxu1 %vm331_vm2, %v4878_v3 }
0x1a66   :  { %8015 = vmatpush3.msra.mxu1 %v7241_v2  ;;  %8022 = vmatprep.mubr.msk.f32.mxu1 %vm77_vm0, %v8833_v12 }
0x1a67   :  { %8016 = vmatprep.subr.mxu1 %v7240_v4 }
0x1a68   :  { %8017 = vmatpush3.msra.mxu1 %v7240_v4 }
0x1a69   :  { %8018 = vmatprep.subr.mxu1 %v7239_v5 }
0x1a6a   :  { %8019 = vmatpush3.msra.mxu1 %v7239_v5 }
0x1a6b   :  { %8020 = vmatprep.subr.mxu1 %v7238_v6 }
0x1a6c   :  { %8021 = vmatpush3.msra.mxu1 %v7238_v6 }
0x1a6d   :  { %8023 = vmatmul.mubr.msk.f32.vlgmr.msra.gmra.mxu1 %vm77_vm0, %v8835_v13  ;;  %8036 = vmatprep.subr.mxu1 %v7249_v7 }
0x1a6e   :  { %8037 = vmatpush3.msra.mxu1 %v7249_v7  ;;  %8044 = vmatprep.mubr.msk.f32.mxu1 %vm77_vm0, %v8833_v12 }
0x1a6f   :  { %8038 = vmatprep.subr.mxu1 %v7248_v10 }
0x1a70   :  { %8039 = vmatpush3.msra.mxu1 %v7248_v10  ;;  %v7268_v10 = vld [vmem:[%s10045_s5 + $0x38] sm:$0xff]  ;;  %s9771_s5 = scalar_select %p6432_p5, 1, 0 }
0x1a71   :  { %8040 = vmatprep.subr.mxu1 %v7247_v11 }
0x1a72   :  { %8041 = vmatpush3.msra.mxu1 %v7247_v11 }
0x1a73   :  { %8042 = vmatprep.subr.mxu1 %v7246_v15 }
0x1a74   :  { %8043 = vmatpush3.msra.mxu1 %v7246_v15 }
0x1a75   :  { %8045 = vmatmul.mubr.msk.f32.vlgmr.msra.gmra.mxu1 %vm77_vm0, %v8835_v13  ;;  %8057 = vmatprep.subr.mxu1 %v8249_v14 }
0x1a76   :  { %8059 = vmatprep.mubr.msk.f32.mxu1 %vm8250_vm1, %v8249_v14 }
0x1b21   :  { %v4788_v22 = vpop.f32.mrf.mxu1 }
0x1b22   :  { %8011 = vmatprep.mubr.msk.f32.mxu0 %vm331_vm2, %v4788_v22 }
0x1b23   :  { %v7998_v23 = vpop.f32.mrf.mxu1 }
0x1b24   :  { %v7278_v23 = vld [vmem:[%s10048_s8 + $0x8] ss:$0 sm:$0xff] }
0x1b25   :  { %v4948_v24 = vpop.f32.mrf.mxu1 }
0x1b26   :  { %8012 = vmatmul.mubr.msk.f32.vlgmr.msra.gmra.mxu0 %vm331_vm2, %v4948_v24 }
0x1b27   :  { %8026 = vmatpush3.msra.mxu0 %v7245_v19  ;;  %v8008_v26 = vpop.f32.mrf.mxu1  ;;  %8033 = vmatprep.mubr.msk.f32.mxu0 %vm77_vm0, %v8833_v12 }
0x1b28   :  { %8027 = vmatprep.subr.mxu0 %v7244_v25 }
0x1b29   :  { %8028 = vmatpush3.msra.mxu0 %v7244_v25 }
0x1b2a   :  { %8029 = vmatprep.subr.mxu0 %v7243_v27 }
0x1b2b   :  { %8030 = vmatpush3.msra.mxu0 %v7243_v27 }
0x1b2c   :  { %8031 = vmatprep.subr.mxu0 %v7242_v31 }
0x1b2d   :  { %8032 = vmatpush3.msra.mxu0 %v7242_v31  ;;  %v8024_v39 = vpop.f32.mrf.mxu1 }
0x1b2e   :  { %8034 = vmatmul.mubr.msk.f32.vlgmr.msra.gmra.mxu0 %vm77_vm0, %v8835_v13  ;;  %8047 = vmatprep.subr.mxu0 %v8249_v14  ;;  %v5131_v21 = vadd.f32 %v8024_v39, %v7251_v20 }
0x1b2f   :  { %8049 = vmatprep.mubr.msk.f32.mxu0 %vm8250_vm1, %v8249_v14  ;;  %v5125_v42 = vpop.f32.mrf.mxu1 }
0x1b30   :  { %v5126_v48 = vadd.f32 %v7251_v20, %v5125_v42 }
0x1b35   :  { %v8046_v44 = vpop.f32.mrf.mxu1 }
0x1b36   :  { %v5297_v37 = vadd.f32 %v8046_v44, %v7259_v43 }
0x1b37   :  { %v5291_v35 = vpop.f32.mrf.mxu1 }
0x1b38   :  { %v5292_v49 = vadd.f32 %v7259_v43, %v5291_v35 }
0x1be6   :  { %v8013_v18 = vpop.f32.mrf.mxu0 }
0x1be7   :  { %v9145_v8 = vadd.f32 %v8013_v18, %v4365_v45 }
0x1be8   :  { %v5025_v41 = vpop.f32.mrf.mxu0 }
0x1be9   :  { %v9147_v28 = vadd.f32 %v5025_v41, %v4360_v9  ;;  %v7282_v9 = vld [vmem:[%s10046_s6 + $0x28] sm:$0xff]  ;;  %v7295_v41 = vld [vmem:[%s10047_s7 + $0x78] sm:$0xff] }
0x1bee   :  { %v8035_v47 = vpop.f32.mrf.mxu0 }
0x1bef   :  { %v5214_v29 = vadd.f32 %v8035_v47, %v7255_v46  ;;  %v7292_v47 = vld [vmem:[%s10047_s7 + $0x60] sm:$0xff] }
0x1bf0   :  { %v5208_v16 = vpop.f32.mrf.mxu0 }
0x1bf1   :  { %v5209_v32 = vadd.f32 %v7255_v46, %v5208_v16  ;;  %8058 = vmatpush3.xpose.msk.msra.mxu1 %vm331_vm2, %v5214_v29  ;;  %v7293_v46 = vld [vmem:[%s10047_s7 + $0x68] sm:$0xff] }
0x1bf2   :  { %8067 = vmatprep.subr.mxu1 %v7268_v10 }
0x1bf3   :  { %8048 = vmatpush3.xpose.msk.msra.mxu0 %vm331_vm2, %v5209_v32 }
0x1bf4   :  { %8060 = vmatmul.mubr.msk.f32.vlgmr.msra.gmra.mxu1 %vm331_vm2, %v5131_v21  ;;  %8052 = vmatprep.subr.mxu0 %v8249_v14 }
0x1bf5   :  { %8068 = vmatpush3.msra.mxu1 %v7268_v10 }
0x1bf6   :  { %8050 = vmatmul.mubr.msk.f32.vlgmr.msra.gmra.mxu0 %vm331_vm2, %v5126_v48  ;;  %8083 = vmatprep.subr.mxu1 %v7295_v41 }
0x1bf7   :  { %8053 = vmatpush3.msra.mxu0 %v5292_v49  ;;  %8054 = vmatprep.mubr.msk.f32.mxu0 %vm8250_vm1, %v8249_v14 }
0x1bf8   :  { %8062 = vmatprep.subr.mxu0 %v8249_v14 }
0x1cb4   :  { %v5532_v50 = vpop.f32.mrf.mxu1 }
0x1cb5   :  { %v5533_v51 = vadd.f32 %v5532_v50, %v8436_v40 }
0x1cb6   :  { %v5372_v52 = vpop.f32.mrf.mxu0  ;;  %v8061_v53 = vpop.f32.mrf.mxu1 }
0x1cb7   :  { %v5373_v54 = vadd.f32 %v5372_v52, %v8433_v38  ;;  %v5536_v55 = vsel %vm331_vm2, %v5533_v51, -inf }
0x1cb8   :  { %5537 = vmax.xlane.f32.xlu1 %v5536_v55  ;;  %v8051_v56 = vpop.f32.mrf.mxu0 }
0x1cb9   :  { %v5376_v58 = vsel %vm331_vm2, %v5373_v54, -inf }
0x1cba   :  { %5377 = vmax.xlane.f32.xlu0 %v5376_v58 }
0x1d41   :  { %v5538_v59 = vpop.xlane.xlu1 %5537 }
0x1d42   :  { %v5539_v60 = vsub.f32 %v5533_v51, %v5538_v59 }
0x1d43   :  { %v5378_v61 = vpop.xlane.xlu0 %5377 }
0x1d44   :  { %v5540_v62 = vmul.f32 1.442695, %v5539_v60  ;;  %v5379_v63 = vsub.f32 %v5373_v54, %v5378_v61  ;;  %v7279_v60 = vld [vmem:[%s10048_s8 + $0x9] ss:$0 sm:$0xff] }
0x1d46   :  { %8196 = vpow2.f32 %v5540_v62  ;;  %v5380_v0 = vmul.f32 1.442695, %v5379_v63 }
0x1d48   :  { %8198 = vpow2.f32 %v5380_v0 }
0x1d53   :  { %v8197_v40 = vpop.eup %8196 }
0x1d54   :  { %v5542_v57 = vsel %vm331_vm2, %v8197_v40, 0.0 }
0x1d55   :  { %v8199_v1 = vpop.eup %8198  ;;  %5543 = vadd.xlane.f32.xlu1 %v5542_v57 }
0x1d56   :  { %v5382_v38 = vsel %vm331_vm2, %v8199_v1, 0.0 }
0x1d57   :  { %5383 = vadd.xlane.f32.xlu0 %v5382_v38 }
0x1dde   :  { %v5544_v2 = vpop.xlane.xlu1 %5543 }
0x1de0   :  { %v5384_v3 = vpop.xlane.xlu0 %5383 }
0x1de1   :  { %8200 = vrcp.f32 %v5384_v3  ;;  %v7290_v3 = vld [vmem:[%s10047_s7 + $0x50] sm:$0xff] }
0x1de2   :  { %8202 = vrcp.f32 %v5544_v2  ;;  %v7291_v2 = vld [vmem:[%s10047_s7 + $0x58] sm:$0xff] }
0x1dee   :  { %v8201_v4 = vpop.eup %8200 }
0x1def   :  { %v5386_v5 = vmul.f32 %v8201_v4, %v8199_v1  ;;  %v8203_v6 = vpop.eup %8202  ;;  %v7289_v4 = vld [vmem:[%s10047_s7 + $0x48] sm:$0xff] }
0x1df0   :  { %v5546_v7 = vmul.f32 %v8203_v6, %v8197_v40  ;;  %v7280_v40 = vld [vmem:[%s10048_s8 + $0xa] ss:$0 sm:$0xff]  ;;  %v7285_v6 = vld [vmem:[%s10048_s8 + $0xb] ss:$0 sm:$0xff] }
0x1df1   :  { %8055 = vmatmul.mubr.msk.f32.vlgmr.msra.gmra.mxu0 %vm331_vm2, %v5386_v5  ;;  %v7288_v5 = vld [vmem:[%s10047_s7 + $0x40] sm:$0xff] }
0x1df2   :  { %8063 = vmatpush3.msra.mxu0 %v5297_v37  ;;  %8064 = vmatprep.mubr.msk.f32.mxu0 %vm8250_vm1, %v8249_v14 }
0x1df5   :  { %8065 = vmatmul.mubr.msk.f32.vlgmr.msra.gmra.mxu0 %vm331_vm2, %v5546_v7 }
0x1eb1   :  { %v5456_v11 = vpop.f32.mrf.mxu0 }
0x1eb2   :  { %8069 = vmatprep.mubr.msk.f32.mxu1 %vm331_vm2, %v5456_v11 }
0x1eb3   :  { %v8056_v15 = vpop.f32.mrf.mxu0 }
0x1eb5   :  { %v5616_v17 = vpop.f32.mrf.mxu0 }
0x1eb6   :  { %8070 = vmatmul.mubr.msk.f32.vlgmr.msra.gmra.mxu1 %vm331_vm2, %v5616_v17 }
0x1eb7   :  { %v8066_v19 = vpop.f32.mrf.mxu0  ;;  %8084 = vmatpush3.msra.mxu1 %v7295_v41 }
0x1f76   :  { %v8071_v22 = vpop.f32.mrf.mxu1 }
0x1f77   :  { %v5703_v14 = vadd.f32 %v8071_v22, %v9145_v8  ;;  %v7281_v8 = vld [vmem:[%s10046_s6 + $0x20] sm:$0xff]  ;;  %v7296_v22 = vld [vmem:[%s10048_s8 + $0xc] ss:$0 sm:$0xff] }
0x1f78   :  { %v5693_v24 = vpop.f32.mrf.mxu1 }
0x1f79   :  { %v5713_v25 = vadd.f32 %v5703_v14, %v8835_v13  ;;  %v5702_v26 = vadd.f32 %v5693_v24, %v9147_v28  ;;  %v7284_v13 = vld [vmem:[%s10046_s6 + $0x38] sm:$0xff]  ;;  %v7294_v28 = vld [vmem:[%s10047_s7 + $0x70] sm:$0xff] }
0x1f7a   :  { %8072 = vmatprep.subr.mxu0 %v7284_v13  ;;  %8085 = vmatprep.subr.mxu1 %v7294_v28 }
0x1f7b   :  { %v5719_v27 = vadd.f32 %v7278_v23, %v5713_v25  ;;  %v5712_v31 = vadd.f32 %v5702_v26, %v8833_v12  ;;  %v7283_v12 = vld [vmem:[%s10046_s6 + $0x30] sm:$0xff]  ;;  %8073 = vmatpush3.msra.mxu0 %v7284_v13  ;;  %8086 = vmatpush3.msra.mxu1 %v7294_v28  ;;  %v5994_v13 = vld [vmem:[%s10049_s9 + $0x8] sm:$0xff]  ;;  %s6724_s6 = scalar_select %p6723_p0, 1, 0 }
0x1f7c   :  { %8074 = vmatprep.subr.mxu0 %v7283_v12  ;;  %8087 = vmatprep.subr.mxu1 %v7293_v46  ;;  %p6957_p0 = scmp.ge.s32.totalorder %s9779_s0, 2 }
0x1f7d   :  { %v5718_v39 = vadd.f32 %v7278_v23, %v5712_v31  ;;  %v5723_v42 = vsel %vm77_vm0, %v5719_v27, 0.0  ;;  %v5729_v43 = vmul.f32 %v5719_v27, %v5719_v27  ;;  %8075 = vmatpush3.msra.mxu0 %v7283_v12  ;;  %8088 = vmatpush3.msra.mxu1 %v7293_v46  ;;  %v5993_v12 = vld [vmem:[%s10049_s9] sm:$0xff] }
0x1f7e   :  { %5724 = vadd.xlane.f32.xlu1 %v5723_v42  ;;  %8076 = vmatprep.subr.mxu0 %v7282_v9  ;;  %s9852_s7 = scalar_select %p6957_p0, 1, 0 }
0x1f7f   :  { %v5720_v44 = vsel %vm77_vm0, %v5718_v39, 0.0  ;;  %v5728_v37 = vmul.f32 %v5718_v39, %v5718_v39  ;;  %v5733_v45 = vsel %vm77_vm0, %v5729_v43, 0.0  ;;  %8077 = vmatpush3.msra.mxu0 %v7282_v9  ;;  %8089 = vmatprep.subr.mxu1 %v7292_v47 }
0x1f80   :  { %5721 = vadd.xlane.f32.xlu0 %v5720_v44  ;;  %8078 = vmatprep.subr.mxu0 %v7281_v8 }
0x1f81   :  { %v5730_v18 = vsel %vm77_vm0, %v5728_v37, 0.0  ;;  %8079 = vmatpush3.msra.mxu0 %v7281_v8  ;;  %8090 = vmatpush3.msra.mxu1 %v7292_v47 }
0x1f82   :  { %5734 = vadd.xlane.f32.xlu1 %v5733_v45  ;;  %8091 = vmatprep.subr.mxu1 %v7291_v2  ;;  %v5996_v45 = vld [vmem:[%s10049_s9 + $0x18] sm:$0xff] }
0x1f83   :  { %8092 = vmatpush3.msra.mxu1 %v7291_v2  ;;  %8102 = vmatprep.subr.mxu0 %v5996_v45 }
0x1f84   :  { %5731 = vadd.xlane.f32.xlu0 %v5730_v18  ;;  %8093 = vmatprep.subr.mxu1 %v7290_v3  ;;  %v5995_v18 = vld [vmem:[%s10049_s9 + $0x10] sm:$0xff]  ;;  %s6323_s9 = scalar_select %p6322_p1, 1, 0 }
0x1f85   :  { %8094 = vmatpush3.msra.mxu1 %v7290_v3  ;;  %v9290_v3 = vld [vmem:[%s10050_s10 + $0x8] sm:$0x1f]  ;;  %p6936_p1 = scmp.ge.s32.totalorder %s9779_s0, 3 }
0x1f86   :  { %8095 = vmatprep.subr.mxu1 %v7289_v4 }
0x1f87   :  { %8096 = vmatpush3.msra.mxu1 %v7289_v4 }
0x1f88   :  { %8097 = vmatprep.subr.mxu1 %v7288_v5 }
0x1f89   :  { %8098 = vmatpush3.msra.mxu1 %v7288_v5 }
0x2007   :  { %v5725_v20 = vpop.xlane.xlu1 %5724 }
0x2008   :  { %v5727_v29 = vmul.f32 0.03125, %v5725_v20 }
0x2009   :  { %v5722_v16 = vpop.xlane.xlu0 %5721 }
0x200a   :  { %v5726_v32 = vmul.f32 0.03125, %v5722_v16  ;;  %v5739_v35 = vmul.f32 %v5727_v29, %v5727_v29  ;;  %v5743_v56 = vsub.f32 %v5719_v27, %v5727_v29 }
0x200b   :  { %v5735_v21 = vpop.xlane.xlu1 %5734 }
0x200c   :  { %v5737_v48 = vmul.f32 0.03125, %v5735_v21  ;;  %v5738_v50 = vmul.f32 %v5726_v32, %v5726_v32  ;;  %v5742_v59 = vsub.f32 %v5718_v39, %v5726_v32 }
0x200d   :  { %v5732_v49 = vpop.xlane.xlu0 %5731 }
0x200e   :  { %v5741_v51 = vsub.f32 %v5737_v48, %v5739_v35  ;;  %v5736_v52 = vmul.f32 0.03125, %v5732_v49 }
0x2010   :  { %v5745_v53 = vadd.f32 1e-05, %v5741_v51  ;;  %v5740_v54 = vsub.f32 %v5736_v52, %v5738_v50 }
0x2012   :  { %8204 = vrsqrt.f32 %v5745_v53  ;;  %v5744_v55 = vadd.f32 1e-05, %v5740_v54  ;;  %v7299_v53 = vld [vmem:[%s10048_s8 + $0xd] ss:$0 sm:$0xff] }
0x2014   :  { %8206 = vrsqrt.f32 %v5744_v55 }
0x201f   :  { %v8205_v58 = vpop.eup %8204 }
0x2020   :  { %v5749_v61 = vmul.f32 %v8205_v58, %v5743_v56 }
0x2021   :  { %v8207_v62 = vpop.eup %8206 }
0x2022   :  { %v5748_v63 = vmul.f32 %v8207_v62, %v5742_v59  ;;  %v5755_v0 = vmul.f32 %v7279_v60, %v5749_v61  ;;  %v7300_v59 = vld [vmem:[%s10048_s8 + $0xe] ss:$0 sm:$0xff]  ;;  %s6162_s8 = scalar_select %p6161_p6, 1, 0 }
0x2023   :  { %p6458_p6 = scmp.ge.s32.totalorder %s9767_s16, 6 }
0x2024   :  { %v5754_v57 = vmul.f32 %v7279_v60, %v5748_v63  ;;  %v5761_v38 = vadd.f32 %v7280_v40, %v5755_v0  ;;  %v9272_v63 = vand.u32 127, %v326_v30  ;;  %v7301_v0 = vld [vmem:[%s10050_s10 + $0x12] ss:$0 sm:$0xff] }
0x2025   :  { %s9775_s1 = scalar_select %p6458_p6, 1, 0 }
0x2026   :  { %v5760_v1 = vadd.f32 %v7280_v40, %v5754_v57  ;;  %vm6092_vm6 = vcmp.eq.s32.totalorder %v8425_v33, %v9272_v63  ;;  %v6597_v40 = vstv %s6596_s4 }
0x2027   :  { %v9283_v2 = vsel %vm6092_vm6, 0.0, %v8251_v34  ;;  %vm9292_vm7 = vcmp.eq.s32.totalorder %v6597_v40, 1 }
0x2028   :  { %8080 = vmatprep.mubr.msk.f32.mxu0 %vm77_vm0, %v5760_v1 }
0x2029   :  { %8081 = vmatmul.mubr.msk.f32.vlgmr.msra.gmra.mxu0 %vm77_vm0, %v5761_v38 }
0x202a   :  { %8103 = vmatpush3.msra.mxu0 %v5996_v45  ;;  %v9353_v45 = vld [vmem:[%s10050_s10] sm:$0x1f] }
0x202b   :  { %8104 = vmatprep.subr.mxu0 %v5995_v18 }
0x202c   :  { %8105 = vmatpush3.msra.mxu0 %v5995_v18 }
0x202d   :  { %8106 = vmatprep.subr.mxu0 %v5994_v13 }
0x202e   :  { %8107 = vmatpush3.msra.mxu0 %v5994_v13 }
0x202f   :  { %8108 = vmatprep.subr.mxu0 %v5993_v12 }
0x2030   :  { %8109 = vmatpush3.msra.mxu0 %v5993_v12  ;;  %v6629_v12 = vstv %s6628_s21  ;;  %s9846_s21 = scalar_select %p6936_p1, 1, 0 }
0x2031   :  { %vm9365_vm11 = vcmp.eq.s32.totalorder %v6629_v12, 1  ;;  %v6324_v12 = vstv %s6323_s9 }
0x2032   :  { %vm9517_vm6 = vcmp.eq.s32.totalorder %v6324_v12, 1 }
0x20e9   :  { %v8082_v7 = vpop.f32.mrf.mxu0 }
0x20ea   :  { %v5849_v10 = vadd.f32 %v8082_v7, %v7285_v6 }
0x20eb   :  { %v5843_v11 = vpop.f32.mrf.mxu0 }
0x20ec   :  { %v5844_v15 = vadd.f32 %v7285_v6, %v5843_v11  ;;  %v5853_v19 = vmax.f32 %v5849_v10, 0.0  ;;  %v6599_v10 = vsel %vm9292_vm7, %v9290_v3, %v9283_v2 }
0x20ee   :  { %v5852_v17 = vmax.f32 %v5844_v15, 0.0 }
0x20f0   :  { %8099 = vmatprep.mubr.msk.f32.mxu1 %vm2903_vm5, %v5852_v17 }
0x20f1   :  { %8100 = vmatmul.mubr.msk.f32.vlgmr.msra.gmra.mxu1 %vm2903_vm5, %v5853_v19 }
0x21b1   :  { %v8101_v14 = vpop.f32.mrf.mxu1 }
0x21b2   :  { %v5945_v23 = vadd.f32 %v8101_v14, %v7296_v22 }
0x21b3   :  { %v5939_v24 = vpop.f32.mrf.mxu1 }
0x21b4   :  { %v5949_v25 = vadd.f32 %v5945_v23, %v5761_v38  ;;  %v5940_v26 = vadd.f32 %v7296_v22, %v5939_v24  ;;  %v6163_v38 = vstv %s6162_s8 }
0x21b5   :  { %vm9303_vm8 = vcmp.eq.s32.totalorder %v6163_v38, 1 }
0x21b6   :  { %v5948_v27 = vadd.f32 %v5940_v26, %v5760_v1  ;;  %v5953_v31 = vsel %vm77_vm0, %v5949_v25, 0.0  ;;  %v5959_v39 = vmul.f32 %v5949_v25, %v5949_v25  ;;  %v6086_v1 = vld [vmem:[%s10050_s10 + $0x10] sm:$0x1]  ;;  %v6165_v17 = vsel %vm9303_vm8, %v9290_v3, %v9283_v2 }
0x21b7   :  { %5954 = vadd.xlane.f32.xlu1 %v5953_v31 }
0x21b8   :  { %v5950_v42 = vsel %vm77_vm0, %v5948_v27, 0.0  ;;  %v5958_v43 = vmul.f32 %v5948_v27, %v5948_v27  ;;  %v5963_v44 = vsel %vm77_vm0, %v5959_v39, 0.0 }
0x21b9   :  { %5951 = vadd.xlane.f32.xlu0 %v5950_v42 }
0x21ba   :  { %v5960_v37 = vsel %vm77_vm0, %v5958_v43, 0.0 }
0x21bb   :  { %5964 = vadd.xlane.f32.xlu1 %v5963_v44 }
0x21bd   :  { %5961 = vadd.xlane.f32.xlu0 %v5960_v37 }
0x2240   :  { %v5955_v9 = vpop.xlane.xlu1 %5954 }
0x2241   :  { %v5957_v8 = vmul.f32 0.03125, %v5955_v9 }
0x2242   :  { %v5952_v41 = vpop.xlane.xlu0 %5951 }
0x2243   :  { %v5956_v28 = vmul.f32 0.03125, %v5952_v41  ;;  %v5969_v47 = vmul.f32 %v5957_v8, %v5957_v8  ;;  %v5973_v50 = vsub.f32 %v5949_v25, %v5957_v8  ;;  %v8252_v25 = vmov 1  }
0x2244   :  { %v5965_v46 = vpop.xlane.xlu1 %5964 }
0x2245   :  { %v5967_v20 = vmul.f32 0.03125, %v5965_v46  ;;  %v5968_v16 = vmul.f32 %v5956_v28, %v5956_v28  ;;  %v5972_v52 = vsub.f32 %v5948_v27, %v5956_v28  ;;  %v6631_v28 = vsel %vm9365_vm11, %v9353_v45, %v9283_v2 }
0x2246   :  { %v5962_v29 = vpop.xlane.xlu0 %5961 }
0x2247   :  { %v5971_v32 = vsub.f32 %v5967_v20, %v5969_v47  ;;  %v5966_v21 = vmul.f32 0.03125, %v5962_v29 }
0x2249   :  { %v5975_v35 = vadd.f32 1e-05, %v5971_v32  ;;  %v5970_v48 = vsub.f32 %v5966_v21, %v5968_v16 }
0x224b   :  { %8208 = vrsqrt.f32 %v5975_v35  ;;  %v5974_v49 = vadd.f32 1e-05, %v5970_v48 }
0x224d   :  { %8210 = vrsqrt.f32 %v5974_v49 }
0x2258   :  { %v8209_v51 = vpop.eup %8208 }
0x2259   :  { %v5979_v54 = vmul.f32 %v8209_v51, %v5973_v50 }
0x225a   :  { %v8211_v55 = vpop.eup %8210 }
0x225b   :  { %v5978_v56 = vmul.f32 %v8211_v55, %v5972_v52  ;;  %v5985_v58 = vmul.f32 %v7299_v53, %v5979_v54  ;;  %v6228_v52 = vstv %s6227_s23  ;;  %v6233_v55 = vsub.s32 2, %v8425_v33 }
0x225c   :  { %vm9390_vm13 = vcmp.eq.s32.totalorder %v6228_v52, 1 }
0x225d   :  { %v5984_v60 = vmul.f32 %v7299_v53, %v5978_v56  ;;  %v5991_v62 = vadd.f32 %v7300_v59, %v5985_v58 }
0x225f   :  { %v5990_v61 = vadd.f32 %v7300_v59, %v5984_v60  ;;  %v6356_v60 = vstv %s6355_s3 }
0x2261   :  { %8110 = vmatprep.mubr.msk.f32.mxu0 %vm77_vm0, %v5990_v61  ;;  %v6230_v61 = vsel %vm9390_vm13, %v9290_v3, %v9283_v2 }
0x2262   :  { %8111 = vmatmul.mubr.msk.f32.vlgmr.msra.gmra.mxu0 %vm77_vm0, %v5991_v62  ;;  %v6661_v62 = vstv %s6660_s24 }
0x2263   :  { %vm9408_vm15 = vcmp.eq.s32.totalorder %v6661_v62, 1  ;;  %v6725_v62 = vstv %s6724_s6 }
0x2264   :  { %vm9489_vm5 = vcmp.eq.s32.totalorder %v6725_v62, 1 }
0x2322   :  { %v8112_v57 = vpop.f32.mrf.mxu0 }
0x2323   :  { %v9285_v30 = vadd.f32 %v8112_v57, %v7301_v0 }
0x2324   :  { %v6073_v5 = vpop.f32.mrf.mxu0 }
0x2325   :  { %6083 = vst [vmem:[%s10051_s11 + $0x8] sm:$0xff] %v9285_v30  ;;  %v9300_v6 = vadd.f32 %v7301_v0, %v6073_v5  ;;  %v6594_v34 = vadd.f32 %v6086_v1, %v9285_v30  ;;  %v6657_v57 = vsel %vm9365_vm11, %v9285_v30, 0.0  ;;  %v6663_v5 = vsel %vm9408_vm15, %v9290_v3, %v9283_v2 }
0x2327   :  { %6082 = vst [vmem:[%s10051_s11] sm:$0xff] %v9300_v6  ;;  %v6603_v11 = vrot.slane %v6594_v34, %v8429_v36  ;;  %v6160_v15 = vadd.f32 %v6086_v1, %v9300_v6  ;;  %s6195_s11 = scalar_select %p6194_p7, 1, 0 }
0x2328   :  { %p6475_p7 = scmp.ge.s32.totalorder %s9767_s16, 5 }
0x2329   :  { %v9321_v19 = vadd.f32 %v6603_v11, %v6599_v10  ;;  %v6169_v22 = vrot.slane %v6160_v15, %v8429_v36  ;;  %v6196_v37 = vstv %s6195_s11  ;;  %v8253_v15 = vmov 3   ;;  %s9837_s11 = scalar_select %p6921_p13, 1, 0 }
0x232a   :  { %vm9355_vm10 = vcmp.eq.s32.totalorder %v6196_v37, 1  ;;  %v6693_v37 = vstv %s6692_s26  ;;  %s9781_s2 = scalar_select %p6475_p7, 1, 0 }
0x232b   :  { %v6605_v14 = vsel %vm6171_vm9, %v9321_v19, -inf  ;;  %v9326_v23 = vadd.f32 %v6169_v22, %v6165_v17  ;;  %v6198_v13 = vsel %vm9355_vm10, %v9353_v45, %v9283_v2  ;;  %v6224_v56 = vsel %vm9355_vm10, %v9300_v6, 0.0  ;;  %s8257_s26 = smov [#allocation4]  }
0x232c   :  { %6606 = vmax.xlane.f32.xlu1 %v6605_v14  ;;  %vm9446_vm1 = vcmp.eq.s32.totalorder %v6693_v37, 1  ;;  %vm9552_vm10 = vcmp.eq.s32.totalorder %v6356_v60, 1  ;;  %v8256_v60 = vmov 7  }
0x232d   :  { %v6172_v24 = vsel %vm6171_vm9, %v9326_v23, -inf }
0x232e   :  { %6173 = vmax.xlane.f32.xlu0 %v6172_v24 }
0x235b   :  { %6128 = vxpose.xlu0.b32.start.end [1/1] (short) (narrow) %v9300_v6, 8 }
0x235f   :  { %6562 = vxpose.xlu1.b32.start.end [1/1] (short) (narrow) %v9285_v30, 8 }
0x237d   :  { %8126 = vset.pattern.permute.xlu1 %v8252_v25 }
0x2384   :  { %8125 = vset.pattern.permute.xlu0 %v8252_v25 }
0x23b5   :  { %v9334_v26 = vpop.xlane.xlu1 %6606 }
0x23b7   :  { %v9332_v36 = vpop.xlane.xlu0 %6173 }
0x23d7   :  { %v9336_v27 = vpop.trf.xlu0 }
0x23d8   :  { %v6192_v31 = vsel %vm9303_vm8, %v9336_v27, 0.0  ;;  %v6256_v17 = vsel %vm9390_vm13, %v9336_v27, 0.0 }
0x23d9   :  { %v6193_v39 = vadd.f32 %v6192_v31, %v9332_v36 }
0x23db   :  { %v9342_v42 = vpop.trf.xlu1  ;;  %6201 = vperm.xlu0 %8125, %v6193_v39   ;;  %v6260_v39 = vstv %s6259_s25  ;;  %s6553_s25 = scalar_select %p6551_p4, 1, 0 }
0x23dc   :  { %v6625_v43 = vsel %vm9292_vm7, %v9342_v42, 0.0  ;;  %v6689_v24 = vsel %vm9408_vm15, %v9342_v42, 0.0  ;;  %vm9436_vm0 = vcmp.eq.s32.totalorder %v6260_v39, 1 }
0x23dd   :  { %v6626_v44 = vadd.f32 %v6625_v43, %v9334_v26 }
0x23df   :  { %6634 = vperm.xlu1 %8126, %v6626_v44   ;;  %8127 = vset.pattern.permute.xlu0 %v8253_v15  ;;  %v6262_v44 = vsel %vm9436_vm0, %v9353_v45, %v9283_v2 }
0x23e3   :  { %8128 = vset.pattern.permute.xlu1 %v8253_v15 }
0x2456   :  { %v6202_v9 = vpop.permute.xlu0 %6201 }
0x2457   :  { %v9363_v8 = vadd.f32 %v6202_v9, %v6198_v13  ;;  %v6695_v9 = vsel %vm9446_vm1, %v9353_v45, %v9283_v2 }
0x2459   :  { %v6205_v46 = vsel %vm6171_vm9, %v9363_v8, -inf }
0x245a   :  { %v6206_v47 = vrot.slane %v6205_v46, 4  ;;  %v6635_v20 = vpop.permute.xlu1 %6634 }
0x245b   :  { %v9376_v29 = vadd.f32 %v6635_v20, %v6631_v28 }
0x245c   :  { %v6207_v16 = vmax.f32 %v6205_v46, %v6206_v47 }
0x245d   :  { %v6638_v32 = vsel %vm6171_vm9, %v9376_v29, -inf }
0x245e   :  { %v6208_v21 = vrot.slane %v6207_v16, 2  ;;  %v6639_v35 = vrot.slane %v6638_v32, 4 }
0x2460   :  { %v6209_v48 = vmax.f32 %v6207_v16, %v6208_v21  ;;  %v6640_v49 = vmax.f32 %v6638_v32, %v6639_v35 }
0x2462   :  { %v6210_v50 = vrot.slane %v6209_v48, 1  ;;  %v6641_v51 = vrot.slane %v6640_v49, 2 }
0x2464   :  { %v9381_v53 = vmax.f32 %v6209_v48, %v6210_v50  ;;  %v6642_v54 = vmax.f32 %v6640_v49, %v6641_v51  ;;  %v6292_v51 = vstv %s6291_s27  ;;  %s6987_s27 = sshll.u32 %s8257_s26, 4  ;;  %s6988_s27 = int_to_ptr.vmem [resolvable:$true] %s6987_s27 }
0x2465   :  { %vm9471_vm3 = vcmp.eq.s32.totalorder %v6292_v51, 1  ;;  %s8224_s6 = scalar_lea.vmem %s6988_s27, 32  ;;  %p8229_p6 = scmp.lt.s32.totalorder %s6988_s27, %s6988_s27 }
0x2466   :  { %vm6212_vm12 = vcmp.ge.f32.partialorder %v9363_v8, %v9381_v53  ;;  %v6225_v58 = vadd.f32 %v6224_v56, %v9381_v53  ;;  %v6643_v59 = vrot.slane %v6642_v54, 1  ;;  %v6288_v56 = vsel %vm9436_vm0, %v9300_v6, 0.0  ;;  %p8225_p5 = scmp.ne.s32.totalorder %s6988_s27, %s8224_s6  ;;  %p8230_p7 = scmp.lt.s32.totalorder %s8224_s6, %s8224_s6 }
0x2468   :  { %v9398_v0 = vmax.f32 %v6642_v54, %v6643_v59  ;;  %v6234_v40 = vrot.slane %v6225_v58, %v6233_v55  ;;  %p8231_p8 = por %p8230_p7, %p8229_p6 }
0x246a   :  { %vm6645_vm14 = vcmp.ge.f32.partialorder %v9376_v29, %v9398_v0  ;;  %v6658_v1 = vadd.f32 %v6657_v57, %v9398_v0  ;;  %v9406_v38 = vadd.f32 %v6234_v40, %v6230_v61  ;;  %v6294_v61 = vsel %vm9471_vm3, %v9290_v3, %v9283_v2  ;;  %p8232_p9 = pnand %p8231_p8, %p8225_p5 }
0x246c   :  { %v6236_v34 = vsel %vm6171_vm9, %v9406_v38, -inf  ;;  %v6667_v7 = vrot.slane %v6658_v1, %v6233_v55  ;;  %v6297_v55 = vsub.s32 4, %v8425_v33  ;;  %v6721_v1 = vsel %vm9446_vm1, %v9285_v30, 0.0 }
0x246d   :  { %6237 = vmax.xlane.f32.xlu1 %v6236_v34 }
0x246e   :  { %v9418_v10 = vadd.f32 %v6667_v7, %v6663_v5  ;;  %v6727_v7 = vsel %vm9489_vm5, %v9290_v3, %v9283_v2 }
0x2470   :  { %v6669_v11 = vsel %vm6171_vm9, %v9418_v10, -inf }
0x2471   :  { %6670 = vmax.xlane.f32.xlu0 %v6669_v11 }
0x24f6   :  { %v9425_v22 = vpop.xlane.xlu1 %6237 }
0x24f7   :  { %v6257_v14 = vadd.f32 %v6256_v17, %v9425_v22 }
0x24f9   :  { %6265 = vperm.xlu0 %8127, %v6257_v14  }
0x24fa   :  { %v9431_v25 = vpop.xlane.xlu0 %6670 }
0x24fb   :  { %v6690_v31 = vadd.f32 %v6689_v24, %v9431_v25  ;;  %v8254_v24 = vmov 5  }
0x24fd   :  { %6698 = vperm.xlu1 %8128, %v6690_v31   ;;  %v6320_v31 = vsel %vm9471_vm3, %v9336_v27, 0.0 }
0x2501   :  { %8129 = vset.pattern.permute.xlu1 %v8254_v24 }
0x2574   :  { %v6266_v18 = vpop.permute.xlu0 %6265 }
0x2575   :  { %v9444_v13 = vadd.f32 %v6266_v18, %v6262_v44  ;;  %v6753_v44 = vsel %vm9489_vm5, %v9342_v42, 0.0 }
0x2577   :  { %v6269_v41 = vsel %vm6171_vm9, %v9444_v13, -inf }
0x2578   :  { %v6270_v28 = vrot.slane %v6269_v41, 4  ;;  %v6699_v46 = vpop.permute.xlu1 %6698 }
0x2579   :  { %v9457_v47 = vadd.f32 %v6699_v46, %v6695_v9 }
0x257a   :  { %v6271_v20 = vmax.f32 %v6269_v41, %v6270_v28  ;;  %v6326_v41 = vsel %vm9517_vm6, %v9353_v45, %v9283_v2  ;;  %v6757_v28 = vstv %s6756_s28 }
0x257b   :  { %v6702_v16 = vsel %vm6171_vm9, %v9457_v47, -inf  ;;  %vm9527_vm7 = vcmp.eq.s32.totalorder %v6757_v28, 1 }
0x257c   :  { %v6272_v32 = vrot.slane %v6271_v20, 2  ;;  %v6703_v21 = vrot.slane %v6702_v16, 4 }
0x257e   :  { %v6273_v35 = vmax.f32 %v6271_v20, %v6272_v32  ;;  %v6704_v48 = vmax.f32 %v6702_v16, %v6703_v21  ;;  %v6759_v32 = vsel %vm9527_vm7, %v9353_v45, %v9283_v2 }
0x2580   :  { %v6274_v49 = vrot.slane %v6273_v35, 1  ;;  %v6705_v50 = vrot.slane %v6704_v48, 2 }
0x2582   :  { %v9462_v52 = vmax.f32 %v6273_v35, %v6274_v49  ;;  %v6706_v54 = vmax.f32 %v6704_v48, %v6705_v50 }
0x2584   :  { %vm6276_vm2 = vcmp.ge.f32.partialorder %v9444_v13, %v9462_v52  ;;  %v6289_v58 = vadd.f32 %v6288_v56, %v9462_v52  ;;  %v6707_v59 = vrot.slane %v6706_v54, 1 }
0x2586   :  { %v9479_v40 = vmax.f32 %v6706_v54, %v6707_v59  ;;  %v6298_v57 = vrot.slane %v6289_v58, %v6297_v55 }
0x2588   :  { %vm6709_vm4 = vcmp.ge.f32.partialorder %v9457_v47, %v9479_v40  ;;  %v6722_v4 = vadd.f32 %v6721_v1, %v9479_v40  ;;  %v9487_v5 = vadd.f32 %v6298_v57, %v6294_v61  ;;  %v6361_v57 = vsub.s32 6, %v8425_v33 }
0x2589   :  { %v6352_v1 = vsel %vm9517_vm6, %v9300_v6, 0.0  ;;  %v6785_v6 = vsel %vm9527_vm7, %v9285_v30, 0.0  ;;  %vm6391_vm6 = vcmask 61496  }
0x258a   :  { %v6300_v11 = vsel %vm6171_vm9, %v9487_v5, -inf  ;;  %v6731_v15 = vrot.slane %v6722_v4, %v6297_v55 }
0x258b   :  { %6301 = vmax.xlane.f32.xlu1 %v6300_v11  ;;  %v6358_v11 = vsel %vm9552_vm10, %v9290_v3, %v9283_v2 }
0x258c   :  { %v9499_v17 = vadd.f32 %v6731_v15, %v6727_v7  ;;  %v6789_v15 = vstv %s6788_s29 }
0x258d   :  { %vm9568_vm13 = vcmp.eq.s32.totalorder %v6789_v15, 1 }
0x258e   :  { %v6733_v14 = vsel %vm6171_vm9, %v9499_v17, -inf }
0x258f   :  { %6734 = vmax.xlane.f32.xlu0 %v6733_v14 }
0x2614   :  { %v9506_v39 = vpop.xlane.xlu1 %6301 }
0x2615   :  { %v6321_v43 = vadd.f32 %v6320_v31, %v9506_v39  ;;  %vm6303_vm3 = vcmp.ge.f32.partialorder %v9487_v5, %v9506_v39  ;;  %v6384_v5 = vsel %vm9552_vm10, %v9336_v27, 0.0  ;;  %v6817_v39 = vsel %vm9568_vm13, %v9342_v42, 0.0 }
0x2617   :  { %6329 = vperm.xlu1 %8129, %v6321_v43  }
0x2618   :  { %v9512_v37 = vpop.xlane.xlu0 %6734 }
0x2619   :  { %v6754_v18 = vadd.f32 %v6753_v44, %v9512_v37 }
0x261b   :  { %6762 = vperm.xlu1 %8129, %v6754_v18   ;;  %v6791_v18 = vsel %vm9568_vm13, %v9290_v3, %v9283_v2 }
0x261f   :  { %8131 = vset.pattern.permute.xlu1 %v8256_v60 }
0x2692   :  { %v6330_v46 = vpop.permute.xlu1 %6329 }
0x2693   :  { %v9525_v20 = vadd.f32 %v6330_v46, %v6326_v41 }
0x2695   :  { %v6333_v21 = vsel %vm6171_vm9, %v9525_v20, -inf }
0x2696   :  { %v6334_v35 = vrot.slane %v6333_v21, 4  ;;  %v6763_v48 = vpop.permute.xlu1 %6762 }
0x2697   :  { %v9538_v49 = vadd.f32 %v6763_v48, %v6759_v32 }
0x2698   :  { %v6335_v50 = vmax.f32 %v6333_v21, %v6334_v35 }
0x2699   :  { %v6766_v51 = vsel %vm6171_vm9, %v9538_v49, -inf }
0x269a   :  { %v6336_v54 = vrot.slane %v6335_v50, 2  ;;  %v6767_v55 = vrot.slane %v6766_v51, 4 }
0x269c   :  { %v6337_v56 = vmax.f32 %v6335_v50, %v6336_v54  ;;  %v6768_v58 = vmax.f32 %v6766_v51, %v6767_v55  ;;  %v6087_v51 = vld [vmem:[%s10050_s10 + $0x11] sm:$0x1] }
0x269e   :  { %v6338_v59 = vrot.slane %v6337_v56, 1  ;;  %v6769_v45 = vrot.slane %v6768_v58, 2 }
0x26a0   :  { %v9543_v61 = vmax.f32 %v6337_v56, %v6338_v59  ;;  %v6770_v62 = vmax.f32 %v6768_v58, %v6769_v45 }
0x26a2   :  { %vm6340_vm8 = vcmp.ge.f32.partialorder %v9525_v20, %v9543_v61  ;;  %v6353_v4 = vadd.f32 %v6352_v1, %v9543_v61  ;;  %v6771_v34 = vrot.slane %v6770_v62, 1 }
0x26a4   :  { %v9560_v14 = vmax.f32 %v6770_v62, %v6771_v34  ;;  %v6362_v24 = vrot.slane %v6353_v4, %v6361_v57  ;;  %v6304_v62 = vsel %vm6303_vm3, %v9272_v63, 5 }
0x26a5   :  { %v9591_v1 = vsel %vm6171_vm9, %v6304_v62, 2147483647 }
0x26a6   :  { %vm6773_vm11 = vcmp.ge.f32.partialorder %v9538_v49, %v9560_v14  ;;  %v6786_v31 = vadd.f32 %v6785_v6, %v9560_v14  ;;  %v6363_v43 = vadd.f32 %v6362_v24, %v6358_v11  ;;  %v6307_v34 = vshra.s32 %v9591_v1, 16 }
0x26a8   :  { %v6364_v12 = vsel %vm6171_vm9, %v6363_v43, -inf  ;;  %v6795_v9 = vrot.slane %v6786_v31, %v6361_v57  ;;  %v9595_v15 = vcvt.s32.f32 %v6307_v34 }
0x26a9   :  { %6365 = vmax.xlane.f32.xlu1 %v6364_v12 }
0x26aa   :  { %v6796_v30 = vadd.f32 %v6795_v9, %v6791_v18 }
0x26ac   :  { %v6797_v41 = vsel %vm6171_vm9, %v6796_v30, -inf }
0x26ad   :  { %6798 = vmax.xlane.f32.xlu0 %v6797_v41 }
0x2732   :  { %v6366_v28 = vpop.xlane.xlu1 %6365 }
0x2733   :  { %vm6367_vm15 = vcmp.ge.f32.partialorder %v6363_v43, %v6366_v28  ;;  %v6385_v24 = vadd.f32 %v6384_v5, %v6366_v28 }
0x2734   :  { %v6368_v46 = vsel %vm6367_vm15, %v9272_v63, 5 }
0x2735   :  { %v6369_v2 = vsel %vm6171_vm9, %v6368_v46, 2147483647 }
0x2736   :  { %v6799_v16 = vpop.xlane.xlu0 %6798  ;;  %v6371_v48 = vshra.s32 %v6369_v2, 16  ;;  %v6370_v57 = vand.u32 65535, %v6369_v2 }
0x2737   :  { %vm6800_vm0 = vcmp.ge.f32.partialorder %v6796_v30, %v6799_v16  ;;  %v6818_v6 = vadd.f32 %v6817_v39, %v6799_v16 }
0x2738   :  { %v6801_v32 = vsel %vm6800_vm0, %v9272_v63, 5  ;;  %v6373_v50 = vcvt.s32.f32 %v6371_v48  ;;  %v6372_v4 = vcvt.s32.f32 %v6370_v57 }
0x2739   :  { %v6802_v21 = vsel %vm6171_vm9, %v6801_v32, 2147483647 }
0x273a   :  { %v6804_v3 = vshra.s32 %v6802_v21, 16  ;;  %v6803_v54 = vand.u32 65535, %v6802_v21 }
0x273c   :  { %v6806_v35 = vcvt.s32.f32 %v6804_v3  ;;  %v6805_v56 = vcvt.s32.f32 %v6803_v54 }
0x273e   :  { %6807 = vmin.xlane.f32.xlu0 %v6806_v35 }
0x2742   :  { %6374 = vmin.xlane.f32.xlu0 %v6373_v50 }
0x276f   :  { %6094 = vxpose.xlu0.b32.start.end [1/1] (short) (narrow) %v6087_v51, 8 }
0x2798   :  { %8130 = vset.pattern.permute.xlu0 %v8256_v60 }
0x27c7   :  { %v6808_v55 = vpop.xlane.xlu0 %6807 }
0x27c8   :  { %vm6809_vm1 = vcmp.eq.f32.partialorder %v6806_v35, %v6808_v55 }
0x27c9   :  { %v6810_v58 = vsel %vm6809_vm1, %v6805_v56, inf  ;;  %v6814_v56 = vcvt.f32.s32 %v6808_v55 }
0x27ca   :  { %6811 = vmin.xlane.f32.xlu0 %v6810_v58 }
0x27cb   :  { %v9585_v59 = vpop.xlane.xlu0 %6374  ;;  %v6815_v57 = vshll.u32 %v6814_v56, 16 }
0x27cc   :  { %vm6376_vm5 = vcmp.eq.f32.partialorder %v6373_v50, %v9585_v59 }
0x27cd   :  { %v6377_v11 = vsel %vm6376_vm5, %v6372_v4, inf }
0x27eb   :  { %v6110_v45 = vpop.trf.xlu0 }
0x27ec   :  { %6387 = vrot.lane.b32.xlu1 %v6110_v45, %s8255_s14 }
0x2810   :  { %6378 = vmin.xlane.f32.xlu1 %v6377_v11 }
0x2814   :  { %6310 = vmin.xlane.f32.xlu1 %v9595_v15 }
0x2853   :  { %v6812_v51 = vpop.xlane.xlu0 %6811 }
0x2854   :  { %v6813_v58 = vcvt.f32.s32 %v6812_v51 }
0x2856   :  { %v6816_v4 = vadd.s32 %v6815_v57, %v6813_v58 }
0x285e   :  { %v6388_v31 = vpop.permute.xlu1 %6387 }
0x285f   :  { %v6390_v43 = vadd.f32 %v6388_v31, %v6385_v24  ;;  %v6819_v18 = vadd.f32 %v6818_v6, %v6388_v31 }
0x2861   :  { %v6392_v12 = vsel %vm6391_vm6, %v6390_v43, -inf  ;;  %v6820_v9 = vsel %vm6391_vm6, %v6819_v18, -inf }
0x2862   :  { %v6393_v30 = vrot.slane %v6392_v12, 4  ;;  %v6821_v41 = vrot.slane %v6820_v9, 4 }
0x2864   :  { %v6394_v46 = vmax.f32 %v6392_v12, %v6393_v30  ;;  %v6822_v32 = vmax.f32 %v6820_v9, %v6821_v41 }
0x2866   :  { %v6395_v7 = vrot.slane %v6394_v46, 2  ;;  %v6823_v27 = vrot.slane %v6822_v32, 2 }
0x2868   :  { %v6824_v21 = vmax.f32 %v6822_v32, %v6823_v27  ;;  %v6396_v2 = vmax.f32 %v6394_v46, %v6395_v7  ;;  %v6381_v32 = vcvt.f32.s32 %v9585_v59 }
0x286a   :  { %v6825_v44 = vrot.slane %v6824_v21, 1  ;;  %v6397_v28 = vrot.slane %v6396_v2, 1  ;;  %v6382_v27 = vshll.u32 %v6381_v32, 16 }
0x286c   :  { %v9606_v42 = vmax.f32 %v6824_v21, %v6825_v44  ;;  %v9611_v48 = vmax.f32 %v6396_v2, %v6397_v28 }
0x286e   :  { %vm6827_vm7 = vcmp.ge.f32.partialorder %v6819_v18, %v9606_v42  ;;  %vm6399_vm13 = vcmp.ge.f32.partialorder %v6390_v43, %v9611_v48 }
0x286f   :  { %v6828_v16 = vsel %vm6827_vm7, %v8425_v33, 5  ;;  %v6400_v60 = vsel %vm6399_vm13, %v8425_v33, 5  ;;  %vm6736_vm13 = vcmp.ge.f32.partialorder %v9499_v17, %v9512_v37  ;;  %v6774_v17 = vsel %vm6773_vm11, %v8425_v33, 5 }
0x2870   :  { %v6829_v3 = vsel %vm6391_vm6, %v6828_v16, 2147483647  ;;  %v6401_v34 = vsel %vm6391_vm6, %v6400_v60, 2147483647  ;;  %v6737_v59 = vsel %vm6736_vm13, %v9272_v63, 5  ;;  %vm6239_vm13 = vcmp.ge.f32.partialorder %v9406_v38, %v9425_v22 }
0x2871   :  { %v6830_v35 = vrot.slane %v6829_v3, 4  ;;  %v6402_v55 = vrot.slane %v6401_v34, 4  ;;  %v6738_v58 = vsel %vm6171_vm9, %v6737_v59, 2147483647  ;;  %v6775_v37 = vsel %vm6171_vm9, %v6774_v17, 2147483647 }
0x2873   :  { %vm6831_vm10 = vcmp.lt.s32.totalorder %v6829_v3, %v6830_v35  ;;  %vm6403_vm3 = vcmp.lt.s32.totalorder %v6401_v34, %v6402_v55 }
0x2874   :  { %v6832_v50 = vsel %vm6831_vm10, %v6829_v3, %v6830_v35  ;;  %v6404_v43 = vsel %vm6403_vm3, %v6401_v34, %v6402_v55  ;;  %vm6444_vm3 = vcmask 39936  }
0x2875   :  { %v6833_v54 = vrot.slane %v6832_v50, 2  ;;  %v6405_v9 = vrot.slane %v6404_v43, 2 }
0x2877   :  { %vm6834_vm15 = vcmp.lt.s32.totalorder %v6832_v50, %v6833_v54  ;;  %vm6406_vm5 = vcmp.lt.s32.totalorder %v6404_v43, %v6405_v9 }
0x2878   :  { %v6835_v45 = vsel %vm6834_vm15, %v6832_v50, %v6833_v54  ;;  %v6407_v41 = vsel %vm6406_vm5, %v6404_v43, %v6405_v9 }
0x2879   :  { %v6836_v62 = vrot.slane %v6835_v45, 1  ;;  %v6408_v46 = vrot.slane %v6407_v41, 1 }
0x287b   :  { %vm6837_vm0 = vcmp.lt.s32.totalorder %v6835_v45, %v6836_v62  ;;  %vm6409_vm7 = vcmp.lt.s32.totalorder %v6407_v41, %v6408_v46 }
0x287c   :  { %v9616_v11 = vsel %vm6837_vm0, %v6835_v45, %v6836_v62  ;;  %v9622_v21 = vsel %vm6409_vm7, %v6407_v41, %v6408_v46  ;;  %v6740_v45 = vshra.s32 %v6738_v58, 16  ;;  %v6306_v62 = vand.u32 65535, %v9591_v1 }
0x287d   :  { %vm6852_vm1 = vcmp.eq.s32.totalorder %v8425_v33, %v9616_v11  ;;  %vm6423_vm10 = vcmp.eq.s32.totalorder %v8425_v33, %v9622_v21 }
0x287e   :  { %v6853_v5 = vsel %vm6852_vm1, %v6816_v4, 0  ;;  %v6742_v57 = vcvt.s32.f32 %v6740_v45  ;;  %v6308_v4 = vcvt.s32.f32 %v6306_v62 }
0x287f   :  { %v6854_v39 = vsel %vm6391_vm6, %v6853_v5, 0  ;;  %v6776_v5 = vrot.slane %v6775_v37, 4 }
0x2880   :  { %v6855_v24 = vrot.slane %v6854_v39, 4 }
0x2881   :  { %vm6777_vm15 = vcmp.lt.s32.totalorder %v6775_v37, %v6776_v5 }
0x2882   :  { %v6856_v6 = vadd.s32 %v6855_v24, %v6854_v39  ;;  %v6778_v55 = vsel %vm6777_vm15, %v6775_v37, %v6776_v5 }
0x2883   :  { %v6779_v39 = vrot.slane %v6778_v55, 2 }
0x2884   :  { %v6857_v31 = vrot.slane %v6856_v6, 2 }
0x2885   :  { %vm6780_vm0 = vcmp.lt.s32.totalorder %v6778_v55, %v6779_v39 }
0x2886   :  { %v6858_v18 = vadd.s32 %v6857_v31, %v6856_v6  ;;  %v6781_v1 = vsel %vm6780_vm0, %v6778_v55, %v6779_v39 }
0x2887   :  { %v6782_v24 = vrot.slane %v6781_v1, 1 }
0x2888   :  { %v6859_v12 = vrot.slane %v6858_v18, 1 }
0x2889   :  { %vm6783_vm1 = vcmp.lt.s32.totalorder %v6781_v1, %v6782_v24 }
0x288a   :  { %v6860_v30 = vadd.s32 %v6859_v12, %v6858_v18  ;;  %v6784_v49 = vsel %vm6783_vm1, %v6781_v1, %v6782_v24 }
0x288c   :  { %6867 = vperm.xlu0 %8130, %v6860_v30  }
0x2899   :  { %v6379_v7 = vpop.xlane.xlu1 %6378 }
0x289a   :  { %v6380_v2 = vcvt.f32.s32 %v6379_v7 }
0x289c   :  { %v6383_v44 = vadd.s32 %v6382_v27, %v6380_v2 }
0x289d   :  { %v9631_v60 = vpop.xlane.xlu1 %6310 }
0x289e   :  { %v6424_v28 = vsel %vm6423_vm10, %v6383_v44, 0  ;;  %v6317_v39 = vcvt.f32.s32 %v9631_v60 }
0x289f   :  { %v6425_v16 = vsel %vm6391_vm6, %v6424_v28, 0  ;;  %vm6312_vm6 = vcmp.eq.f32.partialorder %v9595_v15, %v9631_v60  ;;  %v6341_v15 = vsel %vm6340_vm8, %v8425_v33, 5 }
0x28a0   :  { %v6426_v3 = vrot.slane %v6425_v16, 4  ;;  %v6313_v34 = vsel %vm6312_vm6, %v6308_v4, inf  ;;  %v6342_v31 = vsel %vm6171_vm9, %v6341_v15, 2147483647  ;;  %vm6672_vm6 = vcmp.ge.f32.partialorder %v9418_v10, %v9431_v25 }
0x28a1   :  { %v6343_v9 = vrot.slane %v6342_v31, 4 }
0x28a2   :  { %v6427_v35 = vadd.s32 %v6426_v3, %v6425_v16 }
0x28a3   :  { %vm6344_vm8 = vcmp.lt.s32.totalorder %v6342_v31, %v6343_v9 }
0x28a4   :  { %v6428_v50 = vrot.slane %v6427_v35, 2  ;;  %v6345_v20 = vsel %vm6344_vm8, %v6342_v31, %v6343_v9  ;;  %v6318_v31 = vshll.u32 %v6317_v39, 16 }
0x28a5   :  { %v6346_v61 = vrot.slane %v6345_v20, 2 }
0x28a6   :  { %v6429_v51 = vadd.s32 %v6428_v50, %v6427_v35  ;;  %v6240_v50 = vsel %vm6239_vm13, %v9272_v63, 5 }
0x28a7   :  { %vm6347_vm5 = vcmp.lt.s32.totalorder %v6345_v20, %v6346_v61 }
0x28a8   :  { %v6430_v54 = vrot.slane %v6429_v51, 1  ;;  %v6348_v46 = vsel %vm6347_vm5, %v6345_v20, %v6346_v61 }
0x28a9   :  { %v6349_v32 = vrot.slane %v6348_v46, 1 }
0x28aa   :  { %v6431_v56 = vadd.s32 %v6430_v54, %v6429_v51  ;;  %v6739_v51 = vand.u32 65535, %v6738_v58  ;;  %v9662_v54 = vsel %vm6171_vm9, %v6240_v50, 2147483647  ;;  %v6277_v58 = vsel %vm6276_vm2, %v8425_v33, 5 }
0x28ab   :  { %vm6350_vm7 = vcmp.lt.s32.totalorder %v6348_v46, %v6349_v32  ;;  %v6243_v62 = vshra.s32 %v9662_v54, 16  ;;  %vm6467_vm2 = vcmask 1044480  }
0x28ac   :  { %6439 = vperm.xlu1 %8131, %v6431_v56   ;;  %v6351_v27 = vsel %vm6350_vm7, %v6348_v46, %v6349_v32  ;;  %v6673_v56 = vsel %vm6672_vm6, %v9272_v63, 5  ;;  %v6741_v45 = vcvt.s32.f32 %v6739_v51  ;;  %vm6175_vm7 = vcmp.ge.f32.partialorder %v9326_v23, %v9332_v36 }
0x28ad   :  { %v9670_v38 = vsel %vm6171_vm9, %v6673_v56, 2147483647  ;;  %v9672_v22 = vcvt.s32.f32 %v6243_v62 }
0x28ae   :  { %v6676_v10 = vshra.s32 %v9670_v38, 16 }
0x28b0   :  { %v9676_v25 = vcvt.s32.f32 %v6676_v10 }
0x28d0   :  { %6743 = vmin.xlane.f32.xlu1 %v6742_v57 }
0x28d4   :  { %6314 = vmin.xlane.f32.xlu1 %v6313_v34  ;;  %v6278_v34 = vsel %vm6171_vm9, %v6277_v58, 2147483647 }
0x28d5   :  { %v6279_v37 = vrot.slane %v6278_v34, 4 }
0x28d7   :  { %vm6280_vm0 = vcmp.lt.s32.totalorder %v6278_v34, %v6279_v37 }
0x28d8   :  { %v6281_v1 = vsel %vm6280_vm0, %v6278_v34, %v6279_v37  ;;  %v6242_v37 = vand.u32 65535, %v9662_v54 }
0x28da   :  { %v6244_v36 = vcvt.s32.f32 %v6242_v37 }
0x2907   :  { %v9645_v6 = vpop.permute.xlu0 %6867 }
0x2908   :  { %vm6870_vm11 = vcmp.eq.s32.totalorder %v9272_v63, %v9645_v6 }
0x2909   :  { %v6871_v14 = vsel %vm6870_vm11, %v6784_v49, 0 }
0x290a   :  { %v6872_v43 = vsel %vm6444_vm3, %v6871_v14, 0 }
0x290b   :  { %v6874_v18 = vshrl.u32 %v6872_v43, 16  ;;  %v6873_v12 = vand.u32 65535, %v6872_v43  ;;  %v6282_v43 = vrot.slane %v6281_v1, 2 }
0x290d   :  { %v6876_v30 = vcvt.s32.f32 %v6874_v18  ;;  %v6875_v41 = vcvt.s32.f32 %v6873_v12  ;;  %vm6283_vm11 = vcmp.lt.s32.totalorder %v6281_v1, %v6282_v43 }
0x290f   :  { %6879 = vadd.xlane.f32.xlu0 %v6876_v30  ;;  %6877 = vadd.xlane.f32.xlu1 %v6875_v41  ;;  %v6284_v30 = vsel %vm6283_vm11, %v6281_v1, %v6282_v43 }
0x2910   :  { %v6285_v20 = vrot.slane %v6284_v30, 1 }
0x2912   :  { %vm6286_vm8 = vcmp.lt.s32.totalorder %v6284_v30, %v6285_v20 }
0x2927   :  { %v9651_v7 = vpop.permute.xlu1 %6439 }
0x2928   :  { %vm6442_vm10 = vcmp.eq.s32.totalorder %v9272_v63, %v9651_v7 }
0x2929   :  { %v6443_v2 = vsel %vm6442_vm10, %v6351_v27, 0  ;;  %v6287_v27 = vsel %vm6286_vm8, %v6284_v30, %v6285_v20 }
0x292a   :  { %v6445_v44 = vsel %vm6444_vm3, %v6443_v2, 0 }
0x292b   :  { %v6447_v28 = vshrl.u32 %v6445_v44, 16  ;;  %v6446_v3 = vand.u32 65535, %v6445_v44 }
0x292d   :  { %v6449_v16 = vcvt.s32.f32 %v6447_v28  ;;  %v6448_v35 = vcvt.s32.f32 %v6446_v3 }
0x292f   :  { %6452 = vadd.xlane.f32.xlu1 %v6449_v16 }
0x2933   :  { %6450 = vadd.xlane.f32.xlu1 %v6448_v35  ;;  %v6710_v35 = vsel %vm6709_vm4, %v8425_v33, 5 }
0x2934   :  { %v6711_v51 = vsel %vm6171_vm9, %v6710_v35, 2147483647 }
0x2959   :  { %v9665_v59 = vpop.xlane.xlu1 %6743 }
0x295a   :  { %vm6745_vm15 = vcmp.eq.f32.partialorder %v6742_v57, %v9665_v59  ;;  %v6750_v10 = vcvt.f32.s32 %v9665_v59 }
0x295b   :  { %v6746_v4 = vsel %vm6745_vm15, %v6741_v45, inf  ;;  %v6712_v45 = vrot.slane %v6711_v51, 4 }
0x295c   :  { %6747 = vmin.xlane.f32.xlu1 %v6746_v4 }
0x295d   :  { %v6315_v57 = vpop.xlane.xlu1 %6314  ;;  %vm6713_vm10 = vcmp.lt.s32.totalorder %v6711_v51, %v6712_v45 }
0x295e   :  { %v6316_v24 = vcvt.f32.s32 %v6315_v57  ;;  %v6176_v57 = vsel %vm6175_vm7, %v9272_v63, 5  ;;  %v6714_v47 = vsel %vm6713_vm10, %v6711_v51, %v6712_v45 }
0x295f   :  { %v6715_v39 = vrot.slane %v6714_v47, 2  ;;  %v6177_v1 = vsel %vm6171_vm9, %v6176_v57, 2147483647 }
0x2960   :  { %6246 = vmin.xlane.f32.xlu1 %v9672_v22  ;;  %v6319_v13 = vadd.s32 %v6318_v31, %v6316_v24 }
0x2961   :  { %vm6716_vm6 = vcmp.lt.s32.totalorder %v6714_v47, %v6715_v39 }
0x2962   :  { %v6717_v43 = vsel %vm6716_vm6, %v6714_v47, %v6715_v39 }
0x2964   :  { %6679 = vmin.xlane.f32.xlu1 %v9676_v25 }
0x2998   :  { %v6878_v17 = vpop.xlane.xlu1 %6877  ;;  %v6880_v56 = vpop.xlane.xlu0 %6879 }
0x2999   :  { %v6882_v62 = vcvt.f32.s32 %v6880_v56  ;;  %v6881_v58 = vcvt.f32.s32 %v6878_v17  ;;  %v6179_v17 = vshra.s32 %v6177_v1, 16  ;;  %v6178_v56 = vand.u32 65535, %v6177_v1 }
0x299b   :  { %v6883_v4 = vshll.u32 %v6882_v62, 16  ;;  %v6181_v31 = vcvt.s32.f32 %v6179_v17 }
0x299d   :  { %v9704_v40 = vadd.s32 %v6883_v4, %v6881_v58  ;;  %v6180_v4 = vcvt.s32.f32 %v6178_v56 }
0x299f   :  { %vm6891_vm4 = vcmp.eq.s32.totalorder %v8425_v33, %v9704_v40 }
0x29b8   :  { %v6453_v5 = vpop.xlane.xlu1 %6452 }
0x29b9   :  { %v6455_v55 = vcvt.f32.s32 %v6453_v5  ;;  %v6751_v5 = vshll.u32 %v6750_v10, 16 }
0x29bb   :  { %v6456_v49 = vshll.u32 %v6455_v55, 16 }
0x29bc   :  { %v6451_v15 = vpop.xlane.xlu1 %6450 }
0x29bd   :  { %v6454_v14 = vcvt.f32.s32 %v6451_v15 }
0x29bf   :  { %v9685_v18 = vadd.s32 %v6456_v49, %v6454_v14 }
0x29c1   :  { %vm6465_vm1 = vcmp.eq.s32.totalorder %v8425_v33, %v9685_v18 }
0x29c2   :  { %v6466_v52 = vsel %vm6465_vm1, %v6319_v13, 0  ;;  %vm6608_vm1 = vcmp.ge.f32.partialorder %v9321_v19, %v9334_v26 }
0x29c3   :  { %v6468_v12 = vsel %vm6467_vm2, %v6466_v52, 0  ;;  %v6718_v52 = vrot.slane %v6717_v43, 1 }
0x29c4   :  { %v6469_v9 = vrot.slane %v6468_v12, 4 }
0x29c5   :  { %vm6719_vm15 = vcmp.lt.s32.totalorder %v6717_v43, %v6718_v52 }
0x29c6   :  { %v6470_v60 = vadd.s32 %v6469_v9, %v6468_v12  ;;  %v6720_v30 = vsel %vm6719_vm15, %v6717_v43, %v6718_v52 }
0x29c8   :  { %v6471_v41 = vrot.slane %v6470_v60, 2 }
0x29ca   :  { %v6472_v61 = vadd.s32 %v6471_v41, %v6470_v60 }
0x29cc   :  { %v6473_v46 = vrot.slane %v6472_v61, 1 }
0x29ce   :  { %v9690_v32 = vadd.s32 %v6473_v46, %v6472_v61 }
0x29d0   :  { %vm6482_vm5 = vcmp.eq.s32.totalorder %v9272_v63, %v9690_v32 }
0x29d1   :  { %v6483_v2 = vsel %vm6482_vm5, %v6287_v27, 0  ;;  %v6609_v27 = vsel %vm6608_vm1, %v9272_v63, 5  ;;  %vm6459_vm1 = vcmp.eq.s32.totalorder %v9272_v63, 5 }
0x29d2   :  { %v6484_v44 = vsel %vm6444_vm3, %v6483_v2, 0 }
0x29d3   :  { %v6486_v28 = vshrl.u32 %v6484_v44, 16  ;;  %v6485_v3 = vand.u32 65535, %v6484_v44  ;;  %v6675_v44 = vand.u32 65535, %v9670_v38 }
0x29d5   :  { %v6488_v16 = vcvt.s32.f32 %v6486_v28  ;;  %v6487_v50 = vcvt.s32.f32 %v6485_v3  ;;  %v6677_v3 = vcvt.s32.f32 %v6675_v44 }
0x29d7   :  { %6491 = vadd.xlane.f32.xlu1 %v6488_v16  ;;  %v6610_v16 = vsel %vm6171_vm9, %v6609_v27, 2147483647 }
0x29d8   :  { %v6612_v35 = vshra.s32 %v6610_v16, 16  ;;  %v6611_v52 = vand.u32 65535, %v6610_v16 }
0x29da   :  { %v6614_v51 = vcvt.s32.f32 %v6612_v35 }
0x29db   :  { %6489 = vadd.xlane.f32.xlu1 %v6487_v50 }
0x29e5   :  { %v6748_v34 = vpop.xlane.xlu1 %6747 }
0x29e6   :  { %v6749_v55 = vcvt.f32.s32 %v6748_v34 }
0x29e8   :  { %v6752_v24 = vadd.s32 %v6751_v5, %v6749_v55  ;;  %v6646_v5 = vsel %vm6645_vm14, %v8425_v33, 5  ;;  %v6213_v55 = vsel %vm6212_vm12, %v8425_v33, 5 }
0x29e9   :  { %v6247_v23 = vpop.xlane.xlu1 %6246  ;;  %v6647_v1 = vsel %vm6171_vm9, %v6646_v5, 2147483647 }
0x29ea   :  { %v6892_v59 = vsel %vm6891_vm4, %v6752_v24, 0  ;;  %vm6248_vm13 = vcmp.eq.f32.partialorder %v9672_v22, %v6247_v23  ;;  %v6253_v10 = vcvt.f32.s32 %v6247_v23  ;;  %v6214_v24 = vsel %vm6171_vm9, %v6213_v55, 2147483647 }
0x29eb   :  { %v6893_v15 = vsel %vm6467_vm2, %v6892_v59, 0  ;;  %v6249_v49 = vsel %vm6248_vm13, %v6244_v36, inf  ;;  %v6648_v36 = vrot.slane %v6647_v1, 4  ;;  %v6215_v17 = vrot.slane %v6214_v24, 4 }
0x29ec   :  { %v6894_v54 = vrot.slane %v6893_v15, 4  ;;  %6250 = vmin.xlane.f32.xlu1 %v6249_v49  ;;  %v6254_v34 = vshll.u32 %v6253_v10, 16 }
0x29ed   :  { %v6680_v2 = vpop.xlane.xlu1 %6679  ;;  %vm6649_vm14 = vcmp.lt.s32.totalorder %v6647_v1, %v6648_v36  ;;  %vm6216_vm7 = vcmp.lt.s32.totalorder %v6214_v24, %v6215_v17 }
0x29ee   :  { %v6895_v14 = vadd.s32 %v6894_v54, %v6893_v15  ;;  %vm6681_vm11 = vcmp.eq.f32.partialorder %v9676_v25, %v6680_v2  ;;  %v6686_v8 = vcvt.f32.s32 %v6680_v2 }
0x29ef   :  { %v6682_v50 = vsel %vm6681_vm11, %v6677_v3, inf }
0x29f0   :  { %v6896_v13 = vrot.slane %v6895_v14, 2  ;;  %6182 = vmin.xlane.f32.xlu1 %v6181_v31 }
0x29f2   :  { %v6897_v12 = vadd.s32 %v6896_v13, %v6895_v14  ;;  %v6650_v14 = vsel %vm6649_vm14, %v6647_v1, %v6648_v36 }
0x29f4   :  { %v6898_v9 = vrot.slane %v6897_v12, 1 }
0x29f6   :  { %v9712_v60 = vadd.s32 %v6898_v9, %v6897_v12  ;;  %v6687_v12 = vshll.u32 %v6686_v8, 16 }
0x29f8   :  { %vm6906_vm0 = vcmp.eq.s32.totalorder %v9272_v63, %v9712_v60 }
0x29f9   :  { %v6907_v22 = vsel %vm6906_vm0, %v6720_v30, 0  ;;  %v6651_v30 = vrot.slane %v6650_v14, 2 }
0x29fa   :  { %v6908_v41 = vsel %vm6444_vm3, %v6907_v22, 0 }
0x29fb   :  { %v6910_v20 = vshrl.u32 %v6908_v41, 16  ;;  %v6909_v46 = vand.u32 65535, %v6908_v41  ;;  %vm6652_vm10 = vcmp.lt.s32.totalorder %v6650_v14, %v6651_v30 }
0x29fc   :  { %v6653_v3 = vsel %vm6652_vm10, %v6650_v14, %v6651_v30 }
0x29fd   :  { %v6912_v61 = vcvt.s32.f32 %v6910_v20  ;;  %v6911_v28 = vcvt.s32.f32 %v6909_v46  ;;  %v6654_v56 = vrot.slane %v6653_v3, 1 }
0x29ff   :  { %6915 = vadd.xlane.f32.xlu0 %v6912_v61  ;;  %vm6655_vm13 = vcmp.lt.s32.totalorder %v6653_v3, %v6654_v56 }
0x2a03   :  { %6913 = vadd.xlane.f32.xlu0 %v6911_v28 }
0x2a07   :  { %6683 = vmin.xlane.f32.xlu0 %v6682_v50 }
0x2a0b   :  { %6615 = vmin.xlane.f32.xlu0 %v6614_v51 }
0x2a21   :  { %6413 = vperm.xlu0 %8130, %v9611_v48  }
0x2a60   :  { %v6492_v19 = vpop.xlane.xlu1 %6491 }
0x2a61   :  { %v6494_v62 = vcvt.f32.s32 %v6492_v19 }
0x2a63   :  { %v6495_v47 = vshll.u32 %v6494_v62, 16 }
0x2a64   :  { %v6490_v26 = vpop.xlane.xlu1 %6489 }
0x2a65   :  { %v6493_v25 = vcvt.f32.s32 %v6490_v26 }
0x2a67   :  { %v9727_v37 = vadd.s32 %v6495_v47, %v6493_v25  ;;  %v6656_v25 = vsel %vm6655_vm13, %v6653_v3, %v6654_v56 }
0x2a69   :  { %vm6504_vm5 = vcmp.eq.s32.totalorder %v8425_v33, %v9727_v37 }
0x2a75   :  { %v6251_v45 = vpop.xlane.xlu1 %6250 }
0x2a76   :  { %v6252_v57 = vcvt.f32.s32 %v6251_v45 }
0x2a78   :  { %v6255_v48 = vadd.s32 %v6254_v34, %v6252_v57 }
0x2a79   :  { %v9724_v38 = vpop.xlane.xlu1 %6182 }
0x2a7a   :  { %vm6184_vm8 = vcmp.eq.f32.partialorder %v6181_v31, %v9724_v38  ;;  %v6505_v39 = vsel %vm6504_vm5, %v6255_v48, 0  ;;  %v6217_v31 = vsel %vm6216_vm7, %v6214_v24, %v6215_v17  ;;  %vm6476_vm5 = vcmp.eq.s32.totalorder %v9272_v63, 4 }
0x2a7b   :  { %v6185_v58 = vsel %vm6184_vm8, %v6180_v4, inf  ;;  %v6506_v23 = vsel %vm6467_vm2, %v6505_v39, 0  ;;  %v6218_v41 = vrot.slane %v6217_v31, 2 }
0x2a7c   :  { %6186 = vmin.xlane.f32.xlu1 %v6185_v58  ;;  %v6507_v29 = vrot.slane %v6506_v23, 4 }
0x2a7d   :  { %vm6219_vm4 = vcmp.lt.s32.totalorder %v6217_v31, %v6218_v41 }
0x2a7e   :  { %v6508_v49 = vadd.s32 %v6507_v29, %v6506_v23  ;;  %v6220_v35 = vsel %vm6219_vm4, %v6217_v31, %v6218_v41  ;;  %v6461_v31 = vstv %s9775_s1 }
0x2a7f   :  { %v6221_v45 = vrot.slane %v6220_v35, 1  ;;  %vm9826_vm14 = vcmp.eq.s32.totalorder %v6461_v31, 1 }
0x2a80   :  { %v6509_v22 = vrot.slane %v6508_v49, 2 }
0x2a81   :  { %vm6222_vm6 = vcmp.lt.s32.totalorder %v6220_v35, %v6221_v45 }
0x2a82   :  { %v6510_v27 = vadd.s32 %v6509_v22, %v6508_v49  ;;  %v6223_v57 = vsel %vm6222_vm6, %v6220_v35, %v6221_v45  ;;  %v6435_v49 = vstv %s9771_s5 }
0x2a83   :  { %vm9818_vm8 = vcmp.eq.s32.totalorder %v6435_v49, 1 }
0x2a84   :  { %v6511_v50 = vrot.slane %v6510_v27, 1 }
0x2a88   :  { %v6916_v59 = vpop.xlane.xlu0 %6915 }
0x2a89   :  { %v6918_v0 = vcvt.f32.s32 %v6916_v59 }
0x2a8b   :  { %v6919_v54 = vshll.u32 %v6918_v0, 16  ;;  %v6189_v0 = vcvt.f32.s32 %v9724_v38 }
0x2a8c   :  { %v6914_v15 = vpop.xlane.xlu0 %6913 }
0x2a8d   :  { %v6917_v53 = vcvt.f32.s32 %v6914_v15  ;;  %6420 = vperm.xlu1 %8131, %v9622_v21   ;;  %v6613_v21 = vcvt.s32.f32 %v6611_v52  ;;  %v6190_v38 = vshll.u32 %v6189_v0, 16 }
0x2a8f   :  { %v9743_v43 = vadd.s32 %v6919_v54, %v6917_v53  ;;  %v6417_v53 = vstv %s9767_s16 }
0x2a90   :  { %v6684_v13 = vpop.xlane.xlu0 %6683  ;;  %vm9814_vm11 = vcmp.eq.s32.totalorder %v9272_v63, %v6417_v53 }
0x2a91   :  { %v6685_v9 = vcvt.f32.s32 %v6684_v13  ;;  %vm6927_vm9 = vcmp.eq.s32.totalorder %v8425_v33, %v9743_v43  ;;  %v6478_v13 = vstv %s9781_s2 }
0x2a92   :  { %vm9830_vm7 = vcmp.eq.s32.totalorder %v6478_v13, 1 }
0x2a93   :  { %v6688_v20 = vadd.s32 %v6687_v12, %v6685_v9 }
0x2a94   :  { %v9747_v61 = vpop.xlane.xlu0 %6615 }
0x2a95   :  { %v6928_v46 = vsel %vm6927_vm9, %v6688_v20, 0  ;;  %vm6617_vm12 = vcmp.eq.f32.partialorder %v6614_v51, %v9747_v61  ;;  %v9754_v51 = vadd.s32 %v6511_v50, %v6510_v27  ;;  %v6622_v15 = vcvt.f32.s32 %v9747_v61 }
0x2a96   :  { %v6929_v2 = vsel %vm6467_vm2, %v6928_v46, 0  ;;  %v6618_v44 = vsel %vm6617_vm12, %v6613_v21, inf  ;;  %v6500_v46 = vstv %s9785_s17  ;;  %vm6498_vm9 = vcmp.eq.s32.totalorder %v9272_v63, 3 }
0x2a97   :  { %v6930_v28 = vrot.slane %v6929_v2, 4  ;;  %6619 = vmin.xlane.f32.xlu0 %v6618_v44  ;;  %vm6520_vm15 = vcmp.eq.s32.totalorder %v9272_v63, %v9754_v51  ;;  %v6623_v9 = vshll.u32 %v6622_v15, 16  ;;  %v6887_v50 = vstv %s9798_s19 }
0x2a98   :  { %v6521_v34 = vsel %vm6520_vm15, %v6223_v57, 0  ;;  %vm9887_vm15 = vmand %vm6459_vm1, %vm9826_vm14 }
0x2a99   :  { %v6931_v16 = vadd.s32 %v6930_v28, %v6929_v2  ;;  %v6522_v39 = vsel %vm6444_vm3, %v6521_v34, 0  ;;  %v6846_v28 = vstv %s9779_s0 }
0x2a9a   :  { %v6523_v1 = vand.u32 65535, %v6522_v39  ;;  %v6524_v23 = vshrl.u32 %v6522_v39, 16  ;;  %vm9874_vm13 = vcmp.eq.s32.totalorder %v9272_v63, %v6846_v28  ;;  %v6938_v39 = vstv %s9846_s21 }
0x2a9b   :  { %v6932_v19 = vrot.slane %v6931_v16, 2 }
0x2a9c   :  { %v6414_v26 = vpop.permute.xlu0 %6413  ;;  %v6525_v36 = vcvt.s32.f32 %v6523_v1  ;;  %v6526_v59 = vcvt.s32.f32 %v6524_v23 }
0x2a9d   :  { %v6933_v62 = vadd.s32 %v6932_v19, %v6931_v16  ;;  %6416 = vst [vmem:[%s10053_s13] sm:$0x1] %v6414_v26  ;;  %v6863_v16 = vstv %s9794_s18 }
0x2a9e   :  { %vm9878_vm6 = vcmp.eq.s32.totalorder %v6863_v16, 1 }
0x2a9f   :  { %v6934_v4 = vrot.slane %v6933_v62, 1 }
0x2aa1   :  { %v9756_v10 = vadd.s32 %v6934_v4, %v6933_v62  ;;  %v6902_v62 = vstv %s9811_s20 }
0x2aa3   :  { %vm6942_vm0 = vcmp.eq.s32.totalorder %v9272_v63, %v9756_v10 }
0x2aa4   :  { %v6943_v58 = vsel %vm6942_vm0, %v6656_v25, 0  ;;  %vm9896_vm0 = vcmp.eq.s32.totalorder %v6887_v50, 1 }
0x2aa5   :  { %v6944_v47 = vsel %vm6444_vm3, %v6943_v58, 0  ;;  %vm6433_vm3 = vcmp.eq.s32.totalorder %v9272_v63, 6 }
0x2aa6   :  { %v6946_v48 = vshrl.u32 %v6944_v47, 16  ;;  %v6945_v55 = vand.u32 65535, %v6944_v47  ;;  %vm9865_vm4 = vmand %vm6433_vm3, %vm9818_vm8  ;;  %v6923_v47 = vstv %s9837_s11 }
0x2aa7   :  { %vm9906_vm8 = vmand %vm6476_vm5, %vm9830_vm7  ;;  %vm9926_vm7 = vcmp.eq.s32.totalorder %v6923_v47, 1 }
0x2aa8   :  { %v6948_v5 = vcvt.s32.f32 %v6946_v48  ;;  %v6947_v24 = vcvt.s32.f32 %v6945_v55 }
0x2aaa   :  { %6951 = vadd.xlane.f32.xlu0 %v6948_v5 }
0x2aae   :  { %6949 = vadd.xlane.f32.xlu0 %v6947_v24 }
0x2ab1   :  { %6527 = vadd.xlane.f32.xlu1 %v6525_v36  ;;  %v6959_v36 = vstv %s9852_s7 }
0x2ab2   :  { %6529 = vadd.xlane.f32.xlu0 %v6526_v59  ;;  %vm9950_vm10 = vcmp.eq.s32.totalorder %v6959_v36, 1 }
0x2ac2   :  { %6841 = vperm.xlu1 %8131, %v9606_v42  }
0x2ac8   :  { %6849 = vperm.xlu0 %8130, %v9616_v11  }
0x2b05   :  { %v9783_v11 = vpop.xlane.xlu1 %6186 }
0x2b06   :  { %v6188_v3 = vcvt.f32.s32 %v9783_v11 }
0x2b08   :  { %v6191_v1 = vadd.s32 %v6190_v38, %v6188_v3 }
0x2b09   :  { %v9796_v8 = vpop.permute.xlu1 %6420 }
0x2b0a   :  { %v6422_v48 = vsel %vm9814_vm11, %v9796_v8, 0  ;;  %vm9911_vm11 = vcmp.eq.s32.totalorder %v6902_v62, 1 }
0x2b0b   :  { %v6441_v0 = vsel %vm9865_vm4, %v9651_v7, %v6422_v48  ;;  %vm6552_vm4 = vcmp.eq.s32.totalorder %v9272_v63, 0 }
0x2b20   :  { %v6620_v42 = vpop.xlane.xlu0 %6619 }
0x2b21   :  { %v6621_v54 = vcvt.f32.s32 %v6620_v42  ;;  %v6516_v42 = vstv %s9789_s30 }
0x2b23   :  { %v6624_v27 = vadd.s32 %v6623_v9, %v6621_v54  ;;  %v6464_v9 = vsel %vm9887_vm15, %v9685_v18, %v6441_v0  ;;  %vm10002_vm15 = vcmp.eq.s32.totalorder %v6516_v42, 1 }
0x2b33   :  { %v6952_v17 = vpop.xlane.xlu0 %6951 }
0x2b34   :  { %v6954_v29 = vcvt.f32.s32 %v6952_v17 }
0x2b36   :  { %v6955_v52 = vshll.u32 %v6954_v29, 16  ;;  %v6974_v29 = vstv %s9859_s22 }
0x2b37   :  { %v6950_v14 = vpop.xlane.xlu0 %6949 }
0x2b38   :  { %v6953_v12 = vcvt.f32.s32 %v6950_v14 }
0x2b3a   :  { %v9823_v41 = vadd.s32 %v6955_v52, %v6953_v12  ;;  %v6528_v20 = vpop.xlane.xlu1 %6527 }
0x2b3b   :  { %v6530_v2 = vpop.xlane.xlu0 %6529  ;;  %v6531_v26 = vcvt.f32.s32 %v6528_v20 }
0x2b3c   :  { %vm6963_vm12 = vcmp.eq.s32.totalorder %v8425_v33, %v9823_v41  ;;  %v6532_v44 = vcvt.f32.s32 %v6530_v2 }
0x2b3d   :  { %v6964_v35 = vsel %vm6963_vm12, %v6624_v27, 0  ;;  %vm9922_vm12 = vmand %vm6433_vm3, %vm9878_vm6  ;;  %vm9946_vm6 = vcmp.eq.s32.totalorder %v6938_v39, 1 }
0x2b3e   :  { %v6965_v19 = vsel %vm6467_vm2, %v6964_v35, 0  ;;  %v6533_v56 = vshll.u32 %v6532_v44, 16  ;;  %v6842_v45 = vpop.permute.xlu1 %6841  ;;  %vm9942_vm3 = vmand %vm6459_vm1, %vm9896_vm0  ;;  %vm6536_vm0 = vcmp.eq.s32.totalorder %v9272_v63, 1 }
0x2b3f   :  { %v6966_v25 = vrot.slane %v6965_v19, 4  ;;  %7307 = vst [vmem:[%s10053_s13 + $0x1] sm:$0x1] %v6842_v45  ;;  %s9936_s13 = scalar_select %p6535_p3, 1, 0  ;;  %vm9959_vm1 = vmand %vm6476_vm5, %vm9911_vm11  ;;  %vm6975_vm5 = vcmp.eq.s32.totalorder %v6974_v29, 1 }
0x2b40   :  { %v9894_v5 = vadd.s32 %v6533_v56, %v6531_v26  ;;  %vm10118_vm11 = vcmp.eq.s32.totalorder %v9272_v63, 2 }
0x2b41   :  { %v6967_v23 = vadd.s32 %v6966_v25, %v6965_v19  ;;  %v6538_v20 = vstv %s9936_s13 }
0x2b42   :  { %vm6542_vm14 = vcmp.eq.s32.totalorder %v8425_v33, %v9894_v5 }
0x2b43   :  { %v6968_v15 = vrot.slane %v6967_v23, 2  ;;  %v6543_v33 = vsel %vm6542_vm14, %v6191_v1, 0  ;;  %v6850_v49 = vpop.permute.xlu0 %6849  ;;  %vm6940_vm14 = vmand %vm10118_vm11, %vm9946_vm6 }
0x2b44   :  { %v6544_v54 = vsel %vm6467_vm2, %v6543_v33, 0  ;;  %v6851_v31 = vsel %vm9874_vm13, %v6850_v49, 0  ;;  %vm9972_vm2 = vmand %vm6498_vm9, %vm9926_vm7  ;;  %vm6501_vm13 = vcmp.eq.s32.totalorder %v6500_v46, 1  ;;  %v6554_v46 = vstv %s6553_s25 }
0x2b45   :  { %v6969_v13 = vadd.s32 %v6968_v15, %v6967_v23  ;;  %v6545_v52 = vrot.slane %v6544_v54, 4  ;;  %v6869_v38 = vsel %vm9922_vm12, %v9645_v6, %v6851_v31  ;;  %vm9995_vm12 = vmand %vm6536_vm0, %vm9950_vm10  ;;  %vm6555_vm6 = vcmp.eq.s32.totalorder %v6554_v46, 1 }
0x2b46   :  { %v6890_v30 = vsel %vm9942_vm3, %v9704_v40, %v6869_v38  ;;  %vm6976_vm10 = vmand %vm6552_vm4, %vm6975_vm5  ;;  %vm6539_vm3 = vcmp.eq.s32.totalorder %v6538_v20, 1 }
0x2b47   :  { %v6970_v22 = vrot.slane %v6969_v13, 1  ;;  %v6546_v18 = vadd.s32 %v6545_v52, %v6544_v54  ;;  %v6905_v61 = vsel %vm9959_vm1, %v9712_v60, %v6890_v30  ;;  %vm10013_vm7 = vmand %vm6498_vm9, %vm6501_vm13  ;;  %v6481_v60 = vsel %vm9906_vm8, %v9690_v32, %v6464_v9 }
0x2b48   :  { %v6926_v40 = vsel %vm9972_vm2, %v9743_v43, %v6905_v61  ;;  %v6503_v35 = vsel %vm10013_vm7, %v9727_v37, %v6481_v60  ;;  %vm10125_vm9 = vmmov %vm10118_vm11 }
0x2b49   :  { %v6971_v2 = vadd.s32 %v6970_v22, %v6969_v13  ;;  %v6547_v44 = vrot.slane %v6546_v18, 2  ;;  %v6941_v28 = vsel %vm6940_vm14, %v9756_v10, %v6926_v40  ;;  %vm6518_vm8 = vmand %vm10125_vm9, %vm10002_vm15 }
0x2b4a   :  { %v6962_v43 = vsel %vm9995_vm12, %v9823_v41, %v6941_v28  ;;  %vm6540_vm1 = vmand %vm6536_vm0, %vm6539_vm3  ;;  %v6519_v10 = vsel %vm6518_vm8, %v9754_v51, %v6503_v35 }
0x2b4b   :  { %v6548_v16 = vadd.s32 %v6547_v44, %v6546_v18  ;;  %v6977_v3 = vsel %vm6976_vm10, %v6971_v2, %v6962_v43  ;;  %vm6556_vm2 = vmand %vm6552_vm4, %vm6555_vm6  ;;  %v6541_v37 = vsel %vm6540_vm1, %v9894_v5, %v6519_v10 }
0x2b4c   :  { %6979 = vst [vmem:[#allocation4 + $0x1] sm:$0x1] %v6977_v3 }
0x2b4d   :  { %v6549_v32 = vrot.slane %v6548_v16, 1 }
0x2b4f   :  { %v6550_v41 = vadd.s32 %v6549_v32, %v6548_v16 }
0x2b51   :  { %v6557_v50 = vsel %vm6556_vm2, %v6550_v41, %v6541_v37 }
0x2b52   :  { %6558 = vst [vmem:[#allocation4] sm:$0x1] %v6557_v50 }
0x2b53   :  { %8235 = shalt.err (!%p8232_p9)
}
0x2b54   :  { %s8258_s9 = smov 16   ;;  %s8259_s28 = smov 1  }
0x2b55   :  { %6993 = dma.vmem_to_hbm [thread:$0]  %s6988_s27, 32, %s10052_s12, [#allocation5], %s8258_s9, %s8258_s9, %s8259_s28  }
0x2b56   :  { %8246 = dma.done.wait [#allocation5], 32  }
0x2b57   :  { %8247 = vsyncadd [#allocation5], 4294967264 }
0x2b58   :  { %7003 = vsyncpa [#allocation5], 1 }

</bundles_post_ra>
